<compile_context>
chip_gen: v7x
topology: tpu7x:2x2x1
jax: 0.10.0
libtpu: 0.0.40
codegen_flags: <defaults>
</compile_context>

<pallas_src>
import numpy as np

import jax
import jax.numpy as jnp
from jax import lax
from jax.experimental import pallas as pl
from jax.experimental.pallas import tpu as pltpu

LANE = 128  # TPU lane width; all matmul N dims are padded to this.


# --------------------------- packing (runs once) ----------------------------

def init_torch_params(key):
    """Parameters in PyTorch layout (conv: OIHW, linear: (out, in))."""
    ks = jax.random.split(key, 8)

    def norm(k, shape, scale):
        return (scale * jax.random.normal(k, shape)).astype(jnp.float32)

    return {
        "conv1_w": norm(ks[0], (10, 1, 5, 5), 0.2),
        "conv1_b": norm(ks[1], (10,), 0.1),
        "conv2_w": norm(ks[2], (20, 10, 5, 5), 0.1),
        "conv2_b": norm(ks[3], (20,), 0.1),
        "fc1_w": norm(ks[4], (50, 320), 0.05),
        "fc1_b": norm(ks[5], (50,), 0.05),
        "fc2_w": norm(ks[6], (10, 50), 0.1),
        "fc2_b": norm(ks[7], (10,), 0.1),
    }


def _build_gather():
    """Per-tap 0/1 matrices gathering p1 rows (12x12 map, row = a*12 + b) into
    conv2-output rows ordered (pool-tap dh2,dw2 ; pooled row ho2 ; pooled col wo2)."""
    r_out = np.arange(64)
    blk = r_out // 16
    dh2, dw2 = blk // 2, blk % 2
    rem = r_out % 16
    ho2, wo2 = rem // 4, rem % 4
    h2 = 2 * ho2 + dh2          # conv2 output pixel row (0..7)
    w2 = 2 * wo2 + dw2          # conv2 output pixel col (0..7)
    G = np.zeros((25, 64, 144), np.float32)
    for i in range(5):
        for j in range(5):
            r_in = (h2 + i) * 12 + (w2 + j)
            G[i * 5 + j, r_out, r_in] = 1.0
    return jnp.asarray(G, jnp.bfloat16)


def pack_params(p):
    """One-time weight prep: matmul layouts, 128-lane padding (absorbed channel
    padding), bf16 weights, f32 biases, plus the conv2 row-gather matrices."""
    bf16, f32 = jnp.bfloat16, jnp.float32

    # conv1: (10,1,5,5) -> (tap=i*5+j, oc) -> (32,128)
    w1 = jnp.transpose(p["conv1_w"][:, 0], (1, 2, 0)).reshape(25, 10)
    W1 = jnp.pad(w1, ((0, 32 - 25), (0, LANE - 10))).astype(bf16)
    b1 = jnp.pad(p["conv1_b"], (0, LANE - 10)).reshape(1, LANE).astype(f32)

    # conv2: (20,10,5,5) -> (tap, ic, oc) -> (25,128,128)
    w2 = jnp.transpose(p["conv2_w"], (2, 3, 1, 0)).reshape(25, 10, 20)
    W2 = jnp.pad(w2, ((0, 0), (0, LANE - 10), (0, LANE - 20))).astype(bf16)
    b2 = jnp.pad(p["conv2_b"], (0, LANE - 20)).reshape(1, LANE).astype(f32)

    # fc1: torch flat index = c*16 + r (r = h*4+w) -> Wf1[r, c, o], (16,128,128)
    f1 = jnp.transpose(p["fc1_w"].reshape(50, 20, 16), (2, 1, 0))   # (r,c,o)
    Wf1 = jnp.pad(f1, ((0, 0), (0, LANE - 20), (0, LANE - 50))).astype(bf16)
    bf1 = jnp.pad(p["fc1_b"], (0, LANE - 50)).reshape(1, LANE).astype(f32)

    # fc2: (10,50) -> (k,o) -> (128,128)
    Wf2 = jnp.pad(p["fc2_w"].T, ((0, LANE - 50), (0, LANE - 10))).astype(bf16)
    bf2 = jnp.pad(p["fc2_b"], (0, LANE - 10)).reshape(1, LANE).astype(f32)

    return {
        "W1": W1, "b1": b1, "G": _build_gather(), "W2": W2, "b2": b2,
        "Wf1": Wf1, "bf1": bf1, "Wf2": Wf2, "bf2": bf2,
    }


# ------------------------------ fused kernel --------------------------------

def _net_kernel(patches_ref, w1_ref, b1_ref, g_ref, w2_ref, b2_ref,
                wf1_ref, bf1_ref, wf2_ref, bf2_ref, out_ref):
    f32, bf16 = jnp.float32, jnp.bfloat16

    # ---- conv1 (+bias) -> 2x2 maxpool -> relu -----------------------------
    # patch rows are pre-ordered (dh,dw,ho,wo): 4 contiguous 144-row tap blocks.
    # Bias is channel-constant, so max(y)+b == max(y+b); relu after pool == before.
    p1 = None
    for blk in range(4):
        yb = jnp.dot(patches_ref[0, blk * 144:(blk + 1) * 144, :], w1_ref[...],
                     preferred_element_type=f32)
        p1 = yb if p1 is None else jnp.maximum(p1, yb)
    p1 = jnp.maximum(p1 + b1_ref[...], 0.0).astype(bf16)   # (144,128): row=a*12+b

    # ---- conv2 via in-kernel im2col (per-tap MXU row-gather + weight matmul) ----
    acc2 = jnp.zeros((64, LANE), f32)
    for t in range(25):
        slab = jnp.dot(g_ref[t], p1, preferred_element_type=f32)      # (64,144)@(144,128)
        acc2 = acc2 + jnp.dot(slab.astype(bf16), w2_ref[t],
                              preferred_element_type=f32)             # (64,128)@(128,128)
    y2 = acc2 + b2_ref[...]
    # Dropout2d: eval-mode identity (TODO above).

    # ---- 2x2 maxpool -> relu ----------------------------------------------
    # conv2 output rows were emitted in (dh2,dw2,ho2,wo2) order: 4 blocks of 16.
    p2 = jnp.maximum(jnp.maximum(y2[0:16], y2[16:32]),
                     jnp.maximum(y2[32:48], y2[48:64]))
    p2 = jnp.maximum(p2, 0.0).astype(bf16)                  # (16,128): row=h*4+w

    # ---- fc1 (+relu); torch (c,h,w)-flatten order folded into Wf1 ----------
    h = bf1_ref[...]
    for r in range(16):
        h = h + jnp.dot(p2[r:r + 1, :], wf1_ref[r], preferred_element_type=f32)
    h = jnp.maximum(h, 0.0).astype(bf16)                    # (1,128)
    # F.dropout: eval-mode identity.

    # ---- fc2 + log_softmax (masked to the 10 real classes) -----------------
    y = jnp.dot(h, wf2_ref[...], preferred_element_type=f32) + bf2_ref[...]
    col = lax.broadcasted_iota(jnp.int32, y.shape, 1)
    ym = jnp.where(col < 10, y, -jnp.inf)
    m = jnp.max(ym, axis=-1, keepdims=True)
    lse = jnp.log(jnp.sum(jnp.exp(ym - m), axis=-1, keepdims=True)) + m
    out_ref[0] = y - lse


# ------------------------------- JAX wrapper --------------------------------

def _im2col_conv1(x_nchw):
    """(N,1,28,28) -> (N,576,32) bf16 patches; rows ordered (dh,dw,ho,wo),
    columns tap = i*5+j (K padded 25->32)."""
    x = x_nchw[:, 0]
    N = x.shape[0]
    cols = [x[:, i:i + 24, j:j + 24] for i in range(5) for j in range(5)]
    p = jnp.stack(cols, axis=-1)                     # (N,24,24,25) — (n,h,w,tap)
    p = p.reshape(N, 12, 2, 12, 2, 25)               # (n,ho,dh,wo,dw,tap)
    p = p.transpose(0, 2, 4, 1, 3, 5).reshape(N, 576, 25)
    p = jnp.pad(p, ((0, 0), (0, 0), (0, 32 - 25)))
    return p.astype(jnp.bfloat16)


@jax.jit
def net_forward(packed, x_nchw):
    assert x_nchw.shape[1:] == (1, 28, 28), "Net expects (N,1,28,28) inputs"
    N = x_nchw.shape[0]
    patches = _im2col_conv1(x_nchw)

    const2 = lambda n: (0, 0)
    const3 = lambda n: (0, 0, 0)
    out = pl.pallas_call(
        _net_kernel,
        grid=(N,),
        in_specs=[
            pl.BlockSpec((1, 576, 32), lambda n: (n, 0, 0)),      # conv1 patches
            pl.BlockSpec((32, LANE), const2),                     # W1
            pl.BlockSpec((1, LANE), const2),                      # b1
            pl.BlockSpec((25, 64, 144), const3),                  # conv2 row-gather
            pl.BlockSpec((25, LANE, LANE), const3),               # W2 taps
            pl.BlockSpec((1, LANE), const2),                      # b2
            pl.BlockSpec((16, LANE, LANE), const3),               # Wf1
            pl.BlockSpec((1, LANE), const2),                      # bf1
            pl.BlockSpec((LANE, LANE), const2),                   # Wf2
            pl.BlockSpec((1, LANE), const2),                      # bf2
        ],
        out_specs=pl.BlockSpec((1, 1, LANE), lambda n: (n, 0, 0)),
        out_shape=jax.ShapeDtypeStruct((N, 1, LANE), jnp.float32),
        compiler_params=pltpu.CompilerParams(dimension_semantics=("parallel",)),
    )(patches, packed["W1"], packed["b1"], packed["G"], packed["W2"], packed["b2"],
      packed["Wf1"], packed["bf1"], packed["Wf2"], packed["bf2"])
    return out[:, 0, :10]


# ------------------------- pure-JAX reference (XLA) --------------------------

def reference_forward(params, x):
    """Same math / same bf16-in, f32-accumulate quantization points as the kernel."""
    bf16, f32 = jnp.bfloat16, jnp.float32
    N = x.shape[0]
    dn1 = lax.conv_dimension_numbers(x.shape, params["conv1_w"].shape,
                                     ("NCHW", "OIHW", "NCHW"))
    y = lax.conv_general_dilated(x.astype(bf16), params["conv1_w"].astype(bf16),
                                 (1, 1), "VALID", dimension_numbers=dn1,
                                 preferred_element_type=f32)
    y = y + params["conv1_b"].reshape(1, -1, 1, 1)
    y = y.reshape(N, 10, 12, 2, 12, 2).max(axis=(3, 5))
    y = jnp.maximum(y, 0.0).astype(bf16)
    dn2 = lax.conv_dimension_numbers(y.shape, params["conv2_w"].shape,
                                     ("NCHW", "OIHW", "NCHW"))
    y = lax.conv_general_dilated(y, params["conv2_w"].astype(bf16),
                                 (1, 1), "VALID", dimension_numbers=dn2,
                                 preferred_element_type=f32)
    y = y + params["conv2_b"].reshape(1, -1, 1, 1)
    y = y.reshape(N, 20, 4, 2, 4, 2).max(axis=(3, 5))
    y = jnp.maximum(y, 0.0)
    flat = y.reshape(N, 320).astype(bf16)
    h = jnp.dot(flat, params["fc1_w"].T.astype(bf16),
                preferred_element_type=f32) + params["fc1_b"]
    h = jnp.maximum(h, 0.0).astype(bf16)
    o = jnp.dot(h, params["fc2_w"].T.astype(bf16),
                preferred_element_type=f32) + params["fc2_b"]
    m = jnp.max(o, axis=-1, keepdims=True)
    return o - (jnp.log(jnp.sum(jnp.exp(o - m), axis=-1, keepdims=True)) + m)


if __name__ == "__main__":
    key = jax.random.PRNGKey(0)
    pkey, xkey = jax.random.split(key)
    torch_params = init_torch_params(pkey)
    packed = pack_params(torch_params)

    # Shapes implied by the module: 1 input channel, 28x28 spatial (fc1 expects 320 = 20*4*4)
    x = jax.random.normal(xkey, (2, 1, 28, 28), dtype=jnp.float32)

    out = jax.block_until_ready(net_forward(packed, x))
    assert out.shape == (2, 10) and out.dtype == jnp.float32
    assert bool(jnp.all(jnp.isfinite(out)))
    # log-softmax rows must exponentiate to ~1
    row_sums = jnp.sum(jnp.exp(out), axis=-1)
    assert bool(jnp.all(jnp.abs(row_sums - 1.0) < 1e-2))
    # match a pure-JAX reference with the same quantization points
    ref = reference_forward(torch_params, x)
    assert bool(jnp.max(jnp.abs(out - ref)) < 2e-2)
    print("KERNEL_OK")
</pallas_src>

<mosaic_0001>
module attributes {stable_mosaic.version = 11 : i64} {
  func.func @_net_kernel(%arg0: i32, %arg1: memref<1x576x32xbf16, #tpu.memory_space<vmem>>, %arg2: memref<32x128xbf16, #tpu.memory_space<vmem>>, %arg3: memref<1x128xf32, #tpu.memory_space<vmem>>, %arg4: memref<25x64x144xbf16, #tpu.memory_space<vmem>>, %arg5: memref<25x128x128xbf16, #tpu.memory_space<vmem>>, %arg6: memref<1x128xf32, #tpu.memory_space<vmem>>, %arg7: memref<16x128x128xbf16, #tpu.memory_space<vmem>>, %arg8: memref<1x128xf32, #tpu.memory_space<vmem>>, %arg9: memref<128x128xbf16, #tpu.memory_space<vmem>>, %arg10: memref<1x128xf32, #tpu.memory_space<vmem>>, %arg11: memref<1x1x128xf32, #tpu.memory_space<vmem>>) attributes {dimension_semantics = [#tpu.dimension_semantics<parallel>], iteration_bounds = array<i64: 2>, scalar_prefetch = 0 : i64, scratch_operands = 0 : i64, tpu.core_type = #tpu.core_type<tc>, window_params = [{transform_indices = @transform_0, window_bounds = array<i64: 1, 576, 32>}, {pipeline_mode = #tpu.pipeline_mode<synchronous>, transform_indices = @transform_1, window_bounds = array<i64: 32, 128>}, {pipeline_mode = #tpu.pipeline_mode<synchronous>, transform_indices = @transform_2, window_bounds = array<i64: 1, 128>}, {pipeline_mode = #tpu.pipeline_mode<synchronous>, transform_indices = @transform_3, window_bounds = array<i64: 25, 64, 144>}, {pipeline_mode = #tpu.pipeline_mode<synchronous>, transform_indices = @transform_4, window_bounds = array<i64: 25, 128, 128>}, {pipeline_mode = #tpu.pipeline_mode<synchronous>, transform_indices = @transform_5, window_bounds = array<i64: 1, 128>}, {pipeline_mode = #tpu.pipeline_mode<synchronous>, transform_indices = @transform_6, window_bounds = array<i64: 16, 128, 128>}, {pipeline_mode = #tpu.pipeline_mode<synchronous>, transform_indices = @transform_7, window_bounds = array<i64: 1, 128>}, {pipeline_mode = #tpu.pipeline_mode<synchronous>, transform_indices = @transform_8, window_bounds = array<i64: 128, 128>}, {pipeline_mode = #tpu.pipeline_mode<synchronous>, transform_indices = @transform_9, window_bounds = array<i64: 1, 128>}, {transform_indices = @transform_10, window_bounds = array<i64: 1, 1, 128>}]} {
    %c0 = arith.constant 0 : index
    %c0_0 = arith.constant 0 : index
    %c0_1 = arith.constant 0 : index
    %0 = vector.load %arg1[%c0, %c0_0, %c0_1] : memref<1x576x32xbf16, #tpu.memory_space<vmem>>, vector<1x144x32xbf16>
    %1 = vector.shape_cast %0 : vector<1x144x32xbf16> to vector<144x32xbf16>
    %c0_2 = arith.constant 0 : index
    %c0_3 = arith.constant 0 : index
    %2 = vector.load %arg2[%c0_2, %c0_3] : memref<32x128xbf16, #tpu.memory_space<vmem>>, vector<32x128xbf16>
    %cst = arith.constant dense<0.000000e+00> : vector<144x128xf32>
    %3 = tpu.matmul %1, %2, %cst {dimension_numbers = #tpu.dot_dimension_numbers<[1], [0], [0], [1], [0, 0, 1, 1], [], []>} : vector<144x32xbf16>, vector<32x128xbf16>, vector<144x128xf32> -> vector<144x128xf32>
    %c0_4 = arith.constant 0 : index
    %c144 = arith.constant 144 : index
    %c0_5 = arith.constant 0 : index
    %4 = vector.load %arg1[%c0_4, %c144, %c0_5] : memref<1x576x32xbf16, #tpu.memory_space<vmem>>, vector<1x144x32xbf16>
    %5 = vector.shape_cast %4 : vector<1x144x32xbf16> to vector<144x32xbf16>
    %c0_6 = arith.constant 0 : index
    %c0_7 = arith.constant 0 : index
    %6 = vector.load %arg2[%c0_6, %c0_7] : memref<32x128xbf16, #tpu.memory_space<vmem>>, vector<32x128xbf16>
    %cst_8 = arith.constant dense<0.000000e+00> : vector<144x128xf32>
    %7 = tpu.matmul %5, %6, %cst_8 {dimension_numbers = #tpu.dot_dimension_numbers<[1], [0], [0], [1], [0, 0, 1, 1], [], []>} : vector<144x32xbf16>, vector<32x128xbf16>, vector<144x128xf32> -> vector<144x128xf32>
    %8 = arith.maximumf %3, %7 : vector<144x128xf32>
    %c0_9 = arith.constant 0 : index
    %c288 = arith.constant 288 : index
    %c0_10 = arith.constant 0 : index
    %9 = vector.load %arg1[%c0_9, %c288, %c0_10] : memref<1x576x32xbf16, #tpu.memory_space<vmem>>, vector<1x144x32xbf16>
    %10 = vector.shape_cast %9 : vector<1x144x32xbf16> to vector<144x32xbf16>
    %c0_11 = arith.constant 0 : index
    %c0_12 = arith.constant 0 : index
    %11 = vector.load %arg2[%c0_11, %c0_12] : memref<32x128xbf16, #tpu.memory_space<vmem>>, vector<32x128xbf16>
    %cst_13 = arith.constant dense<0.000000e+00> : vector<144x128xf32>
    %12 = tpu.matmul %10, %11, %cst_13 {dimension_numbers = #tpu.dot_dimension_numbers<[1], [0], [0], [1], [0, 0, 1, 1], [], []>} : vector<144x32xbf16>, vector<32x128xbf16>, vector<144x128xf32> -> vector<144x128xf32>
    %13 = arith.maximumf %8, %12 : vector<144x128xf32>
    %c0_14 = arith.constant 0 : index
    %c432 = arith.constant 432 : index
    %c0_15 = arith.constant 0 : index
    %14 = vector.load %arg1[%c0_14, %c432, %c0_15] : memref<1x576x32xbf16, #tpu.memory_space<vmem>>, vector<1x144x32xbf16>
    %15 = vector.shape_cast %14 : vector<1x144x32xbf16> to vector<144x32xbf16>
    %c0_16 = arith.constant 0 : index
    %c0_17 = arith.constant 0 : index
    %16 = vector.load %arg2[%c0_16, %c0_17] : memref<32x128xbf16, #tpu.memory_space<vmem>>, vector<32x128xbf16>
    %cst_18 = arith.constant dense<0.000000e+00> : vector<144x128xf32>
    %17 = tpu.matmul %15, %16, %cst_18 {dimension_numbers = #tpu.dot_dimension_numbers<[1], [0], [0], [1], [0, 0, 1, 1], [], []>} : vector<144x32xbf16>, vector<32x128xbf16>, vector<144x128xf32> -> vector<144x128xf32>
    %18 = arith.maximumf %13, %17 : vector<144x128xf32>
    %c0_19 = arith.constant 0 : index
    %c0_20 = arith.constant 0 : index
    %19 = vector.load %arg3[%c0_19, %c0_20] : memref<1x128xf32, #tpu.memory_space<vmem>>, vector<1x128xf32>
    %20 = vector.broadcast %19 : vector<1x128xf32> to vector<144x128xf32>
    %21 = arith.addf %18, %20 : vector<144x128xf32>
    %cst_21 = arith.constant 0.000000e+00 : f32
    %22 = vector.broadcast %cst_21 : f32 to vector<144x128xf32>
    %23 = arith.maximumf %21, %22 : vector<144x128xf32>
    %24 = arith.truncf %23 : vector<144x128xf32> to vector<144x128xbf16>
    %cst_22 = arith.constant 0.000000e+00 : f32
    %25 = vector.broadcast %cst_22 : f32 to vector<64x128xf32>
    %c0_23 = arith.constant 0 : index
    %c0_24 = arith.constant 0 : index
    %c0_25 = arith.constant 0 : index
    %26 = vector.load %arg4[%c0_23, %c0_24, %c0_25] : memref<25x64x144xbf16, #tpu.memory_space<vmem>>, vector<1x64x144xbf16>
    %27 = vector.shape_cast %26 : vector<1x64x144xbf16> to vector<64x144xbf16>
    %cst_26 = arith.constant dense<0.000000e+00> : vector<64x128xf32>
    %28 = tpu.matmul %27, %24, %cst_26 {dimension_numbers = #tpu.dot_dimension_numbers<[1], [0], [0], [1], [0, 0, 1, 1], [], []>} : vector<64x144xbf16>, vector<144x128xbf16>, vector<64x128xf32> -> vector<64x128xf32>
    %29 = arith.truncf %28 : vector<64x128xf32> to vector<64x128xbf16>
    %c0_27 = arith.constant 0 : index
    %c0_28 = arith.constant 0 : index
    %c0_29 = arith.constant 0 : index
    %30 = vector.load %arg5[%c0_27, %c0_28, %c0_29] : memref<25x128x128xbf16, #tpu.memory_space<vmem>>, vector<1x128x128xbf16>
    %31 = vector.shape_cast %30 : vector<1x128x128xbf16> to vector<128x128xbf16>
    %cst_30 = arith.constant dense<0.000000e+00> : vector<64x128xf32>
    %32 = tpu.matmul %29, %31, %cst_30 {dimension_numbers = #tpu.dot_dimension_numbers<[1], [0], [0], [1], [0, 0, 1, 1], [], []>} : vector<64x128xbf16>, vector<128x128xbf16>, vector<64x128xf32> -> vector<64x128xf32>
    %33 = arith.addf %25, %32 : vector<64x128xf32>
    %c1 = arith.constant 1 : index
    %c0_31 = arith.constant 0 : index
    %c0_32 = arith.constant 0 : index
    %34 = vector.load %arg4[%c1, %c0_31, %c0_32] : memref<25x64x144xbf16, #tpu.memory_space<vmem>>, vector<1x64x144xbf16>
    %35 = vector.shape_cast %34 : vector<1x64x144xbf16> to vector<64x144xbf16>
    %cst_33 = arith.constant dense<0.000000e+00> : vector<64x128xf32>
    %36 = tpu.matmul %35, %24, %cst_33 {dimension_numbers = #tpu.dot_dimension_numbers<[1], [0], [0], [1], [0, 0, 1, 1], [], []>} : vector<64x144xbf16>, vector<144x128xbf16>, vector<64x128xf32> -> vector<64x128xf32>
    %37 = arith.truncf %36 : vector<64x128xf32> to vector<64x128xbf16>
    %c1_34 = arith.constant 1 : index
    %c0_35 = arith.constant 0 : index
    %c0_36 = arith.constant 0 : index
    %38 = vector.load %arg5[%c1_34, %c0_35, %c0_36] : memref<25x128x128xbf16, #tpu.memory_space<vmem>>, vector<1x128x128xbf16>
    %39 = vector.shape_cast %38 : vector<1x128x128xbf16> to vector<128x128xbf16>
    %cst_37 = arith.constant dense<0.000000e+00> : vector<64x128xf32>
    %40 = tpu.matmul %37, %39, %cst_37 {dimension_numbers = #tpu.dot_dimension_numbers<[1], [0], [0], [1], [0, 0, 1, 1], [], []>} : vector<64x128xbf16>, vector<128x128xbf16>, vector<64x128xf32> -> vector<64x128xf32>
    %41 = arith.addf %33, %40 : vector<64x128xf32>
    %c2 = arith.constant 2 : index
    %c0_38 = arith.constant 0 : index
    %c0_39 = arith.constant 0 : index
    %42 = vector.load %arg4[%c2, %c0_38, %c0_39] : memref<25x64x144xbf16, #tpu.memory_space<vmem>>, vector<1x64x144xbf16>
    %43 = vector.shape_cast %42 : vector<1x64x144xbf16> to vector<64x144xbf16>
    %cst_40 = arith.constant dense<0.000000e+00> : vector<64x128xf32>
    %44 = tpu.matmul %43, %24, %cst_40 {dimension_numbers = #tpu.dot_dimension_numbers<[1], [0], [0], [1], [0, 0, 1, 1], [], []>} : vector<64x144xbf16>, vector<144x128xbf16>, vector<64x128xf32> -> vector<64x128xf32>
    %45 = arith.truncf %44 : vector<64x128xf32> to vector<64x128xbf16>
    %c2_41 = arith.constant 2 : index
    %c0_42 = arith.constant 0 : index
    %c0_43 = arith.constant 0 : index
    %46 = vector.load %arg5[%c2_41, %c0_42, %c0_43] : memref<25x128x128xbf16, #tpu.memory_space<vmem>>, vector<1x128x128xbf16>
    %47 = vector.shape_cast %46 : vector<1x128x128xbf16> to vector<128x128xbf16>
    %cst_44 = arith.constant dense<0.000000e+00> : vector<64x128xf32>
    %48 = tpu.matmul %45, %47, %cst_44 {dimension_numbers = #tpu.dot_dimension_numbers<[1], [0], [0], [1], [0, 0, 1, 1], [], []>} : vector<64x128xbf16>, vector<128x128xbf16>, vector<64x128xf32> -> vector<64x128xf32>
    %49 = arith.addf %41, %48 : vector<64x128xf32>
    %c3 = arith.constant 3 : index
    %c0_45 = arith.constant 0 : index
    %c0_46 = arith.constant 0 : index
    %50 = vector.load %arg4[%c3, %c0_45, %c0_46] : memref<25x64x144xbf16, #tpu.memory_space<vmem>>, vector<1x64x144xbf16>
    %51 = vector.shape_cast %50 : vector<1x64x144xbf16> to vector<64x144xbf16>
    %cst_47 = arith.constant dense<0.000000e+00> : vector<64x128xf32>
    %52 = tpu.matmul %51, %24, %cst_47 {dimension_numbers = #tpu.dot_dimension_numbers<[1], [0], [0], [1], [0, 0, 1, 1], [], []>} : vector<64x144xbf16>, vector<144x128xbf16>, vector<64x128xf32> -> vector<64x128xf32>
    %53 = arith.truncf %52 : vector<64x128xf32> to vector<64x128xbf16>
    %c3_48 = arith.constant 3 : index
    %c0_49 = arith.constant 0 : index
    %c0_50 = arith.constant 0 : index
    %54 = vector.load %arg5[%c3_48, %c0_49, %c0_50] : memref<25x128x128xbf16, #tpu.memory_space<vmem>>, vector<1x128x128xbf16>
    %55 = vector.shape_cast %54 : vector<1x128x128xbf16> to vector<128x128xbf16>
    %cst_51 = arith.constant dense<0.000000e+00> : vector<64x128xf32>
    %56 = tpu.matmul %53, %55, %cst_51 {dimension_numbers = #tpu.dot_dimension_numbers<[1], [0], [0], [1], [0, 0, 1, 1], [], []>} : vector<64x128xbf16>, vector<128x128xbf16>, vector<64x128xf32> -> vector<64x128xf32>
    %57 = arith.addf %49, %56 : vector<64x128xf32>
    %c4 = arith.constant 4 : index
    %c0_52 = arith.constant 0 : index
    %c0_53 = arith.constant 0 : index
    %58 = vector.load %arg4[%c4, %c0_52, %c0_53] : memref<25x64x144xbf16, #tpu.memory_space<vmem>>, vector<1x64x144xbf16>
    %59 = vector.shape_cast %58 : vector<1x64x144xbf16> to vector<64x144xbf16>
    %cst_54 = arith.constant dense<0.000000e+00> : vector<64x128xf32>
    %60 = tpu.matmul %59, %24, %cst_54 {dimension_numbers = #tpu.dot_dimension_numbers<[1], [0], [0], [1], [0, 0, 1, 1], [], []>} : vector<64x144xbf16>, vector<144x128xbf16>, vector<64x128xf32> -> vector<64x128xf32>
    %61 = arith.truncf %60 : vector<64x128xf32> to vector<64x128xbf16>
    %c4_55 = arith.constant 4 : index
    %c0_56 = arith.constant 0 : index
    %c0_57 = arith.constant 0 : index
    %62 = vector.load %arg5[%c4_55, %c0_56, %c0_57] : memref<25x128x128xbf16, #tpu.memory_space<vmem>>, vector<1x128x128xbf16>
    %63 = vector.shape_cast %62 : vector<1x128x128xbf16> to vector<128x128xbf16>
    %cst_58 = arith.constant dense<0.000000e+00> : vector<64x128xf32>
    %64 = tpu.matmul %61, %63, %cst_58 {dimension_numbers = #tpu.dot_dimension_numbers<[1], [0], [0], [1], [0, 0, 1, 1], [], []>} : vector<64x128xbf16>, vector<128x128xbf16>, vector<64x128xf32> -> vector<64x128xf32>
    %65 = arith.addf %57, %64 : vector<64x128xf32>
    %c5 = arith.constant 5 : index
    %c0_59 = arith.constant 0 : index
    %c0_60 = arith.constant 0 : index
    %66 = vector.load %arg4[%c5, %c0_59, %c0_60] : memref<25x64x144xbf16, #tpu.memory_space<vmem>>, vector<1x64x144xbf16>
    %67 = vector.shape_cast %66 : vector<1x64x144xbf16> to vector<64x144xbf16>
    %cst_61 = arith.constant dense<0.000000e+00> : vector<64x128xf32>
    %68 = tpu.matmul %67, %24, %cst_61 {dimension_numbers = #tpu.dot_dimension_numbers<[1], [0], [0], [1], [0, 0, 1, 1], [], []>} : vector<64x144xbf16>, vector<144x128xbf16>, vector<64x128xf32> -> vector<64x128xf32>
    %69 = arith.truncf %68 : vector<64x128xf32> to vector<64x128xbf16>
    %c5_62 = arith.constant 5 : index
    %c0_63 = arith.constant 0 : index
    %c0_64 = arith.constant 0 : index
    %70 = vector.load %arg5[%c5_62, %c0_63, %c0_64] : memref<25x128x128xbf16, #tpu.memory_space<vmem>>, vector<1x128x128xbf16>
    %71 = vector.shape_cast %70 : vector<1x128x128xbf16> to vector<128x128xbf16>
    %cst_65 = arith.constant dense<0.000000e+00> : vector<64x128xf32>
    %72 = tpu.matmul %69, %71, %cst_65 {dimension_numbers = #tpu.dot_dimension_numbers<[1], [0], [0], [1], [0, 0, 1, 1], [], []>} : vector<64x128xbf16>, vector<128x128xbf16>, vector<64x128xf32> -> vector<64x128xf32>
    %73 = arith.addf %65, %72 : vector<64x128xf32>
    %c6 = arith.constant 6 : index
    %c0_66 = arith.constant 0 : index
    %c0_67 = arith.constant 0 : index
    %74 = vector.load %arg4[%c6, %c0_66, %c0_67] : memref<25x64x144xbf16, #tpu.memory_space<vmem>>, vector<1x64x144xbf16>
    %75 = vector.shape_cast %74 : vector<1x64x144xbf16> to vector<64x144xbf16>
    %cst_68 = arith.constant dense<0.000000e+00> : vector<64x128xf32>
    %76 = tpu.matmul %75, %24, %cst_68 {dimension_numbers = #tpu.dot_dimension_numbers<[1], [0], [0], [1], [0, 0, 1, 1], [], []>} : vector<64x144xbf16>, vector<144x128xbf16>, vector<64x128xf32> -> vector<64x128xf32>
    %77 = arith.truncf %76 : vector<64x128xf32> to vector<64x128xbf16>
    %c6_69 = arith.constant 6 : index
    %c0_70 = arith.constant 0 : index
    %c0_71 = arith.constant 0 : index
    %78 = vector.load %arg5[%c6_69, %c0_70, %c0_71] : memref<25x128x128xbf16, #tpu.memory_space<vmem>>, vector<1x128x128xbf16>
    %79 = vector.shape_cast %78 : vector<1x128x128xbf16> to vector<128x128xbf16>
    %cst_72 = arith.constant dense<0.000000e+00> : vector<64x128xf32>
    %80 = tpu.matmul %77, %79, %cst_72 {dimension_numbers = #tpu.dot_dimension_numbers<[1], [0], [0], [1], [0, 0, 1, 1], [], []>} : vector<64x128xbf16>, vector<128x128xbf16>, vector<64x128xf32> -> vector<64x128xf32>
    %81 = arith.addf %73, %80 : vector<64x128xf32>
    %c7 = arith.constant 7 : index
    %c0_73 = arith.constant 0 : index
    %c0_74 = arith.constant 0 : index
    %82 = vector.load %arg4[%c7, %c0_73, %c0_74] : memref<25x64x144xbf16, #tpu.memory_space<vmem>>, vector<1x64x144xbf16>
    %83 = vector.shape_cast %82 : vector<1x64x144xbf16> to vector<64x144xbf16>
    %cst_75 = arith.constant dense<0.000000e+00> : vector<64x128xf32>
    %84 = tpu.matmul %83, %24, %cst_75 {dimension_numbers = #tpu.dot_dimension_numbers<[1], [0], [0], [1], [0, 0, 1, 1], [], []>} : vector<64x144xbf16>, vector<144x128xbf16>, vector<64x128xf32> -> vector<64x128xf32>
    %85 = arith.truncf %84 : vector<64x128xf32> to vector<64x128xbf16>
    %c7_76 = arith.constant 7 : index
    %c0_77 = arith.constant 0 : index
    %c0_78 = arith.constant 0 : index
    %86 = vector.load %arg5[%c7_76, %c0_77, %c0_78] : memref<25x128x128xbf16, #tpu.memory_space<vmem>>, vector<1x128x128xbf16>
    %87 = vector.shape_cast %86 : vector<1x128x128xbf16> to vector<128x128xbf16>
    %cst_79 = arith.constant dense<0.000000e+00> : vector<64x128xf32>
    %88 = tpu.matmul %85, %87, %cst_79 {dimension_numbers = #tpu.dot_dimension_numbers<[1], [0], [0], [1], [0, 0, 1, 1], [], []>} : vector<64x128xbf16>, vector<128x128xbf16>, vector<64x128xf32> -> vector<64x128xf32>
    %89 = arith.addf %81, %88 : vector<64x128xf32>
    %c8 = arith.constant 8 : index
    %c0_80 = arith.constant 0 : index
    %c0_81 = arith.constant 0 : index
    %90 = vector.load %arg4[%c8, %c0_80, %c0_81] : memref<25x64x144xbf16, #tpu.memory_space<vmem>>, vector<1x64x144xbf16>
    %91 = vector.shape_cast %90 : vector<1x64x144xbf16> to vector<64x144xbf16>
    %cst_82 = arith.constant dense<0.000000e+00> : vector<64x128xf32>
    %92 = tpu.matmul %91, %24, %cst_82 {dimension_numbers = #tpu.dot_dimension_numbers<[1], [0], [0], [1], [0, 0, 1, 1], [], []>} : vector<64x144xbf16>, vector<144x128xbf16>, vector<64x128xf32> -> vector<64x128xf32>
    %93 = arith.truncf %92 : vector<64x128xf32> to vector<64x128xbf16>
    %c8_83 = arith.constant 8 : index
    %c0_84 = arith.constant 0 : index
    %c0_85 = arith.constant 0 : index
    %94 = vector.load %arg5[%c8_83, %c0_84, %c0_85] : memref<25x128x128xbf16, #tpu.memory_space<vmem>>, vector<1x128x128xbf16>
    %95 = vector.shape_cast %94 : vector<1x128x128xbf16> to vector<128x128xbf16>
    %cst_86 = arith.constant dense<0.000000e+00> : vector<64x128xf32>
    %96 = tpu.matmul %93, %95, %cst_86 {dimension_numbers = #tpu.dot_dimension_numbers<[1], [0], [0], [1], [0, 0, 1, 1], [], []>} : vector<64x128xbf16>, vector<128x128xbf16>, vector<64x128xf32> -> vector<64x128xf32>
    %97 = arith.addf %89, %96 : vector<64x128xf32>
    %c9 = arith.constant 9 : index
    %c0_87 = arith.constant 0 : index
    %c0_88 = arith.constant 0 : index
    %98 = vector.load %arg4[%c9, %c0_87, %c0_88] : memref<25x64x144xbf16, #tpu.memory_space<vmem>>, vector<1x64x144xbf16>
    %99 = vector.shape_cast %98 : vector<1x64x144xbf16> to vector<64x144xbf16>
    %cst_89 = arith.constant dense<0.000000e+00> : vector<64x128xf32>
    %100 = tpu.matmul %99, %24, %cst_89 {dimension_numbers = #tpu.dot_dimension_numbers<[1], [0], [0], [1], [0, 0, 1, 1], [], []>} : vector<64x144xbf16>, vector<144x128xbf16>, vector<64x128xf32> -> vector<64x128xf32>
    %101 = arith.truncf %100 : vector<64x128xf32> to vector<64x128xbf16>
    %c9_90 = arith.constant 9 : index
    %c0_91 = arith.constant 0 : index
    %c0_92 = arith.constant 0 : index
    %102 = vector.load %arg5[%c9_90, %c0_91, %c0_92] : memref<25x128x128xbf16, #tpu.memory_space<vmem>>, vector<1x128x128xbf16>
    %103 = vector.shape_cast %102 : vector<1x128x128xbf16> to vector<128x128xbf16>
    %cst_93 = arith.constant dense<0.000000e+00> : vector<64x128xf32>
    %104 = tpu.matmul %101, %103, %cst_93 {dimension_numbers = #tpu.dot_dimension_numbers<[1], [0], [0], [1], [0, 0, 1, 1], [], []>} : vector<64x128xbf16>, vector<128x128xbf16>, vector<64x128xf32> -> vector<64x128xf32>
    %105 = arith.addf %97, %104 : vector<64x128xf32>
    %c10 = arith.constant 10 : index
    %c0_94 = arith.constant 0 : index
    %c0_95 = arith.constant 0 : index
    %106 = vector.load %arg4[%c10, %c0_94, %c0_95] : memref<25x64x144xbf16, #tpu.memory_space<vmem>>, vector<1x64x144xbf16>
    %107 = vector.shape_cast %106 : vector<1x64x144xbf16> to vector<64x144xbf16>
    %cst_96 = arith.constant dense<0.000000e+00> : vector<64x128xf32>
    %108 = tpu.matmul %107, %24, %cst_96 {dimension_numbers = #tpu.dot_dimension_numbers<[1], [0], [0], [1], [0, 0, 1, 1], [], []>} : vector<64x144xbf16>, vector<144x128xbf16>, vector<64x128xf32> -> vector<64x128xf32>
    %109 = arith.truncf %108 : vector<64x128xf32> to vector<64x128xbf16>
    %c10_97 = arith.constant 10 : index
    %c0_98 = arith.constant 0 : index
    %c0_99 = arith.constant 0 : index
    %110 = vector.load %arg5[%c10_97, %c0_98, %c0_99] : memref<25x128x128xbf16, #tpu.memory_space<vmem>>, vector<1x128x128xbf16>
    %111 = vector.shape_cast %110 : vector<1x128x128xbf16> to vector<128x128xbf16>
    %cst_100 = arith.constant dense<0.000000e+00> : vector<64x128xf32>
    %112 = tpu.matmul %109, %111, %cst_100 {dimension_numbers = #tpu.dot_dimension_numbers<[1], [0], [0], [1], [0, 0, 1, 1], [], []>} : vector<64x128xbf16>, vector<128x128xbf16>, vector<64x128xf32> -> vector<64x128xf32>
    %113 = arith.addf %105, %112 : vector<64x128xf32>
    %c11 = arith.constant 11 : index
    %c0_101 = arith.constant 0 : index
    %c0_102 = arith.constant 0 : index
    %114 = vector.load %arg4[%c11, %c0_101, %c0_102] : memref<25x64x144xbf16, #tpu.memory_space<vmem>>, vector<1x64x144xbf16>
    %115 = vector.shape_cast %114 : vector<1x64x144xbf16> to vector<64x144xbf16>
    %cst_103 = arith.constant dense<0.000000e+00> : vector<64x128xf32>
    %116 = tpu.matmul %115, %24, %cst_103 {dimension_numbers = #tpu.dot_dimension_numbers<[1], [0], [0], [1], [0, 0, 1, 1], [], []>} : vector<64x144xbf16>, vector<144x128xbf16>, vector<64x128xf32> -> vector<64x128xf32>
    %117 = arith.truncf %116 : vector<64x128xf32> to vector<64x128xbf16>
    %c11_104 = arith.constant 11 : index
    %c0_105 = arith.constant 0 : index
    %c0_106 = arith.constant 0 : index
    %118 = vector.load %arg5[%c11_104, %c0_105, %c0_106] : memref<25x128x128xbf16, #tpu.memory_space<vmem>>, vector<1x128x128xbf16>
    %119 = vector.shape_cast %118 : vector<1x128x128xbf16> to vector<128x128xbf16>
    %cst_107 = arith.constant dense<0.000000e+00> : vector<64x128xf32>
    %120 = tpu.matmul %117, %119, %cst_107 {dimension_numbers = #tpu.dot_dimension_numbers<[1], [0], [0], [1], [0, 0, 1, 1], [], []>} : vector<64x128xbf16>, vector<128x128xbf16>, vector<64x128xf32> -> vector<64x128xf32>
    %121 = arith.addf %113, %120 : vector<64x128xf32>
    %c12 = arith.constant 12 : index
    %c0_108 = arith.constant 0 : index
    %c0_109 = arith.constant 0 : index
    %122 = vector.load %arg4[%c12, %c0_108, %c0_109] : memref<25x64x144xbf16, #tpu.memory_space<vmem>>, vector<1x64x144xbf16>
    %123 = vector.shape_cast %122 : vector<1x64x144xbf16> to vector<64x144xbf16>
    %cst_110 = arith.constant dense<0.000000e+00> : vector<64x128xf32>
    %124 = tpu.matmul %123, %24, %cst_110 {dimension_numbers = #tpu.dot_dimension_numbers<[1], [0], [0], [1], [0, 0, 1, 1], [], []>} : vector<64x144xbf16>, vector<144x128xbf16>, vector<64x128xf32> -> vector<64x128xf32>
    %125 = arith.truncf %124 : vector<64x128xf32> to vector<64x128xbf16>
    %c12_111 = arith.constant 12 : index
    %c0_112 = arith.constant 0 : index
    %c0_113 = arith.constant 0 : index
    %126 = vector.load %arg5[%c12_111, %c0_112, %c0_113] : memref<25x128x128xbf16, #tpu.memory_space<vmem>>, vector<1x128x128xbf16>
    %127 = vector.shape_cast %126 : vector<1x128x128xbf16> to vector<128x128xbf16>
    %cst_114 = arith.constant dense<0.000000e+00> : vector<64x128xf32>
    %128 = tpu.matmul %125, %127, %cst_114 {dimension_numbers = #tpu.dot_dimension_numbers<[1], [0], [0], [1], [0, 0, 1, 1], [], []>} : vector<64x128xbf16>, vector<128x128xbf16>, vector<64x128xf32> -> vector<64x128xf32>
    %129 = arith.addf %121, %128 : vector<64x128xf32>
    %c13 = arith.constant 13 : index
    %c0_115 = arith.constant 0 : index
    %c0_116 = arith.constant 0 : index
    %130 = vector.load %arg4[%c13, %c0_115, %c0_116] : memref<25x64x144xbf16, #tpu.memory_space<vmem>>, vector<1x64x144xbf16>
    %131 = vector.shape_cast %130 : vector<1x64x144xbf16> to vector<64x144xbf16>
    %cst_117 = arith.constant dense<0.000000e+00> : vector<64x128xf32>
    %132 = tpu.matmul %131, %24, %cst_117 {dimension_numbers = #tpu.dot_dimension_numbers<[1], [0], [0], [1], [0, 0, 1, 1], [], []>} : vector<64x144xbf16>, vector<144x128xbf16>, vector<64x128xf32> -> vector<64x128xf32>
    %133 = arith.truncf %132 : vector<64x128xf32> to vector<64x128xbf16>
    %c13_118 = arith.constant 13 : index
    %c0_119 = arith.constant 0 : index
    %c0_120 = arith.constant 0 : index
    %134 = vector.load %arg5[%c13_118, %c0_119, %c0_120] : memref<25x128x128xbf16, #tpu.memory_space<vmem>>, vector<1x128x128xbf16>
    %135 = vector.shape_cast %134 : vector<1x128x128xbf16> to vector<128x128xbf16>
    %cst_121 = arith.constant dense<0.000000e+00> : vector<64x128xf32>
    %136 = tpu.matmul %133, %135, %cst_121 {dimension_numbers = #tpu.dot_dimension_numbers<[1], [0], [0], [1], [0, 0, 1, 1], [], []>} : vector<64x128xbf16>, vector<128x128xbf16>, vector<64x128xf32> -> vector<64x128xf32>
    %137 = arith.addf %129, %136 : vector<64x128xf32>
    %c14 = arith.constant 14 : index
    %c0_122 = arith.constant 0 : index
    %c0_123 = arith.constant 0 : index
    %138 = vector.load %arg4[%c14, %c0_122, %c0_123] : memref<25x64x144xbf16, #tpu.memory_space<vmem>>, vector<1x64x144xbf16>
    %139 = vector.shape_cast %138 : vector<1x64x144xbf16> to vector<64x144xbf16>
    %cst_124 = arith.constant dense<0.000000e+00> : vector<64x128xf32>
    %140 = tpu.matmul %139, %24, %cst_124 {dimension_numbers = #tpu.dot_dimension_numbers<[1], [0], [0], [1], [0, 0, 1, 1], [], []>} : vector<64x144xbf16>, vector<144x128xbf16>, vector<64x128xf32> -> vector<64x128xf32>
    %141 = arith.truncf %140 : vector<64x128xf32> to vector<64x128xbf16>
    %c14_125 = arith.constant 14 : index
    %c0_126 = arith.constant 0 : index
    %c0_127 = arith.constant 0 : index
    %142 = vector.load %arg5[%c14_125, %c0_126, %c0_127] : memref<25x128x128xbf16, #tpu.memory_space<vmem>>, vector<1x128x128xbf16>
    %143 = vector.shape_cast %142 : vector<1x128x128xbf16> to vector<128x128xbf16>
    %cst_128 = arith.constant dense<0.000000e+00> : vector<64x128xf32>
    %144 = tpu.matmul %141, %143, %cst_128 {dimension_numbers = #tpu.dot_dimension_numbers<[1], [0], [0], [1], [0, 0, 1, 1], [], []>} : vector<64x128xbf16>, vector<128x128xbf16>, vector<64x128xf32> -> vector<64x128xf32>
    %145 = arith.addf %137, %144 : vector<64x128xf32>
    %c15 = arith.constant 15 : index
    %c0_129 = arith.constant 0 : index
    %c0_130 = arith.constant 0 : index
    %146 = vector.load %arg4[%c15, %c0_129, %c0_130] : memref<25x64x144xbf16, #tpu.memory_space<vmem>>, vector<1x64x144xbf16>
    %147 = vector.shape_cast %146 : vector<1x64x144xbf16> to vector<64x144xbf16>
    %cst_131 = arith.constant dense<0.000000e+00> : vector<64x128xf32>
    %148 = tpu.matmul %147, %24, %cst_131 {dimension_numbers = #tpu.dot_dimension_numbers<[1], [0], [0], [1], [0, 0, 1, 1], [], []>} : vector<64x144xbf16>, vector<144x128xbf16>, vector<64x128xf32> -> vector<64x128xf32>
    %149 = arith.truncf %148 : vector<64x128xf32> to vector<64x128xbf16>
    %c15_132 = arith.constant 15 : index
    %c0_133 = arith.constant 0 : index
    %c0_134 = arith.constant 0 : index
    %150 = vector.load %arg5[%c15_132, %c0_133, %c0_134] : memref<25x128x128xbf16, #tpu.memory_space<vmem>>, vector<1x128x128xbf16>
    %151 = vector.shape_cast %150 : vector<1x128x128xbf16> to vector<128x128xbf16>
    %cst_135 = arith.constant dense<0.000000e+00> : vector<64x128xf32>
    %152 = tpu.matmul %149, %151, %cst_135 {dimension_numbers = #tpu.dot_dimension_numbers<[1], [0], [0], [1], [0, 0, 1, 1], [], []>} : vector<64x128xbf16>, vector<128x128xbf16>, vector<64x128xf32> -> vector<64x128xf32>
    %153 = arith.addf %145, %152 : vector<64x128xf32>
    %c16 = arith.constant 16 : index
    %c0_136 = arith.constant 0 : index
    %c0_137 = arith.constant 0 : index
    %154 = vector.load %arg4[%c16, %c0_136, %c0_137] : memref<25x64x144xbf16, #tpu.memory_space<vmem>>, vector<1x64x144xbf16>
    %155 = vector.shape_cast %154 : vector<1x64x144xbf16> to vector<64x144xbf16>
    %cst_138 = arith.constant dense<0.000000e+00> : vector<64x128xf32>
    %156 = tpu.matmul %155, %24, %cst_138 {dimension_numbers = #tpu.dot_dimension_numbers<[1], [0], [0], [1], [0, 0, 1, 1], [], []>} : vector<64x144xbf16>, vector<144x128xbf16>, vector<64x128xf32> -> vector<64x128xf32>
    %157 = arith.truncf %156 : vector<64x128xf32> to vector<64x128xbf16>
    %c16_139 = arith.constant 16 : index
    %c0_140 = arith.constant 0 : index
    %c0_141 = arith.constant 0 : index
    %158 = vector.load %arg5[%c16_139, %c0_140, %c0_141] : memref<25x128x128xbf16, #tpu.memory_space<vmem>>, vector<1x128x128xbf16>
    %159 = vector.shape_cast %158 : vector<1x128x128xbf16> to vector<128x128xbf16>
    %cst_142 = arith.constant dense<0.000000e+00> : vector<64x128xf32>
    %160 = tpu.matmul %157, %159, %cst_142 {dimension_numbers = #tpu.dot_dimension_numbers<[1], [0], [0], [1], [0, 0, 1, 1], [], []>} : vector<64x128xbf16>, vector<128x128xbf16>, vector<64x128xf32> -> vector<64x128xf32>
    %161 = arith.addf %153, %160 : vector<64x128xf32>
    %c17 = arith.constant 17 : index
    %c0_143 = arith.constant 0 : index
    %c0_144 = arith.constant 0 : index
    %162 = vector.load %arg4[%c17, %c0_143, %c0_144] : memref<25x64x144xbf16, #tpu.memory_space<vmem>>, vector<1x64x144xbf16>
    %163 = vector.shape_cast %162 : vector<1x64x144xbf16> to vector<64x144xbf16>
    %cst_145 = arith.constant dense<0.000000e+00> : vector<64x128xf32>
    %164 = tpu.matmul %163, %24, %cst_145 {dimension_numbers = #tpu.dot_dimension_numbers<[1], [0], [0], [1], [0, 0, 1, 1], [], []>} : vector<64x144xbf16>, vector<144x128xbf16>, vector<64x128xf32> -> vector<64x128xf32>
    %165 = arith.truncf %164 : vector<64x128xf32> to vector<64x128xbf16>
    %c17_146 = arith.constant 17 : index
    %c0_147 = arith.constant 0 : index
    %c0_148 = arith.constant 0 : index
    %166 = vector.load %arg5[%c17_146, %c0_147, %c0_148] : memref<25x128x128xbf16, #tpu.memory_space<vmem>>, vector<1x128x128xbf16>
    %167 = vector.shape_cast %166 : vector<1x128x128xbf16> to vector<128x128xbf16>
    %cst_149 = arith.constant dense<0.000000e+00> : vector<64x128xf32>
    %168 = tpu.matmul %165, %167, %cst_149 {dimension_numbers = #tpu.dot_dimension_numbers<[1], [0], [0], [1], [0, 0, 1, 1], [], []>} : vector<64x128xbf16>, vector<128x128xbf16>, vector<64x128xf32> -> vector<64x128xf32>
    %169 = arith.addf %161, %168 : vector<64x128xf32>
    %c18 = arith.constant 18 : index
    %c0_150 = arith.constant 0 : index
    %c0_151 = arith.constant 0 : index
    %170 = vector.load %arg4[%c18, %c0_150, %c0_151] : memref<25x64x144xbf16, #tpu.memory_space<vmem>>, vector<1x64x144xbf16>
    %171 = vector.shape_cast %170 : vector<1x64x144xbf16> to vector<64x144xbf16>
    %cst_152 = arith.constant dense<0.000000e+00> : vector<64x128xf32>
    %172 = tpu.matmul %171, %24, %cst_152 {dimension_numbers = #tpu.dot_dimension_numbers<[1], [0], [0], [1], [0, 0, 1, 1], [], []>} : vector<64x144xbf16>, vector<144x128xbf16>, vector<64x128xf32> -> vector<64x128xf32>
    %173 = arith.truncf %172 : vector<64x128xf32> to vector<64x128xbf16>
    %c18_153 = arith.constant 18 : index
    %c0_154 = arith.constant 0 : index
    %c0_155 = arith.constant 0 : index
    %174 = vector.load %arg5[%c18_153, %c0_154, %c0_155] : memref<25x128x128xbf16, #tpu.memory_space<vmem>>, vector<1x128x128xbf16>
    %175 = vector.shape_cast %174 : vector<1x128x128xbf16> to vector<128x128xbf16>
    %cst_156 = arith.constant dense<0.000000e+00> : vector<64x128xf32>
    %176 = tpu.matmul %173, %175, %cst_156 {dimension_numbers = #tpu.dot_dimension_numbers<[1], [0], [0], [1], [0, 0, 1, 1], [], []>} : vector<64x128xbf16>, vector<128x128xbf16>, vector<64x128xf32> -> vector<64x128xf32>
    %177 = arith.addf %169, %176 : vector<64x128xf32>
    %c19 = arith.constant 19 : index
    %c0_157 = arith.constant 0 : index
    %c0_158 = arith.constant 0 : index
    %178 = vector.load %arg4[%c19, %c0_157, %c0_158] : memref<25x64x144xbf16, #tpu.memory_space<vmem>>, vector<1x64x144xbf16>
    %179 = vector.shape_cast %178 : vector<1x64x144xbf16> to vector<64x144xbf16>
    %cst_159 = arith.constant dense<0.000000e+00> : vector<64x128xf32>
    %180 = tpu.matmul %179, %24, %cst_159 {dimension_numbers = #tpu.dot_dimension_numbers<[1], [0], [0], [1], [0, 0, 1, 1], [], []>} : vector<64x144xbf16>, vector<144x128xbf16>, vector<64x128xf32> -> vector<64x128xf32>
    %181 = arith.truncf %180 : vector<64x128xf32> to vector<64x128xbf16>
    %c19_160 = arith.constant 19 : index
    %c0_161 = arith.constant 0 : index
    %c0_162 = arith.constant 0 : index
    %182 = vector.load %arg5[%c19_160, %c0_161, %c0_162] : memref<25x128x128xbf16, #tpu.memory_space<vmem>>, vector<1x128x128xbf16>
    %183 = vector.shape_cast %182 : vector<1x128x128xbf16> to vector<128x128xbf16>
    %cst_163 = arith.constant dense<0.000000e+00> : vector<64x128xf32>
    %184 = tpu.matmul %181, %183, %cst_163 {dimension_numbers = #tpu.dot_dimension_numbers<[1], [0], [0], [1], [0, 0, 1, 1], [], []>} : vector<64x128xbf16>, vector<128x128xbf16>, vector<64x128xf32> -> vector<64x128xf32>
    %185 = arith.addf %177, %184 : vector<64x128xf32>
    %c20 = arith.constant 20 : index
    %c0_164 = arith.constant 0 : index
    %c0_165 = arith.constant 0 : index
    %186 = vector.load %arg4[%c20, %c0_164, %c0_165] : memref<25x64x144xbf16, #tpu.memory_space<vmem>>, vector<1x64x144xbf16>
    %187 = vector.shape_cast %186 : vector<1x64x144xbf16> to vector<64x144xbf16>
    %cst_166 = arith.constant dense<0.000000e+00> : vector<64x128xf32>
    %188 = tpu.matmul %187, %24, %cst_166 {dimension_numbers = #tpu.dot_dimension_numbers<[1], [0], [0], [1], [0, 0, 1, 1], [], []>} : vector<64x144xbf16>, vector<144x128xbf16>, vector<64x128xf32> -> vector<64x128xf32>
    %189 = arith.truncf %188 : vector<64x128xf32> to vector<64x128xbf16>
    %c20_167 = arith.constant 20 : index
    %c0_168 = arith.constant 0 : index
    %c0_169 = arith.constant 0 : index
    %190 = vector.load %arg5[%c20_167, %c0_168, %c0_169] : memref<25x128x128xbf16, #tpu.memory_space<vmem>>, vector<1x128x128xbf16>
    %191 = vector.shape_cast %190 : vector<1x128x128xbf16> to vector<128x128xbf16>
    %cst_170 = arith.constant dense<0.000000e+00> : vector<64x128xf32>
    %192 = tpu.matmul %189, %191, %cst_170 {dimension_numbers = #tpu.dot_dimension_numbers<[1], [0], [0], [1], [0, 0, 1, 1], [], []>} : vector<64x128xbf16>, vector<128x128xbf16>, vector<64x128xf32> -> vector<64x128xf32>
    %193 = arith.addf %185, %192 : vector<64x128xf32>
    %c21 = arith.constant 21 : index
    %c0_171 = arith.constant 0 : index
    %c0_172 = arith.constant 0 : index
    %194 = vector.load %arg4[%c21, %c0_171, %c0_172] : memref<25x64x144xbf16, #tpu.memory_space<vmem>>, vector<1x64x144xbf16>
    %195 = vector.shape_cast %194 : vector<1x64x144xbf16> to vector<64x144xbf16>
    %cst_173 = arith.constant dense<0.000000e+00> : vector<64x128xf32>
    %196 = tpu.matmul %195, %24, %cst_173 {dimension_numbers = #tpu.dot_dimension_numbers<[1], [0], [0], [1], [0, 0, 1, 1], [], []>} : vector<64x144xbf16>, vector<144x128xbf16>, vector<64x128xf32> -> vector<64x128xf32>
    %197 = arith.truncf %196 : vector<64x128xf32> to vector<64x128xbf16>
    %c21_174 = arith.constant 21 : index
    %c0_175 = arith.constant 0 : index
    %c0_176 = arith.constant 0 : index
    %198 = vector.load %arg5[%c21_174, %c0_175, %c0_176] : memref<25x128x128xbf16, #tpu.memory_space<vmem>>, vector<1x128x128xbf16>
    %199 = vector.shape_cast %198 : vector<1x128x128xbf16> to vector<128x128xbf16>
    %cst_177 = arith.constant dense<0.000000e+00> : vector<64x128xf32>
    %200 = tpu.matmul %197, %199, %cst_177 {dimension_numbers = #tpu.dot_dimension_numbers<[1], [0], [0], [1], [0, 0, 1, 1], [], []>} : vector<64x128xbf16>, vector<128x128xbf16>, vector<64x128xf32> -> vector<64x128xf32>
    %201 = arith.addf %193, %200 : vector<64x128xf32>
    %c22 = arith.constant 22 : index
    %c0_178 = arith.constant 0 : index
    %c0_179 = arith.constant 0 : index
    %202 = vector.load %arg4[%c22, %c0_178, %c0_179] : memref<25x64x144xbf16, #tpu.memory_space<vmem>>, vector<1x64x144xbf16>
    %203 = vector.shape_cast %202 : vector<1x64x144xbf16> to vector<64x144xbf16>
    %cst_180 = arith.constant dense<0.000000e+00> : vector<64x128xf32>
    %204 = tpu.matmul %203, %24, %cst_180 {dimension_numbers = #tpu.dot_dimension_numbers<[1], [0], [0], [1], [0, 0, 1, 1], [], []>} : vector<64x144xbf16>, vector<144x128xbf16>, vector<64x128xf32> -> vector<64x128xf32>
    %205 = arith.truncf %204 : vector<64x128xf32> to vector<64x128xbf16>
    %c22_181 = arith.constant 22 : index
    %c0_182 = arith.constant 0 : index
    %c0_183 = arith.constant 0 : index
    %206 = vector.load %arg5[%c22_181, %c0_182, %c0_183] : memref<25x128x128xbf16, #tpu.memory_space<vmem>>, vector<1x128x128xbf16>
    %207 = vector.shape_cast %206 : vector<1x128x128xbf16> to vector<128x128xbf16>
    %cst_184 = arith.constant dense<0.000000e+00> : vector<64x128xf32>
    %208 = tpu.matmul %205, %207, %cst_184 {dimension_numbers = #tpu.dot_dimension_numbers<[1], [0], [0], [1], [0, 0, 1, 1], [], []>} : vector<64x128xbf16>, vector<128x128xbf16>, vector<64x128xf32> -> vector<64x128xf32>
    %209 = arith.addf %201, %208 : vector<64x128xf32>
    %c23 = arith.constant 23 : index
    %c0_185 = arith.constant 0 : index
    %c0_186 = arith.constant 0 : index
    %210 = vector.load %arg4[%c23, %c0_185, %c0_186] : memref<25x64x144xbf16, #tpu.memory_space<vmem>>, vector<1x64x144xbf16>
    %211 = vector.shape_cast %210 : vector<1x64x144xbf16> to vector<64x144xbf16>
    %cst_187 = arith.constant dense<0.000000e+00> : vector<64x128xf32>
    %212 = tpu.matmul %211, %24, %cst_187 {dimension_numbers = #tpu.dot_dimension_numbers<[1], [0], [0], [1], [0, 0, 1, 1], [], []>} : vector<64x144xbf16>, vector<144x128xbf16>, vector<64x128xf32> -> vector<64x128xf32>
    %213 = arith.truncf %212 : vector<64x128xf32> to vector<64x128xbf16>
    %c23_188 = arith.constant 23 : index
    %c0_189 = arith.constant 0 : index
    %c0_190 = arith.constant 0 : index
    %214 = vector.load %arg5[%c23_188, %c0_189, %c0_190] : memref<25x128x128xbf16, #tpu.memory_space<vmem>>, vector<1x128x128xbf16>
    %215 = vector.shape_cast %214 : vector<1x128x128xbf16> to vector<128x128xbf16>
    %cst_191 = arith.constant dense<0.000000e+00> : vector<64x128xf32>
    %216 = tpu.matmul %213, %215, %cst_191 {dimension_numbers = #tpu.dot_dimension_numbers<[1], [0], [0], [1], [0, 0, 1, 1], [], []>} : vector<64x128xbf16>, vector<128x128xbf16>, vector<64x128xf32> -> vector<64x128xf32>
    %217 = arith.addf %209, %216 : vector<64x128xf32>
    %c24 = arith.constant 24 : index
    %c0_192 = arith.constant 0 : index
    %c0_193 = arith.constant 0 : index
    %218 = vector.load %arg4[%c24, %c0_192, %c0_193] : memref<25x64x144xbf16, #tpu.memory_space<vmem>>, vector<1x64x144xbf16>
    %219 = vector.shape_cast %218 : vector<1x64x144xbf16> to vector<64x144xbf16>
    %cst_194 = arith.constant dense<0.000000e+00> : vector<64x128xf32>
    %220 = tpu.matmul %219, %24, %cst_194 {dimension_numbers = #tpu.dot_dimension_numbers<[1], [0], [0], [1], [0, 0, 1, 1], [], []>} : vector<64x144xbf16>, vector<144x128xbf16>, vector<64x128xf32> -> vector<64x128xf32>
    %221 = arith.truncf %220 : vector<64x128xf32> to vector<64x128xbf16>
    %c24_195 = arith.constant 24 : index
    %c0_196 = arith.constant 0 : index
    %c0_197 = arith.constant 0 : index
    %222 = vector.load %arg5[%c24_195, %c0_196, %c0_197] : memref<25x128x128xbf16, #tpu.memory_space<vmem>>, vector<1x128x128xbf16>
    %223 = vector.shape_cast %222 : vector<1x128x128xbf16> to vector<128x128xbf16>
    %cst_198 = arith.constant dense<0.000000e+00> : vector<64x128xf32>
    %224 = tpu.matmul %221, %223, %cst_198 {dimension_numbers = #tpu.dot_dimension_numbers<[1], [0], [0], [1], [0, 0, 1, 1], [], []>} : vector<64x128xbf16>, vector<128x128xbf16>, vector<64x128xf32> -> vector<64x128xf32>
    %225 = arith.addf %217, %224 : vector<64x128xf32>
    %c0_199 = arith.constant 0 : index
    %c0_200 = arith.constant 0 : index
    %226 = vector.load %arg6[%c0_199, %c0_200] : memref<1x128xf32, #tpu.memory_space<vmem>>, vector<1x128xf32>
    %227 = vector.broadcast %226 : vector<1x128xf32> to vector<64x128xf32>
    %228 = arith.addf %225, %227 : vector<64x128xf32>
    %229 = vector.extract_strided_slice %228 {offsets = [0, 0], sizes = [16, 128], strides = [1, 1]} : vector<64x128xf32> to vector<16x128xf32>
    %230 = vector.extract_strided_slice %228 {offsets = [16, 0], sizes = [16, 128], strides = [1, 1]} : vector<64x128xf32> to vector<16x128xf32>
    %231 = arith.maximumf %229, %230 : vector<16x128xf32>
    %232 = vector.extract_strided_slice %228 {offsets = [32, 0], sizes = [16, 128], strides = [1, 1]} : vector<64x128xf32> to vector<16x128xf32>
    %233 = vector.extract_strided_slice %228 {offsets = [48, 0], sizes = [16, 128], strides = [1, 1]} : vector<64x128xf32> to vector<16x128xf32>
    %234 = arith.maximumf %232, %233 : vector<16x128xf32>
    %235 = arith.maximumf %231, %234 : vector<16x128xf32>
    %cst_201 = arith.constant 0.000000e+00 : f32
    %236 = vector.broadcast %cst_201 : f32 to vector<16x128xf32>
    %237 = arith.maximumf %235, %236 : vector<16x128xf32>
    %238 = arith.truncf %237 : vector<16x128xf32> to vector<16x128xbf16>
    %c0_202 = arith.constant 0 : index
    %c0_203 = arith.constant 0 : index
    %239 = vector.load %arg8[%c0_202, %c0_203] : memref<1x128xf32, #tpu.memory_space<vmem>>, vector<1x128xf32>
    %240 = vector.extract_strided_slice %238 {offsets = [0, 0], sizes = [1, 128], strides = [1, 1]} : vector<16x128xbf16> to vector<1x128xbf16>
    %c0_204 = arith.constant 0 : index
    %c0_205 = arith.constant 0 : index
    %c0_206 = arith.constant 0 : index
    %241 = vector.load %arg7[%c0_204, %c0_205, %c0_206] : memref<16x128x128xbf16, #tpu.memory_space<vmem>>, vector<1x128x128xbf16>
    %242 = vector.shape_cast %241 : vector<1x128x128xbf16> to vector<128x128xbf16>
    %cst_207 = arith.constant dense<0.000000e+00> : vector<1x128xf32>
    %243 = tpu.matmul %240, %242, %cst_207 {dimension_numbers = #tpu.dot_dimension_numbers<[1], [0], [0], [1], [0, 0, 1, 1], [], []>} : vector<1x128xbf16>, vector<128x128xbf16>, vector<1x128xf32> -> vector<1x128xf32>
    %244 = arith.addf %239, %243 : vector<1x128xf32>
    %245 = vector.extract_strided_slice %238 {offsets = [1, 0], sizes = [1, 128], strides = [1, 1]} : vector<16x128xbf16> to vector<1x128xbf16>
    %c1_208 = arith.constant 1 : index
    %c0_209 = arith.constant 0 : index
    %c0_210 = arith.constant 0 : index
    %246 = vector.load %arg7[%c1_208, %c0_209, %c0_210] : memref<16x128x128xbf16, #tpu.memory_space<vmem>>, vector<1x128x128xbf16>
    %247 = vector.shape_cast %246 : vector<1x128x128xbf16> to vector<128x128xbf16>
    %cst_211 = arith.constant dense<0.000000e+00> : vector<1x128xf32>
    %248 = tpu.matmul %245, %247, %cst_211 {dimension_numbers = #tpu.dot_dimension_numbers<[1], [0], [0], [1], [0, 0, 1, 1], [], []>} : vector<1x128xbf16>, vector<128x128xbf16>, vector<1x128xf32> -> vector<1x128xf32>
    %249 = arith.addf %244, %248 : vector<1x128xf32>
    %250 = vector.extract_strided_slice %238 {offsets = [2, 0], sizes = [1, 128], strides = [1, 1]} : vector<16x128xbf16> to vector<1x128xbf16>
    %c2_212 = arith.constant 2 : index
    %c0_213 = arith.constant 0 : index
    %c0_214 = arith.constant 0 : index
    %251 = vector.load %arg7[%c2_212, %c0_213, %c0_214] : memref<16x128x128xbf16, #tpu.memory_space<vmem>>, vector<1x128x128xbf16>
    %252 = vector.shape_cast %251 : vector<1x128x128xbf16> to vector<128x128xbf16>
    %cst_215 = arith.constant dense<0.000000e+00> : vector<1x128xf32>
    %253 = tpu.matmul %250, %252, %cst_215 {dimension_numbers = #tpu.dot_dimension_numbers<[1], [0], [0], [1], [0, 0, 1, 1], [], []>} : vector<1x128xbf16>, vector<128x128xbf16>, vector<1x128xf32> -> vector<1x128xf32>
    %254 = arith.addf %249, %253 : vector<1x128xf32>
    %255 = vector.extract_strided_slice %238 {offsets = [3, 0], sizes = [1, 128], strides = [1, 1]} : vector<16x128xbf16> to vector<1x128xbf16>
    %c3_216 = arith.constant 3 : index
    %c0_217 = arith.constant 0 : index
    %c0_218 = arith.constant 0 : index
    %256 = vector.load %arg7[%c3_216, %c0_217, %c0_218] : memref<16x128x128xbf16, #tpu.memory_space<vmem>>, vector<1x128x128xbf16>
    %257 = vector.shape_cast %256 : vector<1x128x128xbf16> to vector<128x128xbf16>
    %cst_219 = arith.constant dense<0.000000e+00> : vector<1x128xf32>
    %258 = tpu.matmul %255, %257, %cst_219 {dimension_numbers = #tpu.dot_dimension_numbers<[1], [0], [0], [1], [0, 0, 1, 1], [], []>} : vector<1x128xbf16>, vector<128x128xbf16>, vector<1x128xf32> -> vector<1x128xf32>
    %259 = arith.addf %254, %258 : vector<1x128xf32>
    %260 = vector.extract_strided_slice %238 {offsets = [4, 0], sizes = [1, 128], strides = [1, 1]} : vector<16x128xbf16> to vector<1x128xbf16>
    %c4_220 = arith.constant 4 : index
    %c0_221 = arith.constant 0 : index
    %c0_222 = arith.constant 0 : index
    %261 = vector.load %arg7[%c4_220, %c0_221, %c0_222] : memref<16x128x128xbf16, #tpu.memory_space<vmem>>, vector<1x128x128xbf16>
    %262 = vector.shape_cast %261 : vector<1x128x128xbf16> to vector<128x128xbf16>
    %cst_223 = arith.constant dense<0.000000e+00> : vector<1x128xf32>
    %263 = tpu.matmul %260, %262, %cst_223 {dimension_numbers = #tpu.dot_dimension_numbers<[1], [0], [0], [1], [0, 0, 1, 1], [], []>} : vector<1x128xbf16>, vector<128x128xbf16>, vector<1x128xf32> -> vector<1x128xf32>
    %264 = arith.addf %259, %263 : vector<1x128xf32>
    %265 = vector.extract_strided_slice %238 {offsets = [5, 0], sizes = [1, 128], strides = [1, 1]} : vector<16x128xbf16> to vector<1x128xbf16>
    %c5_224 = arith.constant 5 : index
    %c0_225 = arith.constant 0 : index
    %c0_226 = arith.constant 0 : index
    %266 = vector.load %arg7[%c5_224, %c0_225, %c0_226] : memref<16x128x128xbf16, #tpu.memory_space<vmem>>, vector<1x128x128xbf16>
    %267 = vector.shape_cast %266 : vector<1x128x128xbf16> to vector<128x128xbf16>
    %cst_227 = arith.constant dense<0.000000e+00> : vector<1x128xf32>
    %268 = tpu.matmul %265, %267, %cst_227 {dimension_numbers = #tpu.dot_dimension_numbers<[1], [0], [0], [1], [0, 0, 1, 1], [], []>} : vector<1x128xbf16>, vector<128x128xbf16>, vector<1x128xf32> -> vector<1x128xf32>
    %269 = arith.addf %264, %268 : vector<1x128xf32>
    %270 = vector.extract_strided_slice %238 {offsets = [6, 0], sizes = [1, 128], strides = [1, 1]} : vector<16x128xbf16> to vector<1x128xbf16>
    %c6_228 = arith.constant 6 : index
    %c0_229 = arith.constant 0 : index
    %c0_230 = arith.constant 0 : index
    %271 = vector.load %arg7[%c6_228, %c0_229, %c0_230] : memref<16x128x128xbf16, #tpu.memory_space<vmem>>, vector<1x128x128xbf16>
    %272 = vector.shape_cast %271 : vector<1x128x128xbf16> to vector<128x128xbf16>
    %cst_231 = arith.constant dense<0.000000e+00> : vector<1x128xf32>
    %273 = tpu.matmul %270, %272, %cst_231 {dimension_numbers = #tpu.dot_dimension_numbers<[1], [0], [0], [1], [0, 0, 1, 1], [], []>} : vector<1x128xbf16>, vector<128x128xbf16>, vector<1x128xf32> -> vector<1x128xf32>
    %274 = arith.addf %269, %273 : vector<1x128xf32>
    %275 = vector.extract_strided_slice %238 {offsets = [7, 0], sizes = [1, 128], strides = [1, 1]} : vector<16x128xbf16> to vector<1x128xbf16>
    %c7_232 = arith.constant 7 : index
    %c0_233 = arith.constant 0 : index
    %c0_234 = arith.constant 0 : index
    %276 = vector.load %arg7[%c7_232, %c0_233, %c0_234] : memref<16x128x128xbf16, #tpu.memory_space<vmem>>, vector<1x128x128xbf16>
    %277 = vector.shape_cast %276 : vector<1x128x128xbf16> to vector<128x128xbf16>
    %cst_235 = arith.constant dense<0.000000e+00> : vector<1x128xf32>
    %278 = tpu.matmul %275, %277, %cst_235 {dimension_numbers = #tpu.dot_dimension_numbers<[1], [0], [0], [1], [0, 0, 1, 1], [], []>} : vector<1x128xbf16>, vector<128x128xbf16>, vector<1x128xf32> -> vector<1x128xf32>
    %279 = arith.addf %274, %278 : vector<1x128xf32>
    %280 = vector.extract_strided_slice %238 {offsets = [8, 0], sizes = [1, 128], strides = [1, 1]} : vector<16x128xbf16> to vector<1x128xbf16>
    %c8_236 = arith.constant 8 : index
    %c0_237 = arith.constant 0 : index
    %c0_238 = arith.constant 0 : index
    %281 = vector.load %arg7[%c8_236, %c0_237, %c0_238] : memref<16x128x128xbf16, #tpu.memory_space<vmem>>, vector<1x128x128xbf16>
    %282 = vector.shape_cast %281 : vector<1x128x128xbf16> to vector<128x128xbf16>
    %cst_239 = arith.constant dense<0.000000e+00> : vector<1x128xf32>
    %283 = tpu.matmul %280, %282, %cst_239 {dimension_numbers = #tpu.dot_dimension_numbers<[1], [0], [0], [1], [0, 0, 1, 1], [], []>} : vector<1x128xbf16>, vector<128x128xbf16>, vector<1x128xf32> -> vector<1x128xf32>
    %284 = arith.addf %279, %283 : vector<1x128xf32>
    %285 = vector.extract_strided_slice %238 {offsets = [9, 0], sizes = [1, 128], strides = [1, 1]} : vector<16x128xbf16> to vector<1x128xbf16>
    %c9_240 = arith.constant 9 : index
    %c0_241 = arith.constant 0 : index
    %c0_242 = arith.constant 0 : index
    %286 = vector.load %arg7[%c9_240, %c0_241, %c0_242] : memref<16x128x128xbf16, #tpu.memory_space<vmem>>, vector<1x128x128xbf16>
    %287 = vector.shape_cast %286 : vector<1x128x128xbf16> to vector<128x128xbf16>
    %cst_243 = arith.constant dense<0.000000e+00> : vector<1x128xf32>
    %288 = tpu.matmul %285, %287, %cst_243 {dimension_numbers = #tpu.dot_dimension_numbers<[1], [0], [0], [1], [0, 0, 1, 1], [], []>} : vector<1x128xbf16>, vector<128x128xbf16>, vector<1x128xf32> -> vector<1x128xf32>
    %289 = arith.addf %284, %288 : vector<1x128xf32>
    %290 = vector.extract_strided_slice %238 {offsets = [10, 0], sizes = [1, 128], strides = [1, 1]} : vector<16x128xbf16> to vector<1x128xbf16>
    %c10_244 = arith.constant 10 : index
    %c0_245 = arith.constant 0 : index
    %c0_246 = arith.constant 0 : index
    %291 = vector.load %arg7[%c10_244, %c0_245, %c0_246] : memref<16x128x128xbf16, #tpu.memory_space<vmem>>, vector<1x128x128xbf16>
    %292 = vector.shape_cast %291 : vector<1x128x128xbf16> to vector<128x128xbf16>
    %cst_247 = arith.constant dense<0.000000e+00> : vector<1x128xf32>
    %293 = tpu.matmul %290, %292, %cst_247 {dimension_numbers = #tpu.dot_dimension_numbers<[1], [0], [0], [1], [0, 0, 1, 1], [], []>} : vector<1x128xbf16>, vector<128x128xbf16>, vector<1x128xf32> -> vector<1x128xf32>
    %294 = arith.addf %289, %293 : vector<1x128xf32>
    %295 = vector.extract_strided_slice %238 {offsets = [11, 0], sizes = [1, 128], strides = [1, 1]} : vector<16x128xbf16> to vector<1x128xbf16>
    %c11_248 = arith.constant 11 : index
    %c0_249 = arith.constant 0 : index
    %c0_250 = arith.constant 0 : index
    %296 = vector.load %arg7[%c11_248, %c0_249, %c0_250] : memref<16x128x128xbf16, #tpu.memory_space<vmem>>, vector<1x128x128xbf16>
    %297 = vector.shape_cast %296 : vector<1x128x128xbf16> to vector<128x128xbf16>
    %cst_251 = arith.constant dense<0.000000e+00> : vector<1x128xf32>
    %298 = tpu.matmul %295, %297, %cst_251 {dimension_numbers = #tpu.dot_dimension_numbers<[1], [0], [0], [1], [0, 0, 1, 1], [], []>} : vector<1x128xbf16>, vector<128x128xbf16>, vector<1x128xf32> -> vector<1x128xf32>
    %299 = arith.addf %294, %298 : vector<1x128xf32>
    %300 = vector.extract_strided_slice %238 {offsets = [12, 0], sizes = [1, 128], strides = [1, 1]} : vector<16x128xbf16> to vector<1x128xbf16>
    %c12_252 = arith.constant 12 : index
    %c0_253 = arith.constant 0 : index
    %c0_254 = arith.constant 0 : index
    %301 = vector.load %arg7[%c12_252, %c0_253, %c0_254] : memref<16x128x128xbf16, #tpu.memory_space<vmem>>, vector<1x128x128xbf16>
    %302 = vector.shape_cast %301 : vector<1x128x128xbf16> to vector<128x128xbf16>
    %cst_255 = arith.constant dense<0.000000e+00> : vector<1x128xf32>
    %303 = tpu.matmul %300, %302, %cst_255 {dimension_numbers = #tpu.dot_dimension_numbers<[1], [0], [0], [1], [0, 0, 1, 1], [], []>} : vector<1x128xbf16>, vector<128x128xbf16>, vector<1x128xf32> -> vector<1x128xf32>
    %304 = arith.addf %299, %303 : vector<1x128xf32>
    %305 = vector.extract_strided_slice %238 {offsets = [13, 0], sizes = [1, 128], strides = [1, 1]} : vector<16x128xbf16> to vector<1x128xbf16>
    %c13_256 = arith.constant 13 : index
    %c0_257 = arith.constant 0 : index
    %c0_258 = arith.constant 0 : index
    %306 = vector.load %arg7[%c13_256, %c0_257, %c0_258] : memref<16x128x128xbf16, #tpu.memory_space<vmem>>, vector<1x128x128xbf16>
    %307 = vector.shape_cast %306 : vector<1x128x128xbf16> to vector<128x128xbf16>
    %cst_259 = arith.constant dense<0.000000e+00> : vector<1x128xf32>
    %308 = tpu.matmul %305, %307, %cst_259 {dimension_numbers = #tpu.dot_dimension_numbers<[1], [0], [0], [1], [0, 0, 1, 1], [], []>} : vector<1x128xbf16>, vector<128x128xbf16>, vector<1x128xf32> -> vector<1x128xf32>
    %309 = arith.addf %304, %308 : vector<1x128xf32>
    %310 = vector.extract_strided_slice %238 {offsets = [14, 0], sizes = [1, 128], strides = [1, 1]} : vector<16x128xbf16> to vector<1x128xbf16>
    %c14_260 = arith.constant 14 : index
    %c0_261 = arith.constant 0 : index
    %c0_262 = arith.constant 0 : index
    %311 = vector.load %arg7[%c14_260, %c0_261, %c0_262] : memref<16x128x128xbf16, #tpu.memory_space<vmem>>, vector<1x128x128xbf16>
    %312 = vector.shape_cast %311 : vector<1x128x128xbf16> to vector<128x128xbf16>
    %cst_263 = arith.constant dense<0.000000e+00> : vector<1x128xf32>
    %313 = tpu.matmul %310, %312, %cst_263 {dimension_numbers = #tpu.dot_dimension_numbers<[1], [0], [0], [1], [0, 0, 1, 1], [], []>} : vector<1x128xbf16>, vector<128x128xbf16>, vector<1x128xf32> -> vector<1x128xf32>
    %314 = arith.addf %309, %313 : vector<1x128xf32>
    %315 = vector.extract_strided_slice %238 {offsets = [15, 0], sizes = [1, 128], strides = [1, 1]} : vector<16x128xbf16> to vector<1x128xbf16>
    %c15_264 = arith.constant 15 : index
    %c0_265 = arith.constant 0 : index
    %c0_266 = arith.constant 0 : index
    %316 = vector.load %arg7[%c15_264, %c0_265, %c0_266] : memref<16x128x128xbf16, #tpu.memory_space<vmem>>, vector<1x128x128xbf16>
    %317 = vector.shape_cast %316 : vector<1x128x128xbf16> to vector<128x128xbf16>
    %cst_267 = arith.constant dense<0.000000e+00> : vector<1x128xf32>
    %318 = tpu.matmul %315, %317, %cst_267 {dimension_numbers = #tpu.dot_dimension_numbers<[1], [0], [0], [1], [0, 0, 1, 1], [], []>} : vector<1x128xbf16>, vector<128x128xbf16>, vector<1x128xf32> -> vector<1x128xf32>
    %319 = arith.addf %314, %318 : vector<1x128xf32>
    %cst_268 = arith.constant 0.000000e+00 : f32
    %320 = vector.broadcast %cst_268 : f32 to vector<1x128xf32>
    %321 = arith.maximumf %319, %320 : vector<1x128xf32>
    %322 = arith.truncf %321 : vector<1x128xf32> to vector<1x128xbf16>
    %c0_269 = arith.constant 0 : index
    %c0_270 = arith.constant 0 : index
    %323 = vector.load %arg9[%c0_269, %c0_270] : memref<128x128xbf16, #tpu.memory_space<vmem>>, vector<128x128xbf16>
    %cst_271 = arith.constant dense<0.000000e+00> : vector<1x128xf32>
    %324 = tpu.matmul %322, %323, %cst_271 {dimension_numbers = #tpu.dot_dimension_numbers<[1], [0], [0], [1], [0, 0, 1, 1], [], []>} : vector<1x128xbf16>, vector<128x128xbf16>, vector<1x128xf32> -> vector<1x128xf32>
    %c0_272 = arith.constant 0 : index
    %c0_273 = arith.constant 0 : index
    %325 = vector.load %arg10[%c0_272, %c0_273] : memref<1x128xf32, #tpu.memory_space<vmem>>, vector<1x128xf32>
    %326 = arith.addf %324, %325 : vector<1x128xf32>
    %327 = tpu.iota {dimensions = array<i32: 1>} : vector<1x128xi32>
    %c10_i32 = arith.constant 10 : i32
    %328 = vector.broadcast %c10_i32 : i32 to vector<1x128xi32>
    %329 = arith.cmpi slt, %327, %328 : vector<1x128xi32>
    %cst_274 = arith.constant 0xFF800000 : f32
    %330 = vector.broadcast %cst_274 : f32 to vector<1x128xf32>
    %331 = arith.select %329, %326, %330 : vector<1x128xi1>, vector<1x128xf32>
    %cst_275 = arith.constant dense<0xFF800000> : vector<1xf32>
    %332 = vector.multi_reduction <maximumf>, %331, %cst_275 [1] : vector<1x128xf32> to vector<1xf32>
    %333 = vector.shape_cast %332 : vector<1xf32> to vector<1x1xf32>
    %334 = vector.broadcast %333 : vector<1x1xf32> to vector<1x128xf32>
    %335 = arith.subf %331, %334 : vector<1x128xf32>
    %336 = math.exp %335 : vector<1x128xf32>
    %cst_276 = arith.constant dense<0.000000e+00> : vector<1xf32>
    %337 = vector.multi_reduction <add>, %336, %cst_276 [1] : vector<1x128xf32> to vector<1xf32>
    %338 = vector.shape_cast %337 : vector<1xf32> to vector<1x1xf32>
    %339 = math.log %338 : vector<1x1xf32>
    %340 = arith.addf %339, %333 : vector<1x1xf32>
    %341 = vector.broadcast %340 : vector<1x1xf32> to vector<1x128xf32>
    %342 = arith.subf %326, %341 : vector<1x128xf32>
    %c0_277 = arith.constant 0 : index
    %c0_278 = arith.constant 0 : index
    %c0_279 = arith.constant 0 : index
    %343 = vector.load %arg11[%c0_277, %c0_278, %c0_279] : memref<1x1x128xf32, #tpu.memory_space<vmem>>, vector<1x1x128xf32>
    %344 = vector.shape_cast %343 : vector<1x1x128xf32> to vector<1x128xf32>
    %345 = vector.shape_cast %342 : vector<1x128xf32> to vector<1x1x128xf32>
    tpu.vector_store %arg11[%c0_277, %c0_278, %c0_279], %345 {strides = array<i32>} : memref<1x1x128xf32, #tpu.memory_space<vmem>>, vector<1x1x128xf32>,
    return
  }
  func.func @transform_0(%arg0: i32) -> (i32, i32, i32) {
    %c0_i32 = arith.constant 0 : i32
    %c0_i32_0 = arith.constant 0 : i32
    %c0_i32_1 = arith.constant 0 : i32
    return %arg0, %c0_i32, %c0_i32_0 : i32, i32, i32
  }
  func.func @transform_1(%arg0: i32) -> (i32, i32) {
    %c0_i32 = arith.constant 0 : i32
    %c0_i32_0 = arith.constant 0 : i32
    %c0_i32_1 = arith.constant 0 : i32
    return %c0_i32, %c0_i32_0 : i32, i32
  }
  func.func @transform_2(%arg0: i32) -> (i32, i32) {
    %c0_i32 = arith.constant 0 : i32
    %c0_i32_0 = arith.constant 0 : i32
    %c0_i32_1 = arith.constant 0 : i32
    return %c0_i32, %c0_i32_0 : i32, i32
  }
  func.func @transform_3(%arg0: i32) -> (i32, i32, i32) {
    %c0_i32 = arith.constant 0 : i32
    %c0_i32_0 = arith.constant 0 : i32
    %c0_i32_1 = arith.constant 0 : i32
    %c0_i32_2 = arith.constant 0 : i32
    return %c0_i32, %c0_i32_0, %c0_i32_1 : i32, i32, i32
  }
  func.func @transform_4(%arg0: i32) -> (i32, i32, i32) {
    %c0_i32 = arith.constant 0 : i32
    %c0_i32_0 = arith.constant 0 : i32
    %c0_i32_1 = arith.constant 0 : i32
    %c0_i32_2 = arith.constant 0 : i32
    return %c0_i32, %c0_i32_0, %c0_i32_1 : i32, i32, i32
  }
  func.func @transform_5(%arg0: i32) -> (i32, i32) {
    %c0_i32 = arith.constant 0 : i32
    %c0_i32_0 = arith.constant 0 : i32
    %c0_i32_1 = arith.constant 0 : i32
    return %c0_i32, %c0_i32_0 : i32, i32
  }
  func.func @transform_6(%arg0: i32) -> (i32, i32, i32) {
    %c0_i32 = arith.constant 0 : i32
    %c0_i32_0 = arith.constant 0 : i32
    %c0_i32_1 = arith.constant 0 : i32
    %c0_i32_2 = arith.constant 0 : i32
    return %c0_i32, %c0_i32_0, %c0_i32_1 : i32, i32, i32
  }
  func.func @transform_7(%arg0: i32) -> (i32, i32) {
    %c0_i32 = arith.constant 0 : i32
    %c0_i32_0 = arith.constant 0 : i32
    %c0_i32_1 = arith.constant 0 : i32
    return %c0_i32, %c0_i32_0 : i32, i32
  }
  func.func @transform_8(%arg0: i32) -> (i32, i32) {
    %c0_i32 = arith.constant 0 : i32
    %c0_i32_0 = arith.constant 0 : i32
    %c0_i32_1 = arith.constant 0 : i32
    return %c0_i32, %c0_i32_0 : i32, i32
  }
  func.func @transform_9(%arg0: i32) -> (i32, i32) {
    %c0_i32 = arith.constant 0 : i32
    %c0_i32_0 = arith.constant 0 : i32
    %c0_i32_1 = arith.constant 0 : i32
    return %c0_i32, %c0_i32_0 : i32, i32
  }
  func.func @transform_10(%arg0: i32) -> (i32, i32, i32) {
    %c0_i32 = arith.constant 0 : i32
    %c0_i32_0 = arith.constant 0 : i32
    %c0_i32_1 = arith.constant 0 : i32
    return %arg0, %c0_i32, %c0_i32_0 : i32, i32, i32
  }
}

</mosaic_0001>

<bundles_post_ra>
// kernel: net_forward.1
= control target key start
LH: loop header
LB: loop body
LE: loop exit
PB: predicated region body
PF: predicated region fallthrough
CT: control target
= control target key end

     0   :  { %15 = vsyncpa [#allocation3], 0  ;;  %s17608_s0 = inlined_call_operand.vmem [shape: bf16[2,576,32], index: 0, kind: input, shape index: {}]   ;;  %s17609_s1 = inlined_call_operand.vmem [shape: bf16[32,128], index: 1, kind: input, shape index: {}]   ;;  %s17610_s2 = inlined_call_operand.vmem [shape: f32[1,128], index: 2, kind: input, shape index: {}]   ;;  %s17611_s3 = inlined_call_operand.vmem [shape: bf16[25,64,144], index: 3, kind: input, shape index: {}]   ;;  %s17612_s4 = inlined_call_operand.vmem [shape: bf16[25,128,128], index: 4, kind: input, shape index: {}]   ;;  %s17613_s5 = inlined_call_operand.vmem [shape: f32[1,128], index: 5, kind: input, shape index: {}]   ;;  %s17614_s6 = inlined_call_operand.vmem [shape: bf16[16,128,128], index: 6, kind: input, shape index: {}]   ;;  %s17615_s7 = inlined_call_operand.vmem [shape: f32[1,128], index: 7, kind: input, shape index: {}]   ;;  %s17616_s8 = inlined_call_operand.vmem [shape: bf16[128,128], index: 8, kind: input, shape index: {}]   ;;  %s17617_s9 = inlined_call_operand.vmem [shape: f32[1,128], index: 9, kind: input, shape index: {}]   ;;  %s17618_s10 = inlined_call_operand.hbm [shape: f32[2,1,128], index: 10, kind: output, shape index: {}]  }
   0x1   :  { %17 = vsyncpa [#allocation3 + $0x1], 0  ;;  %s14022_s13 = smov 0   ;;  %s14024_s14 = smov 0  }
   0x2   :  { %s14026_s15 = smov 0   ;;  %s14028_s16 = smov 0  }
   0x3 LB: > { %s14043_s17 = sadd.s32 4294967295, %s13961_s16   ;;  %s9791_s18 = sadd.s32 4294967294, %s13961_s16   ;;  %s13961_s16 = sphi %s14028_s16, %s17661_s16   ;;  %s13957_s15 = sphi %s14026_s15, %s17660_s15   ;;  %s13953_s14 = sphi %s14024_s14, %s17659_s14   ;;  %s13949_s13 = sphi %s14022_s13, %s17658_s13  }
   0x4   : > { %s14047_s19 = sadd.s32 1, %s13961_s16   ;;  %s245_s20 = sadd.s32 1, %s13957_s15 }
   0x5   : > { %s242_s21 = ssub.s32 %s13961_s16, %s14047_s19  ;;  %p255_p0 = scmp.ne.s32.totalorder %s13957_s15, %s13953_s14 }
   0x6   : > { %p243_p1 = scmp.eq.s32.totalorder %s242_s21, 0  ;;  %p256_p2 = scmp.eq.s32.totalorder %s14043_s17, 1 }
   0x7   : > { %p261_p3 = scmp.ne.s32.totalorder %s13953_s14, %s13949_s13  ;;  %p262_p4 = scmp.eq.s32.totalorder %s9791_s18, 1 }
   0x8   : > { %s14058_s22 = scalar_select %p243_p1, %s13957_s15, %s245_s20  }
   0x9   : > { %p14060_p5 = por %p256_p2, %p255_p0  ;;  %p14064_p6 = por %p262_p4, %p261_p3 }
   0xa   : > { %p9794_p7 = scmp.ge.s32.totalorder %s13961_s16, 1  ;;  %p315_p8 = scmp.lt.s32.totalorder %s13961_s16, 3 }
   0xc   : > { %p316_p9 = pnand %p9794_p7, %p315_p8 }
   0xd   : > { %v14073_v0 = vld [vmem:[%s17609_s1] sm:$0xff] (!%p316_p9)   ;;  %v17619_v1 = vmov (!%p316_p9), 0.0   ;;  %v13221_v2 = vld [vmem:[%s17609_s1 + $0x8] sm:$0xff] (!%p316_p9)   ;;  %vm13964_vm0 = vmmov (!%p316_p9), 0   ;;  %p352_p10 = scmp.lt.s32.totalorder (!%p316_p9), %s14043_s17, 1  ;;  %vm437_vm1 = vcmask (!%p316_p9), 261120  }
   0xe   : > { %319 = sbr.rel (%p316_p9) target bundleno = 3494 (0xda6), region = 60  ;;  %11824 = vmatprep.subr.bf16.mxu0 (!%p316_p9), %v17619_v1  ;;  %11828 = vmatprep.mubr.msk.bf16.mxu0 (!%p316_p9), %vm13964_vm0, %v17619_v1  ;;  %v13898_v23 = vld [vmem:[%s17609_s1 + $0x8] sm:$0xff] (!%p316_p9)   ;;  %vm1305_vm2 = vcmask (!%p316_p9), 130048   ;;  %vm9708_vm4 = vcmask (!%p316_p9), 1040384   ;;  %s350_s27 = sand.u32 (!%p316_p9), 1, %s13953_s14  }
   0xf   : > { %11825 = vmatpush3.bf16.msra.mxu0 (!%p316_p9), %v14073_v0  ;;  %s11324_s28 = sshll.u32 (!%p316_p9), %s14043_s17, 4  ;;  %s9724_s20 = scalar_lea.sflag (!%p316_p9), [#allocation3], %s350_s27 }
  0x10   : > { %11826 = vmatprep.subr.bf16.mxu0 (!%p316_p9), %v17619_v1 }
  0x13   : > { %11827 = vmatpush3.bf16.msra.mxu0 (!%p316_p9), %v13221_v2 }
  0x14   : > { %11864 = vmatprep.subr.bf16.mxu0 (!%p316_p9), %v17619_v1 }
  0x15   : > { %s353_s29 = scalar_select %p352_p10, %s14043_s17, 1 }
  0x16   : > { %s13966_s17 = smov [#allocation2]  }
  0x17   : > { %s13177_s30 = smul.u32 288, %s353_s29  ;;  %s351_s29 = scalar_lea.vmem [#allocation2], %s350_s27 }
  0x18   : > { %s13903_s25 = sshll.u32 %s13966_s17, 4  ;;  %s13904_s25 = int_to_ptr.vmem [resolvable:$false] %s13903_s25 }
  0x19   : > { %s14089_s18 = scalar_lea.vmem %s17608_s0, %s13177_s30  ;;  %s9736_s30 = sshll.u32 %s351_s29, 4  ;;  %s17568_s30 = int_to_ptr.vmem [resolvable:$true] %s9736_s30 }
  0x1a   : > { %v13222_v3 = vld [vmem:[%s14089_s18] sm:$0xff]   ;;  %v13223_v4 = vld [vmem:[%s14089_s18 + $0x8] sm:$0xff]   ;;  %v13224_v5 = vld [vmem:[%s14089_s18 + $0x10] sm:$0xff]   ;;  %s13899_s21 = scalar_lea.vmem %s17568_s30, 16  ;;  %s13905_s26 = scalar_lea.vmem %s13904_s25, 32 }
  0x1b   : > { %11829 = vmatmul.mubr.msk.bf16.vlgmr.msra.gmra.mrb[0].mxu0 %vm437_vm1, %v13222_v3  ;;  %v13225_v6 = vld [vmem:[%s14089_s18 + $0x18] sm:$0xff]   ;;  %v13226_v7 = vld [vmem:[%s14089_s18 + $0x20] sm:$0xff]   ;;  %v13227_v8 = vld [vmem:[%s14089_s18 + $0x28] sm:$0xff]   ;;  %p13900_p11 = scmp.ne.s32.totalorder %s17568_s30, %s13899_s21  ;;  %p13906_p0 = scmp.lt.s32.totalorder %s17568_s30, %s13904_s25 }
  0x1c   : > { %11865 = vmatpush3.bf16.msra.mxu0 %v14073_v0  ;;  %11832 = vmatprep.mubr.msk.bf16.mxu0 %vm13964_vm0, %v17619_v1  ;;  %v13228_v9 = vld [vmem:[%s14089_s18 + $0x30] sm:$0xff]   ;;  %v13229_v10 = vld [vmem:[%s14089_s18 + $0x38] sm:$0xff]   ;;  %v13230_v11 = vld [vmem:[%s14089_s18 + $0x40] sm:$0xff]   ;;  %p13907_p1 = scmp.lt.s32.totalorder %s13905_s26, %s13899_s21 }
  0x1d   : > { %11866 = vmatprep.subr.bf16.mxu0 %v17619_v1  ;;  %v13231_v12 = vld [vmem:[%s14089_s18 + $0x48] sm:$0xff]   ;;  %v13232_v13 = vld [vmem:[%s14089_s18 + $0x50] sm:$0xff]   ;;  %v13233_v14 = vld [vmem:[%s14089_s18 + $0x58] sm:$0xff]   ;;  %p13901_p12 = pnand %p13900_p11, %p14060_p5 }
  0x1e   : > { %v13234_v15 = vld [vmem:[%s14089_s18 + $0x60] sm:$0xff]   ;;  %v13235_v16 = vld [vmem:[%s14089_s18 + $0x68] sm:$0xff]   ;;  %v13236_v17 = vld [vmem:[%s14089_s18 + $0x70] sm:$0xff]   ;;  %p13908_p2 = por %p13907_p1, %p13906_p0 }
  0x1f   : > { %v13237_v18 = vld [vmem:[%s14089_s18 + $0x78] sm:$0xff]   ;;  %v13238_v19 = vld [vmem:[%s14089_s18 + $0x80] sm:$0xff]   ;;  %v13239_v20 = vld [vmem:[%s14089_s18 + $0x88] sm:$0xff]   ;;  %p13902_p13 = pneg %p13901_p12 }
  0x20   : > { %11867 = vmatpush3.bf16.msra.mxu0 %v13221_v2  ;;  %v13240_v21 = vld [vmem:[%s14089_s18 + $0x90] sm:$0xff]   ;;  %v13241_v22 = vld [vmem:[%s14089_s18 + $0x98] sm:$0xff]   ;;  %v13242_v24 = vld [vmem:[%s14089_s18 + $0xa0] sm:$0xff]  }
  0x21   : > { %11904 = vmatprep.subr.bf16.mxu0 %v17619_v1  ;;  %v13243_v25 = vld [vmem:[%s14089_s18 + $0xa8] sm:$0xff]   ;;  %v13244_v26 = vld [vmem:[%s14089_s18 + $0xb0] sm:$0xff]   ;;  %v13245_v27 = vld [vmem:[%s14089_s18 + $0xb8] sm:$0xff]   ;;  %p13909_p3 = pnand %p13908_p2, %p13902_p13 }
  0x22   : > { %v13246_v28 = vld [vmem:[%s14089_s18 + $0xc0] sm:$0xff]   ;;  %v13247_v29 = vld [vmem:[%s14089_s18 + $0xc8] sm:$0xff]   ;;  %v13248_v30 = vld [vmem:[%s14089_s18 + $0xd0] sm:$0xff]  }
  0x23   : > { %11833 = vmatmul.mubr.msk.bf16.gmra.mrb[4].mxu0 %vm437_vm1, %v13223_v4  ;;  %v13249_v33 = vld [vmem:[%s14089_s18 + $0xd8] sm:$0xff]   ;;  %v13250_v38 = vld [vmem:[%s14089_s18 + $0xe0] sm:$0xff]   ;;  %v13251_v43 = vld [vmem:[%s14089_s18 + $0xe8] sm:$0xff]  }
  0x24   : > { %11836 = vmatprep.mubr.msk.bf16.mxu0 %vm13964_vm0, %v17619_v1  ;;  %v13252_v48 = vld [vmem:[%s14089_s18 + $0xf0] sm:$0xff]   ;;  %v13253_v53 = vld [vmem:[%s14089_s18 + $0xf8] sm:$0xff]   ;;  %v13254_v58 = vld [vmem:[%s14089_s18 + $0x100] sm:$0xff]  }
  0x25   : > { %v13255_v63 = vld [vmem:[%s14089_s18 + $0x108] sm:$0xff]  }
  0x2b   : > { %11837 = vmatmul.mubr.msk.bf16.gmra.mrb[8].mxu0 %vm437_vm1, %v13224_v5  ;;  %v13256_v5 = vld [vmem:[%s14089_s18 + $0x110] sm:$0xff]  }
  0x2c   : > { %11840 = vmatprep.mubr.msk.bf16.mxu0 %vm13964_vm0, %v17619_v1 }
  0x33   : > { %11841 = vmatmul.mubr.msk.bf16.gmra.mrb[12].mxu0 %vm437_vm1, %v13225_v6 }
  0x34   : > { %11844 = vmatprep.mubr.msk.bf16.mxu0 %vm13964_vm0, %v17619_v1 }
  0x3b   : > { %11845 = vmatmul.mubr.msk.bf16.gmra.mrb[16].mxu0 %vm437_vm1, %v13226_v7 }
  0x3c   : > { %11848 = vmatprep.mubr.msk.bf16.mxu0 %vm13964_vm0, %v17619_v1 }
  0x43   : > { %11849 = vmatmul.mubr.msk.bf16.gmra.mrb[20].mxu0 %vm437_vm1, %v13227_v8 }
  0x44   : > { %11852 = vmatprep.mubr.msk.bf16.mxu0 %vm13964_vm0, %v17619_v1 }
  0x4b   : > { %11853 = vmatmul.mubr.msk.bf16.gmra.mrb[24].mxu0 %vm437_vm1, %v13228_v9 }
  0x4c   : > { %11856 = vmatprep.mubr.msk.bf16.mxu0 %vm13964_vm0, %v17619_v1 }
  0x53   : > { %11857 = vmatmul.mubr.msk.bf16.gmra.mrb[28].mxu0 %vm437_vm1, %v13229_v10  ;;  %v13257_v10 = vld [vmem:[%s14089_s18 + $0x118] sm:$0xff]   ;;  %s17566_s18 = scalar_lea.hbm %s17618_s10, %s11324_s28 }
  0x54   : > { %11860 = vmatprep.mubr.msk.bf16.mxu0 %vm13964_vm0, %v17619_v1 }
  0x5b   : > { %11861 = vmatmul.mubr.msk.bf16.gmra.mrb[32].mxu0 %vm437_vm1, %v13230_v11 }
  0x5c   : > { %11868 = vmatprep.mubr.msk.bf16.mxu0 %vm13964_vm0, %v17619_v1 }
  0x63   : > { %11869 = vmatmul.mubr.msk.bf16.vlgmr.msra.gmra.mrb[36].mxu0 %vm437_vm1, %v13231_v12 }
  0x64   : > { %11905 = vmatpush3.bf16.msra.mxu0 %v14073_v0  ;;  %11872 = vmatprep.mubr.msk.bf16.mxu0 %vm13964_vm0, %v17619_v1 }
  0x65   : > { %11906 = vmatprep.subr.bf16.mxu0 %v17619_v1 }
  0x68   : > { %11907 = vmatpush3.bf16.msra.mxu0 %v13221_v2 }
  0x69   : > { %11944 = vmatprep.subr.bf16.mxu0 %v17619_v1 }
  0x6b   : > { %11873 = vmatmul.mubr.msk.bf16.gmra.mrb[40].mxu0 %vm437_vm1, %v13232_v13 }
  0x6c   : > { %11876 = vmatprep.mubr.msk.bf16.mxu0 %vm13964_vm0, %v17619_v1 }
  0x73   : > { %11877 = vmatmul.mubr.msk.bf16.gmra.mrb[44].mxu0 %vm437_vm1, %v13233_v14 }
  0x74   : > { %11880 = vmatprep.mubr.msk.bf16.mxu0 %vm13964_vm0, %v17619_v1 }
  0x7b   : > { %11881 = vmatmul.mubr.msk.bf16.gmra.mrb[48].mxu0 %vm437_vm1, %v13234_v15 }
  0x7c   : > { %11884 = vmatprep.mubr.msk.bf16.mxu0 %vm13964_vm0, %v17619_v1 }
  0x83   : > { %11885 = vmatmul.mubr.msk.bf16.gmra.mrb[52].mxu0 %vm437_vm1, %v13235_v16 }
  0x84   : > { %11888 = vmatprep.mubr.msk.bf16.mxu0 %vm13964_vm0, %v17619_v1 }
  0x8b   : > { %11889 = vmatmul.mubr.msk.bf16.gmra.mrb[56].mxu0 %vm437_vm1, %v13236_v17 }
  0x8c   : > { %11892 = vmatprep.mubr.msk.bf16.mxu0 %vm13964_vm0, %v17619_v1 }
  0x93   : > { %11893 = vmatmul.mubr.msk.bf16.gmra.mrb[60].mxu0 %vm437_vm1, %v13237_v18 }
  0x94   : > { %11896 = vmatprep.mubr.msk.bf16.mxu0 %vm13964_vm0, %v17619_v1 }
  0x9b   : > { %11897 = vmatmul.mubr.msk.bf16.gmra.mrb[64].mxu0 %vm437_vm1, %v13238_v19 }
  0x9c   : > { %11900 = vmatprep.mubr.msk.bf16.mxu0 %vm13964_vm0, %v17619_v1 }
  0xa3   : > { %11901 = vmatmul.mubr.msk.bf16.gmra.mrb[68].mxu0 %vm437_vm1, %v13239_v20 }
  0xa4   : > { %11908 = vmatprep.mubr.msk.bf16.mxu0 %vm13964_vm0, %v17619_v1 }
  0xab   : > { %11909 = vmatmul.mubr.msk.bf16.vlgmr.msra.gmra.mrb[72].mxu0 %vm437_vm1, %v13240_v21 }
  0xac   : > { %11945 = vmatpush3.bf16.msra.mxu0 %v14073_v0  ;;  %11912 = vmatprep.mubr.msk.bf16.mxu0 %vm13964_vm0, %v17619_v1 }
  0xad   : > { %11946 = vmatprep.subr.bf16.mxu0 %v17619_v1 }
  0xb0   : > { %11947 = vmatpush3.bf16.msra.mxu0 %v13898_v23 }
  0xb3   : > { %11913 = vmatmul.mubr.msk.bf16.gmra.mrb[76].mxu0 %vm437_vm1, %v13241_v22 }
  0xb4   : > { %11916 = vmatprep.mubr.msk.bf16.mxu0 %vm13964_vm0, %v17619_v1 }
  0xbb   : > { %11917 = vmatmul.mubr.msk.bf16.gmra.mrb[80].mxu0 %vm437_vm1, %v13242_v24 }
  0xbc   : > { %11920 = vmatprep.mubr.msk.bf16.mxu0 %vm13964_vm0, %v17619_v1 }
  0xc3   : > { %11921 = vmatmul.mubr.msk.bf16.gmra.mrb[84].mxu0 %vm437_vm1, %v13243_v25 }
  0xc4   : > { %11924 = vmatprep.mubr.msk.bf16.mxu0 %vm13964_vm0, %v17619_v1 }
  0xcb   : > { %11925 = vmatmul.mubr.msk.bf16.gmra.mrb[88].mxu0 %vm437_vm1, %v13244_v26 }
  0xcc   : > { %11928 = vmatprep.mubr.msk.bf16.mxu0 %vm13964_vm0, %v17619_v1 }
  0xd3   : > { %11929 = vmatmul.mubr.msk.bf16.gmra.mrb[92].mxu0 %vm437_vm1, %v13245_v27 }
  0xd4   : > { %11932 = vmatprep.mubr.msk.bf16.mxu0 %vm13964_vm0, %v17619_v1 }
  0xdb   : > { %11933 = vmatmul.mubr.msk.bf16.gmra.mrb[96].mxu0 %vm437_vm1, %v13246_v28 }
  0xdc   : > { %11936 = vmatprep.mubr.msk.bf16.mxu0 %vm13964_vm0, %v17619_v1 }
  0xe3   : > { %11937 = vmatmul.mubr.msk.bf16.gmra.mrb[100].mxu0 %vm437_vm1, %v13247_v29 }
  0xe4   : > { %11940 = vmatprep.mubr.msk.bf16.mxu0 %vm13964_vm0, %v17619_v1 }
  0xeb   : > { %11941 = vmatmul.mubr.msk.bf16.gmra.mrb[104].mxu0 %vm437_vm1, %v13248_v30 }
  0xec   : > { %11948 = vmatprep.mubr.msk.bf16.mxu0 %vm13964_vm0, %v17619_v1 }
  0xee   : > { %v14210_v31 = vpop.f32.mrb[0].mxu0 }
  0xef   : > { %v11830_v32 = vpop.f32.mrb[1].mxu0 }
  0xf0   : > { %v14213_v34 = vpop.f32.mrb[2].mxu0 }
  0xf1   : > { %v11831_v35 = vpop.f32.mrb[3].mxu0 }
  0xf2   : > { %v17621_v35 = vmov 0  }
  0xf3   : > { %11949 = vmatmul.mubr.msk.bf16.vlgmr.msra.gmra.mrb[108].mxu0 %vm437_vm1, %v13249_v33  ;;  %1318 = vmatprep.subr.bf16.mxu0 %v17621_v35 }
  0xf4   : > { %11952 = vmatprep.mubr.msk.bf16.mxu0 %vm13964_vm0, %v17619_v1  ;;  %2093 = vmatprep.subr.bf16.mxu1 %v17621_v35 }
  0xf6   : > { %v14218_v36 = vpop.f32.mrb[4].mxu0 }
  0xf7   : > { %v11834_v37 = vpop.f32.mrb[5].mxu0 }
  0xf8   : > { %v14221_v39 = vpop.f32.mrb[6].mxu0 }
  0xf9   : > { %v11835_v40 = vpop.f32.mrb[7].mxu0 }
  0xfb   : > { %11953 = vmatmul.mubr.msk.bf16.gmra.mrb[112].mxu0 %vm437_vm1, %v13250_v38 }
  0xfc   : > { %11956 = vmatprep.mubr.msk.bf16.mxu0 %vm13964_vm0, %v17619_v1 }
  0xfe   : > { %v14226_v41 = vpop.f32.mrb[8].mxu0 }
  0xff   : > { %v11838_v42 = vpop.f32.mrb[9].mxu0 }
 0x100   : > { %v14229_v44 = vpop.f32.mrb[10].mxu0 }
 0x101   : > { %v11839_v45 = vpop.f32.mrb[11].mxu0 }
 0x103   : > { %11957 = vmatmul.mubr.msk.bf16.gmra.mrb[116].mxu0 %vm437_vm1, %v13251_v43 }
 0x104   : > { %11960 = vmatprep.mubr.msk.bf16.mxu0 %vm13964_vm0, %v17619_v1 }
 0x106   : > { %v14234_v46 = vpop.f32.mrb[12].mxu0 }
 0x107   : > { %v11842_v47 = vpop.f32.mrb[13].mxu0 }
 0x108   : > { %v14237_v49 = vpop.f32.mrb[14].mxu0 }
 0x109   : > { %v11843_v50 = vpop.f32.mrb[15].mxu0 }
 0x10b   : > { %11961 = vmatmul.mubr.msk.bf16.gmra.mrb[120].mxu0 %vm437_vm1, %v13252_v48 }
 0x10c   : > { %11964 = vmatprep.mubr.msk.bf16.mxu0 %vm13964_vm0, %v17619_v1 }
 0x10e   : > { %v14242_v51 = vpop.f32.mrb[16].mxu0 }
 0x10f   : > { %v11846_v52 = vpop.f32.mrb[17].mxu0 }
 0x110   : > { %v14245_v54 = vpop.f32.mrb[18].mxu0 }
 0x111   : > { %v11847_v55 = vpop.f32.mrb[19].mxu0 }
 0x113   : > { %11965 = vmatmul.mubr.msk.bf16.gmra.mrb[124].mxu0 %vm437_vm1, %v13253_v53 }
 0x114   : > { %11968 = vmatprep.mubr.msk.bf16.mxu0 %vm13964_vm0, %v17619_v1 }
 0x116   : > { %v14250_v56 = vpop.f32.mrb[20].mxu0 }
 0x117   : > { %v11850_v57 = vpop.f32.mrb[21].mxu0 }
 0x118   : > { %v14253_v59 = vpop.f32.mrb[22].mxu0 }
 0x119   : > { %v11851_v60 = vpop.f32.mrb[23].mxu0 }
 0x11b   : > { %11969 = vmatmul.mubr.msk.bf16.gmra.mrb[128].mxu0 %vm437_vm1, %v13254_v58 }
 0x11c   : > { %11972 = vmatprep.mubr.msk.bf16.mxu0 %vm13964_vm0, %v17619_v1 }
 0x11e   : > { %v14258_v61 = vpop.f32.mrb[24].mxu0 }
 0x11f   : > { %v11854_v62 = vpop.f32.mrb[25].mxu0 }
 0x120   : > { %v14261_v0 = vpop.f32.mrb[26].mxu0 }
 0x121   : > { %v11855_v2 = vpop.f32.mrb[27].mxu0 }
 0x123   : > { %11973 = vmatmul.mubr.msk.bf16.gmra.mrb[132].mxu0 %vm437_vm1, %v13255_v63 }
 0x124   : > { %11976 = vmatprep.mubr.msk.bf16.mxu0 %vm13964_vm0, %v17619_v1 }
 0x126   : > { %v14266_v3 = vpop.f32.mrb[28].mxu0 }
 0x127   : > { %v11858_v4 = vpop.f32.mrb[29].mxu0 }
 0x128   : > { %v14269_v6 = vpop.f32.mrb[30].mxu0 }
 0x129   : > { %v11859_v7 = vpop.f32.mrb[31].mxu0 }
 0x12b   : > { %11977 = vmatmul.mubr.msk.bf16.gmra.mrb[136].mxu0 %vm437_vm1, %v13256_v5 }
 0x12c   : > { %11980 = vmatprep.mubr.msk.bf16.mxu0 %vm13964_vm0, %v17619_v1 }
 0x12e   : > { %v14274_v8 = vpop.f32.mrb[32].mxu0 }
 0x12f   : > { %v11862_v9 = vpop.f32.mrb[33].mxu0 }
 0x130   : > { %v14277_v11 = vpop.f32.mrb[34].mxu0 }
 0x131   : > { %v11863_v12 = vpop.f32.mrb[35].mxu0 }
 0x133   : > { %11981 = vmatmul.mubr.msk.bf16.gmra.mrb[140].mxu0 %vm437_vm1, %v13257_v10 }
 0x136   : > { %v694_v13 = vpop.f32.mrb[36].mxu0 }
 0x137   : > { %v765_v14 = vmax.f32 %v14210_v31, %v694_v13  ;;  %v11870_v15 = vpop.f32.mrb[37].mxu0 }
 0x138   : > { %v697_v16 = vpop.f32.mrb[38].mxu0 }
 0x139   : > { %v766_v17 = vmax.f32 %v14213_v34, %v697_v16  ;;  %v11871_v18 = vpop.f32.mrb[39].mxu0 }
 0x13e   : > { %v702_v19 = vpop.f32.mrb[40].mxu0 }
 0x13f   : > { %v767_v20 = vmax.f32 %v14218_v36, %v702_v19  ;;  %v11874_v21 = vpop.f32.mrb[41].mxu0 }
 0x140   : > { %v705_v22 = vpop.f32.mrb[42].mxu0 }
 0x141   : > { %v768_v23 = vmax.f32 %v14221_v39, %v705_v22  ;;  %v11875_v24 = vpop.f32.mrb[43].mxu0 }
 0x146   : > { %v710_v25 = vpop.f32.mrb[44].mxu0 }
 0x147   : > { %v769_v26 = vmax.f32 %v14226_v41, %v710_v25  ;;  %v11878_v27 = vpop.f32.mrb[45].mxu0 }
 0x148   : > { %v713_v28 = vpop.f32.mrb[46].mxu0 }
 0x149   : > { %v770_v29 = vmax.f32 %v14229_v44, %v713_v28  ;;  %v11879_v30 = vpop.f32.mrb[47].mxu0 }
 0x14e   : > { %v14286_v31 = vpop.f32.mrb[48].mxu0 }
 0x14f   : > { %v771_v32 = vmax.f32 %v14234_v46, %v14286_v31  ;;  %v11882_v33 = vpop.f32.mrb[49].mxu0 }
 0x150   : > { %v14290_v34 = vpop.f32.mrb[50].mxu0 }
 0x151   : > { %v772_v36 = vmax.f32 %v14237_v49, %v14290_v34  ;;  %v11883_v37 = vpop.f32.mrb[51].mxu0 }
 0x156   : > { %v726_v38 = vpop.f32.mrb[52].mxu0 }
 0x157   : > { %v773_v39 = vmax.f32 %v14242_v51, %v726_v38  ;;  %v11886_v40 = vpop.f32.mrb[53].mxu0 }
 0x158   : > { %v729_v41 = vpop.f32.mrb[54].mxu0 }
 0x159   : > { %v774_v42 = vmax.f32 %v14245_v54, %v729_v41  ;;  %v11887_v43 = vpop.f32.mrb[55].mxu0 }
 0x15e   : > { %v734_v44 = vpop.f32.mrb[56].mxu0 }
 0x15f   : > { %v775_v45 = vmax.f32 %v14250_v56, %v734_v44  ;;  %v11890_v46 = vpop.f32.mrb[57].mxu0 }
 0x160   : > { %v737_v47 = vpop.f32.mrb[58].mxu0 }
 0x161   : > { %v776_v48 = vmax.f32 %v14253_v59, %v737_v47  ;;  %v11891_v50 = vpop.f32.mrb[59].mxu0 }
 0x166   : > { %v742_v52 = vpop.f32.mrb[60].mxu0 }
 0x167   : > { %v777_v49 = vmax.f32 %v14258_v61, %v742_v52  ;;  %v11894_v53 = vpop.f32.mrb[61].mxu0 }
 0x168   : > { %v745_v55 = vpop.f32.mrb[62].mxu0 }
 0x169   : > { %v778_v51 = vmax.f32 %v14261_v0, %v745_v55  ;;  %v11895_v57 = vpop.f32.mrb[63].mxu0 }
 0x16e   : > { %v750_v58 = vpop.f32.mrb[64].mxu0 }
 0x16f   : > { %v779_v54 = vmax.f32 %v14266_v3, %v750_v58  ;;  %v11898_v60 = vpop.f32.mrb[65].mxu0 }
 0x170   : > { %v753_v62 = vpop.f32.mrb[66].mxu0 }
 0x171   : > { %v780_v56 = vmax.f32 %v14269_v6, %v753_v62  ;;  %v11899_v63 = vpop.f32.mrb[67].mxu0 }
 0x176   : > { %v758_v2 = vpop.f32.mrb[68].mxu0 }
 0x177   : > { %v781_v59 = vmax.f32 %v14274_v8, %v758_v2  ;;  %v11902_v4 = vpop.f32.mrb[69].mxu0 }
 0x178   : > { %v761_v5 = vpop.f32.mrb[70].mxu0 }
 0x179   : > { %v782_v61 = vmax.f32 %v14277_v11, %v761_v5  ;;  %v11903_v7 = vpop.f32.mrb[71].mxu0 }
 0x17e   : > { %v907_v9 = vpop.f32.mrb[72].mxu0 }
 0x17f   : > { %v14306_v10 = vmax.f32 %v765_v14, %v907_v9  ;;  %v11910_v0 = vpop.f32.mrb[73].mxu0 }
 0x180   : > { %v910_v12 = vpop.f32.mrb[74].mxu0 }
 0x181   : > { %v14308_v13 = vmax.f32 %v766_v17, %v910_v12  ;;  %v11911_v3 = vpop.f32.mrb[75].mxu0  ;;  %v13260_v17 = vld [vmem:[%s17611_s3 + $0x4] ss:$8 sps:$4 sm:$0xff]  }
 0x182   : > { %9879 = vmatprep.mubr.msk.bf16.mxu0 %vm1305_vm2, %v13260_v17 }
 0x186   : > { %v915_v15 = vpop.f32.mrb[76].mxu0 }
 0x187   : > { %v14310_v16 = vmax.f32 %v767_v20, %v915_v15  ;;  %v11914_v6 = vpop.f32.mrb[77].mxu0  ;;  %v13263_v20 = vld [vmem:[%s17611_s3 + $0xc4] ss:$8 sps:$4 sm:$0xff]  }
 0x188   : > { %v918_v18 = vpop.f32.mrb[78].mxu0  ;;  %9995 = vmatprep.mubr.msk.bf16.mxu1 %vm1305_vm2, %v13263_v20 }
 0x189   : > { %v14312_v19 = vmax.f32 %v768_v23, %v918_v18  ;;  %v11915_v8 = vpop.f32.mrb[79].mxu0 }
 0x18e   : > { %v923_v21 = vpop.f32.mrb[80].mxu0 }
 0x18f   : > { %v14314_v22 = vmax.f32 %v769_v26, %v923_v21  ;;  %v11918_v11 = vpop.f32.mrb[81].mxu0 }
 0x190   : > { %v926_v24 = vpop.f32.mrb[82].mxu0 }
 0x191   : > { %v14316_v14 = vmax.f32 %v770_v29, %v926_v24  ;;  %v11919_v25 = vpop.f32.mrb[83].mxu0 }
 0x196   : > { %v931_v23 = vpop.f32.mrb[84].mxu0 }
 0x197   : > { %v14326_v26 = vmax.f32 %v771_v32, %v931_v23  ;;  %v11922_v27 = vpop.f32.mrb[85].mxu0 }
 0x198   : > { %v934_v28 = vpop.f32.mrb[86].mxu0 }
 0x199   : > { %v14328_v29 = vmax.f32 %v772_v36, %v934_v28  ;;  %v11923_v30 = vpop.f32.mrb[87].mxu0 }
 0x19e   : > { %v939_v31 = vpop.f32.mrb[88].mxu0 }
 0x19f   : > { %v14330_v33 = vmax.f32 %v773_v39, %v939_v31  ;;  %v11926_v34 = vpop.f32.mrb[89].mxu0 }
 0x1a0   : > { %v942_v37 = vpop.f32.mrb[90].mxu0 }
 0x1a1   : > { %v14332_v38 = vmax.f32 %v774_v42, %v942_v37  ;;  %v11927_v40 = vpop.f32.mrb[91].mxu0 }
 0x1a6   : > { %v947_v41 = vpop.f32.mrb[92].mxu0 }
 0x1a7   : > { %v14334_v43 = vmax.f32 %v775_v45, %v947_v41  ;;  %v11930_v44 = vpop.f32.mrb[93].mxu0 }
 0x1a8   : > { %v950_v46 = vpop.f32.mrb[94].mxu0 }
 0x1a9   : > { %v14336_v32 = vmax.f32 %v776_v48, %v950_v46  ;;  %v11931_v47 = vpop.f32.mrb[95].mxu0 }
 0x1ae   : > { %v955_v50 = vpop.f32.mrb[96].mxu0 }
 0x1af   : > { %v14338_v36 = vmax.f32 %v777_v49, %v955_v50  ;;  %v11934_v52 = vpop.f32.mrb[97].mxu0 }
 0x1b0   : > { %v958_v53 = vpop.f32.mrb[98].mxu0 }
 0x1b1   : > { %v14340_v39 = vmax.f32 %v778_v51, %v958_v53  ;;  %v11935_v55 = vpop.f32.mrb[99].mxu0  ;;  %v14353_v51 = vld [vmem:[%s17610_s2] ss:$0 sm:$0xff] }
 0x1b6   : > { %v963_v57 = vpop.f32.mrb[100].mxu0 }
 0x1b7   : > { %v14342_v42 = vmax.f32 %v779_v54, %v963_v57  ;;  %v11938_v58 = vpop.f32.mrb[101].mxu0 }
 0x1b8   : > { %v966_v60 = vpop.f32.mrb[102].mxu0 }
 0x1b9   : > { %v14344_v45 = vmax.f32 %v780_v56, %v966_v60  ;;  %v11939_v62 = vpop.f32.mrb[103].mxu0 }
 0x1be   : > { %v971_v63 = vpop.f32.mrb[104].mxu0 }
 0x1bf   : > { %v14346_v48 = vmax.f32 %v781_v59, %v971_v63  ;;  %v11942_v2 = vpop.f32.mrb[105].mxu0 }
 0x1c0   : > { %v974_v4 = vpop.f32.mrb[106].mxu0 }
 0x1c1   : > { %v14348_v49 = vmax.f32 %v782_v61, %v974_v4  ;;  %v11943_v5 = vpop.f32.mrb[107].mxu0 }
 0x1c6   : > { %v1120_v7 = vpop.f32.mrb[108].mxu0 }
 0x1c7   : > { %v1191_v54 = vmax.f32 %v14306_v10, %v1120_v7  ;;  %v11950_v9 = vpop.f32.mrb[109].mxu0 }
 0x1c8   : > { %v1123_v56 = vpop.f32.mrb[110].mxu0 }
 0x1c9   : > { %v1216_v0 = vadd.f32 %v14353_v51, %v1191_v54  ;;  %v1192_v59 = vmax.f32 %v14308_v13, %v1123_v56  ;;  %v11951_v12 = vpop.f32.mrb[111].mxu0 }
 0x1cb   : > { %v1217_v3 = vadd.f32 %v14353_v51, %v1192_v59  ;;  %v1234_v61 = vmax.f32 %v1216_v0, 0.0 }
 0x1cd   : > { %v1235_v15 = vmax.f32 %v1217_v3, 0.0 }
 0x1ce   : > { %v1128_v6 = vpop.f32.mrb[112].mxu0 }
 0x1cf   : > { %v14359_v18 = vpack.c.bf16 %v1235_v15, %v1234_v61  ;;  %v1193_v8 = vmax.f32 %v14310_v16, %v1128_v6  ;;  %v11954_v21 = vpop.f32.mrb[113].mxu0 }
 0x1d0   : > { %v1131_v11 = vpop.f32.mrb[114].mxu0 }
 0x1d1   : > { %v1218_v10 = vadd.f32 %v14353_v51, %v1193_v8  ;;  %v1194_v24 = vmax.f32 %v14312_v19, %v1131_v11  ;;  %v11955_v25 = vpop.f32.mrb[115].mxu0  ;;  %1319 = vmatpush1.bf16.msra.mxu0 %v14359_v18  ;;  %2094 = vmatpush1.bf16.msra.mxu1 %v14359_v18 }
 0x1d2   : > { %1320 = vmatprep.subr.bf16.mxu0 %v17621_v35  ;;  %2095 = vmatprep.subr.bf16.mxu1 %v17621_v35 }
 0x1d3   : > { %v1219_v13 = vadd.f32 %v14353_v51, %v1194_v24  ;;  %v1236_v17 = vmax.f32 %v1218_v10, 0.0 }
 0x1d5   : > { %v1237_v20 = vmax.f32 %v1219_v13, 0.0 }
 0x1d6   : > { %v1136_v16 = vpop.f32.mrb[116].mxu0 }
 0x1d7   : > { %v14369_v23 = vpack.c.bf16 %v1237_v20, %v1236_v17  ;;  %v1195_v27 = vmax.f32 %v14314_v22, %v1136_v16  ;;  %v11958_v28 = vpop.f32.mrb[117].mxu0 }
 0x1d8   : > { %v1139_v19 = vpop.f32.mrb[118].mxu0 }
 0x1d9   : > { %v1220_v30 = vadd.f32 %v14353_v51, %v1195_v27  ;;  %v1196_v31 = vmax.f32 %v14316_v14, %v1139_v19  ;;  %v11959_v34 = vpop.f32.mrb[119].mxu0  ;;  %1321 = vmatpush1.bf16.msra.mxu0 %v14369_v23  ;;  %2096 = vmatpush1.bf16.msra.mxu1 %v14369_v23 }
 0x1da   : > { %1322 = vmatprep.subr.bf16.mxu0 %v17621_v35  ;;  %2097 = vmatprep.subr.bf16.mxu1 %v17621_v35 }
 0x1db   : > { %v1221_v37 = vadd.f32 %v14353_v51, %v1196_v31  ;;  %v1238_v40 = vmax.f32 %v1220_v30, 0.0 }
 0x1dd   : > { %v1239_v41 = vmax.f32 %v1221_v37, 0.0 }
 0x1de   : > { %v1144_v22 = vpop.f32.mrb[120].mxu0 }
 0x1df   : > { %v14379_v44 = vpack.c.bf16 %v1239_v41, %v1238_v40  ;;  %v1197_v46 = vmax.f32 %v14326_v26, %v1144_v22  ;;  %v11962_v47 = vpop.f32.mrb[121].mxu0 }
 0x1e0   : > { %v1147_v14 = vpop.f32.mrb[122].mxu0 }
 0x1e1   : > { %v1222_v50 = vadd.f32 %v14353_v51, %v1197_v46  ;;  %v1198_v52 = vmax.f32 %v14328_v29, %v1147_v14  ;;  %v11963_v53 = vpop.f32.mrb[123].mxu0  ;;  %1323 = vmatpush1.bf16.msra.mxu0 %v14379_v44  ;;  %2098 = vmatpush1.bf16.msra.mxu1 %v14379_v44 }
 0x1e2   : > { %1324 = vmatprep.subr.bf16.mxu0 %v17621_v35  ;;  %2099 = vmatprep.subr.bf16.mxu1 %v17621_v35 }
 0x1e3   : > { %v1223_v55 = vadd.f32 %v14353_v51, %v1198_v52  ;;  %v1240_v57 = vmax.f32 %v1222_v50, 0.0 }
 0x1e5   : > { %v1241_v58 = vmax.f32 %v1223_v55, 0.0 }
 0x1e6   : > { %v1152_v26 = vpop.f32.mrb[124].mxu0 }
 0x1e7   : > { %v14389_v60 = vpack.c.bf16 %v1241_v58, %v1240_v57  ;;  %v1199_v62 = vmax.f32 %v14330_v33, %v1152_v26  ;;  %v11966_v63 = vpop.f32.mrb[125].mxu0  ;;  %v13258_v58 = vld [vmem:[%s17611_s3] ss:$8 sps:$4 sm:$0xff]   ;;  %v13267_v26 = vld [vmem:[%s17611_s3 + $0xd4] ss:$8 sps:$4 sm:$0xff]  }
 0x1e8   : > { %v1155_v29 = vpop.f32.mrb[126].mxu0  ;;  %v13269_v63 = vld [vmem:[%s17611_s3 + $0xd0] ss:$8 sps:$4 sm:$0xff]  }
 0x1e9   : > { %v1224_v2 = vadd.f32 %v14353_v51, %v1199_v62  ;;  %v1200_v4 = vmax.f32 %v14332_v38, %v1155_v29  ;;  %v11967_v5 = vpop.f32.mrb[127].mxu0  ;;  %1325 = vmatpush1.bf16.msra.mxu0 %v14389_v60  ;;  %2100 = vmatpush1.bf16.msra.mxu1 %v14389_v60  ;;  %v13266_v62 = vld [vmem:[%s17611_s3 + $0x10] ss:$8 sps:$4 sm:$0xff]   ;;  %v13270_v29 = vld [vmem:[%s17611_s3 + $0x24] ss:$8 sps:$4 sm:$0xff]  }
 0x1ea   : > { %1326 = vmatprep.subr.bf16.mxu0 %v17621_v35  ;;  %2101 = vmatprep.subr.bf16.mxu1 %v17621_v35  ;;  %v13275_v5 = vld [vmem:[%s17611_s3 + $0xe0] ss:$8 sps:$4 sm:$0xff]  }
 0x1eb   : > { %v1225_v7 = vadd.f32 %v14353_v51, %v1200_v4  ;;  %v1242_v54 = vmax.f32 %v1224_v2, 0.0  ;;  %v13273_v2 = vld [vmem:[%s17611_s3 + $0xe4] ss:$8 sps:$4 sm:$0xff]   ;;  %v13272_v4 = vld [vmem:[%s17611_s3 + $0x20] ss:$8 sps:$4 sm:$0xff]  }
 0x1ed   : > { %v1243_v9 = vmax.f32 %v1225_v7, 0.0  ;;  %v13276_v7 = vld [vmem:[%s17611_s3 + $0x34] ss:$8 sps:$4 sm:$0xff]  }
 0x1ee   : > { %v1160_v33 = vpop.f32.mrb[128].mxu0 }
 0x1ef   : > { %v14399_v56 = vpack.c.bf16 %v1243_v9, %v1242_v54  ;;  %v1201_v0 = vmax.f32 %v14334_v43, %v1160_v33  ;;  %v11970_v59 = vpop.f32.mrb[129].mxu0  ;;  %v13279_v54 = vld [vmem:[%s17611_s3 + $0xf4] ss:$8 sps:$4 sm:$0xff]   ;;  %v13278_v9 = vld [vmem:[%s17611_s3 + $0x30] ss:$8 sps:$4 sm:$0xff]  }
 0x1f0   : > { %v1163_v38 = vpop.f32.mrb[130].mxu0  ;;  %v13281_v33 = vld [vmem:[%s17611_s3 + $0xf0] ss:$8 sps:$4 sm:$0xff]   ;;  %v13287_v59 = vld [vmem:[%s17611_s3 + $0x104] ss:$8 sps:$4 sm:$0xff]  }
 0x1f1   : > { %v1226_v12 = vadd.f32 %v14353_v51, %v1201_v0  ;;  %v1202_v3 = vmax.f32 %v14336_v32, %v1163_v38  ;;  %v11971_v61 = vpop.f32.mrb[131].mxu0  ;;  %1327 = vmatpush1.bf16.msra.mxu0 %v14399_v56  ;;  %2102 = vmatpush1.bf16.msra.mxu1 %v14399_v56  ;;  %v13284_v0 = vld [vmem:[%s17611_s3 + $0x44] ss:$8 sps:$4 sm:$0xff]   ;;  %v13282_v38 = vld [vmem:[%s17611_s3 + $0x40] ss:$8 sps:$4 sm:$0xff]  }
 0x1f2   : > { %1328 = vmatprep.subr.bf16.mxu0 %v17621_v35  ;;  %2103 = vmatprep.subr.bf16.mxu1 %v17621_v35  ;;  %v13291_v61 = vld [vmem:[%s17611_s3 + $0x114] ss:$8 sps:$4 sm:$0xff]  }
 0x1f3   : > { %v1227_v15 = vadd.f32 %v14353_v51, %v1202_v3  ;;  %v1244_v6 = vmax.f32 %v1226_v12, 0.0  ;;  %v13285_v12 = vld [vmem:[%s17611_s3 + $0x100] ss:$8 sps:$4 sm:$0xff]   ;;  %v13288_v3 = vld [vmem:[%s17611_s3 + $0x54] ss:$8 sps:$4 sm:$0xff]  }
 0x1f5   : > { %v1245_v8 = vmax.f32 %v1227_v15, 0.0  ;;  %v13290_v15 = vld [vmem:[%s17611_s3 + $0x50] ss:$8 sps:$4 sm:$0xff]  }
 0x1f6   : > { %v1168_v43 = vpop.f32.mrb[132].mxu0 }
 0x1f7   : > { %v14409_v21 = vpack.c.bf16 %v1245_v8, %v1244_v6  ;;  %v1203_v11 = vmax.f32 %v14338_v36, %v1168_v43  ;;  %v11974_v10 = vpop.f32.mrb[133].mxu0  ;;  %v13293_v6 = vld [vmem:[%s17611_s3 + $0x110] ss:$8 sps:$4 sm:$0xff]   ;;  %v13294_v8 = vld [vmem:[%s17611_s3 + $0x64] ss:$8 sps:$4 sm:$0xff]  }
 0x1f8   : > { %v1171_v32 = vpop.f32.mrb[134].mxu0  ;;  %v13297_v43 = vld [vmem:[%s17611_s3 + $0x124] ss:$8 sps:$4 sm:$0xff]   ;;  %v13299_v10 = vld [vmem:[%s17611_s3 + $0x120] ss:$8 sps:$4 sm:$0xff]  }
 0x1f9   : > { %v1228_v24 = vadd.f32 %v14353_v51, %v1203_v11  ;;  %v1204_v25 = vmax.f32 %v14340_v39, %v1171_v32  ;;  %v11975_v13 = vpop.f32.mrb[135].mxu0  ;;  %1329 = vmatpush1.bf16.msra.mxu0 %v14409_v21  ;;  %2104 = vmatpush1.bf16.msra.mxu1 %v14409_v21  ;;  %v13296_v11 = vld [vmem:[%s17611_s3 + $0x60] ss:$8 sps:$4 sm:$0xff]   ;;  %v13300_v32 = vld [vmem:[%s17611_s3 + $0x74] ss:$8 sps:$4 sm:$0xff]  }
 0x1fa   : > { %1330 = vmatprep.subr.bf16.mxu0 %v17621_v35  ;;  %2105 = vmatprep.subr.bf16.mxu1 %v17621_v35  ;;  %v13305_v13 = vld [vmem:[%s17611_s3 + $0x130] ss:$8 sps:$4 sm:$0xff]  }
 0x1fb   : > { %v1229_v17 = vadd.f32 %v14353_v51, %v1204_v25  ;;  %v1246_v20 = vmax.f32 %v1228_v24, 0.0  ;;  %v13303_v24 = vld [vmem:[%s17611_s3 + $0x134] ss:$8 sps:$4 sm:$0xff]   ;;  %v13302_v25 = vld [vmem:[%s17611_s3 + $0x70] ss:$8 sps:$4 sm:$0xff]  }
 0x1fd   : > { %v1247_v16 = vmax.f32 %v1229_v17, 0.0  ;;  %v13308_v17 = vld [vmem:[%s17611_s3 + $0x144] ss:$8 sps:$4 sm:$0xff]  }
 0x1fe   : > { %v1176_v36 = vpop.f32.mrb[136].mxu0 }
 0x1ff   : > { %v14419_v27 = vpack.c.bf16 %v1247_v16, %v1246_v20  ;;  %v1205_v28 = vmax.f32 %v14342_v42, %v1176_v36  ;;  %v11978_v19 = vpop.f32.mrb[137].mxu0  ;;  %v13306_v20 = vld [vmem:[%s17611_s3 + $0x140] ss:$8 sps:$4 sm:$0xff]   ;;  %v13309_v16 = vld [vmem:[%s17611_s3 + $0x154] ss:$8 sps:$4 sm:$0xff]  }
 0x200   : > { %v1179_v39 = vpop.f32.mrb[138].mxu0  ;;  %v13311_v36 = vld [vmem:[%s17611_s3 + $0x150] ss:$8 sps:$4 sm:$0xff]   ;;  %v13314_v19 = vld [vmem:[%s17611_s3 + $0x160] ss:$8 sps:$4 sm:$0xff]  }
 0x201   : > { %v1230_v30 = vadd.f32 %v14353_v51, %v1205_v28  ;;  %v1206_v31 = vmax.f32 %v14344_v45, %v1179_v39  ;;  %v11979_v34 = vpop.f32.mrb[139].mxu0  ;;  %1331 = vmatpush1.bf16.msra.mxu0 %v14419_v27  ;;  %2106 = vmatpush1.bf16.msra.mxu1 %v14419_v27  ;;  %v13312_v28 = vld [vmem:[%s17611_s3 + $0x164] ss:$8 sps:$4 sm:$0xff]   ;;  %v13315_v39 = vld [vmem:[%s17611_s3 + $0x174] ss:$8 sps:$4 sm:$0xff]  }
 0x202   : > { %1332 = vmatprep.subr.bf16.mxu0 %v17621_v35  ;;  %2107 = vmatprep.subr.bf16.mxu1 %v17621_v35  ;;  %v13357_v34 = vld [vmem:[%s17612_s4 + $0x40] sm:$0xff]  }
 0x203   : > { %v1231_v37 = vadd.f32 %v14353_v51, %v1206_v31  ;;  %v1248_v40 = vmax.f32 %v1230_v30, 0.0  ;;  %v13317_v30 = vld [vmem:[%s17611_s3 + $0x170] ss:$8 sps:$4 sm:$0xff]   ;;  %v13320_v31 = vld [vmem:[%s17611_s3 + $0x184] ss:$8 sps:$4 sm:$0xff]  }
 0x205   : > { %v1249_v41 = vmax.f32 %v1231_v37, 0.0  ;;  %v13361_v37 = vld [vmem:[%s17612_s4 + $0x48] sm:$0xff]  }
 0x206   : > { %v1184_v42 = vpop.f32.mrb[140].mxu0 }
 0x207   : > { %v14429_v22 = vpack.c.bf16 %v1249_v41, %v1248_v40  ;;  %v1207_v46 = vmax.f32 %v14346_v48, %v1184_v42  ;;  %v11982_v47 = vpop.f32.mrb[141].mxu0  ;;  %v13318_v40 = vld [vmem:[%s17611_s3 + $0x180] ss:$8 sps:$4 sm:$0xff]   ;;  %v13321_v41 = vld [vmem:[%s17611_s3 + $0x194] ss:$8 sps:$4 sm:$0xff]  }
 0x208   : > { %v1187_v45 = vpop.f32.mrb[142].mxu0  ;;  %v13362_v42 = vld [vmem:[%s17612_s4 + $0x50] sm:$0xff]  }
 0x209   : > { %v1232_v14 = vadd.f32 %v14353_v51, %v1207_v46  ;;  %v1208_v50 = vmax.f32 %v14348_v49, %v1187_v45  ;;  %v11983_v52 = vpop.f32.mrb[143].mxu0  ;;  %1333 = vmatpush1.bf16.msra.mxu0 %v14429_v22  ;;  %2108 = vmatpush1.bf16.msra.mxu1 %v14429_v22  ;;  %v13261_v49 = vld [vmem:[%s17611_s3 + $0xc0] ss:$8 sps:$4 sm:$0xff]   ;;  %v13366_v46 = vld [vmem:[%s17612_s4 + $0x58] sm:$0xff]   ;;  %v13324_v45 = vld [vmem:[%s17611_s3 + $0x1a4] ss:$8 sps:$4 sm:$0xff]  }
 0x20a   : > { %1334 = vmatprep.subr.bf16.mxu0 %v17621_v35  ;;  %2109 = vmatprep.subr.bf16.mxu1 %v17621_v35  ;;  %v13323_v47 = vld [vmem:[%s17611_s3 + $0x190] ss:$8 sps:$4 sm:$0xff]   ;;  %v13326_v52 = vld [vmem:[%s17611_s3 + $0x1a0] ss:$8 sps:$4 sm:$0xff]  }
 0x20b   : > { %v1233_v53 = vadd.f32 %v14353_v51, %v1208_v50  ;;  %v1250_v55 = vmax.f32 %v1232_v14, 0.0  ;;  %v13264_v51 = vld [vmem:[%s17611_s3 + $0x14] ss:$8 sps:$4 sm:$0xff]   ;;  %v13367_v14 = vld [vmem:[%s17612_s4 + $0x60] sm:$0xff]   ;;  %v13371_v50 = vld [vmem:[%s17612_s4 + $0x68] sm:$0xff]  }
 0x20d   : > { %v1251_v57 = vmax.f32 %v1233_v53, 0.0  ;;  %v13327_v53 = vld [vmem:[%s17611_s3 + $0x1b4] ss:$8 sps:$4 sm:$0xff]  }
 0x20f   : > { %v14439_v48 = vpack.c.bf16 %v1251_v57, %v1250_v55  ;;  %v13372_v55 = vld [vmem:[%s17612_s4 + $0x70] sm:$0xff]   ;;  %v13376_v57 = vld [vmem:[%s17612_s4 + $0x78] sm:$0xff]  }
 0x211   : > { %1335 = vmatpush1.bf16.msra.mxu0 %v14439_v48  ;;  %2110 = vmatpush1.bf16.msra.mxu1 %v14439_v48 }
 0x212   : > { %1460 = vmatprep.subr.bf16.mxu0 %v17621_v35  ;;  %2357 = vmatprep.subr.bf16.mxu1 %v17621_v35 }
 0x214   : > { %1351 = vmatmul.mubr.bf16.vlgmr.msra.gmra.mrb[144].mxu0 %v13258_v58  ;;  %2126 = vmatmul.mubr.bf16.vlgmr.msra.gmra.mrb[0].mxu1 %v13261_v49  ;;  %v13329_v58 = vld [vmem:[%s17611_s3 + $0x1b0] ss:$8 sps:$4 sm:$0xff]   ;;  %v13332_v49 = vld [vmem:[%s17611_s3 + $0x1c4] ss:$8 sps:$4 sm:$0xff]  }
 0x215   : > { %1461 = vmatpush1.bf16.msra.mxu0 %v14359_v18  ;;  %2358 = vmatpush1.bf16.msra.mxu1 %v14359_v18 }
 0x216   : > { %1462 = vmatprep.subr.bf16.mxu0 %v17621_v35  ;;  %2359 = vmatprep.subr.bf16.mxu1 %v17621_v35 }
 0x217   : > { %9880 = vmatprep.mubr.msk.bf16.mxu0 %vm1305_vm2, %v13264_v51  ;;  %9996 = vmatprep.mubr.msk.bf16.mxu1 %vm1305_vm2, %v13267_v26  ;;  %v14717_v51 = vld [vmem:[%s17612_s4] sm:$0xff]  }
 0x218   : > { %v13330_v26 = vld [vmem:[%s17611_s3 + $0x1c0] ss:$8 sps:$4 sm:$0xff]  }
 0x219   : > { %1463 = vmatpush1.bf16.msra.mxu0 %v14369_v23  ;;  %2360 = vmatpush1.bf16.msra.mxu1 %v14369_v23 }
 0x21a   : > { %1464 = vmatprep.subr.bf16.mxu0 %v17621_v35  ;;  %2361 = vmatprep.subr.bf16.mxu1 %v17621_v35 }
 0x21c   : > { %1359 = vmatmul.mubr.bf16.gmra.mrb[148].mxu0 %v13266_v62  ;;  %2134 = vmatmul.mubr.bf16.gmra.mrb[4].mxu1 %v13269_v63  ;;  %v13333_v62 = vld [vmem:[%s17611_s3 + $0x1d4] ss:$8 sps:$4 sm:$0xff]   ;;  %v13335_v63 = vld [vmem:[%s17611_s3 + $0x1d0] ss:$8 sps:$4 sm:$0xff]  }
 0x21d   : > { %1465 = vmatpush1.bf16.msra.mxu0 %v14379_v44  ;;  %2362 = vmatpush1.bf16.msra.mxu1 %v14379_v44 }
 0x21e   : > { %1466 = vmatprep.subr.bf16.mxu0 %v17621_v35  ;;  %2363 = vmatprep.subr.bf16.mxu1 %v17621_v35 }
 0x21f   : > { %9881 = vmatprep.mubr.msk.bf16.mxu0 %vm1305_vm2, %v13270_v29  ;;  %9997 = vmatprep.mubr.msk.bf16.mxu1 %vm1305_vm2, %v13273_v2  ;;  %v13336_v29 = vld [vmem:[%s17611_s3 + $0x1e4] ss:$8 sps:$4 sm:$0xff]   ;;  %v13338_v2 = vld [vmem:[%s17611_s3 + $0x1e0] ss:$8 sps:$4 sm:$0xff]  }
 0x221   : > { %1467 = vmatpush1.bf16.msra.mxu0 %v14389_v60  ;;  %2364 = vmatpush1.bf16.msra.mxu1 %v14389_v60 }
 0x222   : > { %1468 = vmatprep.subr.bf16.mxu0 %v17621_v35  ;;  %2365 = vmatprep.subr.bf16.mxu1 %v17621_v35 }
 0x224   : > { %1367 = vmatmul.mubr.bf16.gmra.mrb[152].mxu0 %v13272_v4  ;;  %2142 = vmatmul.mubr.bf16.gmra.mrb[8].mxu1 %v13275_v5  ;;  %v13339_v4 = vld [vmem:[%s17611_s3 + $0x1f4] ss:$8 sps:$4 sm:$0xff]   ;;  %v13341_v5 = vld [vmem:[%s17611_s3 + $0x1f0] ss:$8 sps:$4 sm:$0xff]  }
 0x225   : > { %1469 = vmatpush1.bf16.msra.mxu0 %v14399_v56  ;;  %2366 = vmatpush1.bf16.msra.mxu1 %v14399_v56 }
 0x226   : > { %1470 = vmatprep.subr.bf16.mxu0 %v17621_v35  ;;  %2367 = vmatprep.subr.bf16.mxu1 %v17621_v35 }
 0x227   : > { %9882 = vmatprep.mubr.msk.bf16.mxu0 %vm1305_vm2, %v13276_v7  ;;  %9998 = vmatprep.mubr.msk.bf16.mxu1 %vm1305_vm2, %v13279_v54  ;;  %v13344_v7 = vld [vmem:[%s17611_s3 + $0x204] ss:$8 sps:$4 sm:$0xff]   ;;  %v13342_v54 = vld [vmem:[%s17611_s3 + $0x200] ss:$8 sps:$4 sm:$0xff]  }
 0x229   : > { %1471 = vmatpush1.bf16.msra.mxu0 %v14409_v21  ;;  %2368 = vmatpush1.bf16.msra.mxu1 %v14409_v21 }
 0x22a   : > { %1472 = vmatprep.subr.bf16.mxu0 %v17621_v35  ;;  %2369 = vmatprep.subr.bf16.mxu1 %v17621_v35 }
 0x22c   : > { %1375 = vmatmul.mubr.bf16.gmra.mrb[156].mxu0 %v13278_v9  ;;  %2150 = vmatmul.mubr.bf16.gmra.mrb[12].mxu1 %v13281_v33  ;;  %v13345_v9 = vld [vmem:[%s17611_s3 + $0x214] ss:$8 sps:$4 sm:$0xff]   ;;  %v13347_v33 = vld [vmem:[%s17611_s3 + $0x210] ss:$8 sps:$4 sm:$0xff]  }
 0x22d   : > { %1473 = vmatpush1.bf16.msra.mxu0 %v14419_v27  ;;  %2370 = vmatpush1.bf16.msra.mxu1 %v14419_v27 }
 0x22e   : > { %1474 = vmatprep.subr.bf16.mxu0 %v17621_v35  ;;  %2371 = vmatprep.subr.bf16.mxu1 %v17621_v35 }
 0x22f   : > { %9899 = vmatprep.mubr.msk.bf16.mxu0 %vm1305_vm2, %v13284_v0  ;;  %10039 = vmatprep.mubr.msk.bf16.mxu1 %vm1305_vm2, %v13287_v59  ;;  %v13348_v0 = vld [vmem:[%s17611_s3 + $0x224] ss:$8 sps:$4 sm:$0xff]   ;;  %v13350_v59 = vld [vmem:[%s17611_s3 + $0x220] ss:$8 sps:$4 sm:$0xff]  }
 0x231   : > { %1475 = vmatpush1.bf16.msra.mxu0 %v14429_v22  ;;  %2372 = vmatpush1.bf16.msra.mxu1 %v14429_v22 }
 0x232   : > { %1476 = vmatprep.subr.bf16.mxu0 %v17621_v35  ;;  %2373 = vmatprep.subr.bf16.mxu1 %v17621_v35 }
 0x235   : > { %1477 = vmatpush1.bf16.msra.mxu0 %v14439_v48  ;;  %2374 = vmatpush1.bf16.msra.mxu1 %v14439_v48 }
 0x236   : > { %2621 = vmatprep.subr.bf16.mxu1 %v17621_v35  ;;  %11984 = vmatprep.subr.bf16.mxu0 %v13357_v34 }
 0x238   : > { %1493 = vmatmul.mubr.bf16.vlgmr.msra.gmra.mrb[160].mxu0 %v13282_v38  ;;  %2390 = vmatmul.mubr.bf16.vlgmr.msra.gmra.mrb[16].mxu1 %v13285_v12  ;;  %v13351_v38 = vld [vmem:[%s17611_s3 + $0x234] ss:$8 sps:$4 sm:$0xff]   ;;  %v13353_v12 = vld [vmem:[%s17611_s3 + $0x230] ss:$8 sps:$4 sm:$0xff]  }
 0x239   : > { %2622 = vmatpush1.bf16.msra.mxu1 %v14359_v18  ;;  %9900 = vmatprep.mubr.msk.bf16.mxu0 %vm1305_vm2, %v13288_v3  ;;  %v13356_v3 = vld [vmem:[%s17611_s3 + $0x244] ss:$8 sps:$4 sm:$0xff]  }
 0x23a   : > { %2623 = vmatprep.subr.bf16.mxu1 %v17621_v35  ;;  %10040 = vmatprep.mubr.msk.bf16.mxu1 %vm1305_vm2, %v13291_v61 }
 0x23b   : > { %11985 = vmatpush3.bf16.msra.mxu0 %v13357_v34 }
 0x23c   : > { %11986 = vmatprep.subr.bf16.mxu0 %v13361_v37 }
 0x23d   : > { %2624 = vmatpush1.bf16.msra.mxu1 %v14369_v23 }
 0x23e   : > { %2625 = vmatprep.subr.bf16.mxu1 %v17621_v35 }
 0x23f   : > { %11987 = vmatpush3.bf16.msra.mxu0 %v13361_v37 }
 0x240   : > { %1501 = vmatmul.mubr.bf16.gmra.mrb[164].mxu0 %v13290_v15  ;;  %2398 = vmatmul.mubr.bf16.gmra.mrb[20].mxu1 %v13293_v6  ;;  %v13354_v6 = vld [vmem:[%s17611_s3 + $0x240] ss:$8 sps:$4 sm:$0xff]  }
 0x241   : > { %2626 = vmatpush1.bf16.msra.mxu1 %v14379_v44  ;;  %9901 = vmatprep.mubr.msk.bf16.mxu0 %vm1305_vm2, %v13294_v8 }
 0x242   : > { %2627 = vmatprep.subr.bf16.mxu1 %v17621_v35  ;;  %10041 = vmatprep.mubr.msk.bf16.mxu1 %vm1305_vm2, %v13297_v43  ;;  %v13358_v43 = vld [vmem:[%s17611_s3 + $0x254] ss:$8 sps:$4 sm:$0xff]  }
 0x243   : > { %11988 = vmatprep.subr.bf16.mxu0 %v13362_v42 }
 0x244   : > { %11989 = vmatpush3.bf16.msra.mxu0 %v13362_v42 }
 0x245   : > { %2628 = vmatpush1.bf16.msra.mxu1 %v14389_v60  ;;  %11990 = vmatprep.subr.bf16.mxu0 %v13366_v46 }
 0x246   : > { %2629 = vmatprep.subr.bf16.mxu1 %v17621_v35 }
 0x248   : > { %1509 = vmatmul.mubr.bf16.gmra.mrb[168].mxu0 %v13296_v11  ;;  %2406 = vmatmul.mubr.bf16.gmra.mrb[24].mxu1 %v13299_v10 }
 0x249   : > { %2630 = vmatpush1.bf16.msra.mxu1 %v14399_v56  ;;  %9902 = vmatprep.mubr.msk.bf16.mxu0 %vm1305_vm2, %v13300_v32 }
 0x24a   : > { %2631 = vmatprep.subr.bf16.mxu1 %v17621_v35  ;;  %10042 = vmatprep.mubr.msk.bf16.mxu1 %vm1305_vm2, %v13303_v24 }
 0x24b   : > { %11991 = vmatpush3.bf16.msra.mxu0 %v13366_v46  ;;  %v13375_v46 = vld [vmem:[%s17611_s3 + $0x284] ss:$8 sps:$4 sm:$0xff]  }
 0x24c   : > { %11992 = vmatprep.subr.bf16.mxu0 %v13367_v14 }
 0x24d   : > { %2632 = vmatpush1.bf16.msra.mxu1 %v14409_v21 }
 0x24e   : > { %2633 = vmatprep.subr.bf16.mxu1 %v17621_v35 }
 0x24f   : > { %11993 = vmatpush3.bf16.msra.mxu0 %v13367_v14 }
 0x250   : > { %1517 = vmatmul.mubr.bf16.gmra.mrb[172].mxu0 %v13302_v25  ;;  %2414 = vmatmul.mubr.bf16.gmra.mrb[28].mxu1 %v13305_v13  ;;  %v13360_v25 = vld [vmem:[%s17611_s3 + $0x250] ss:$8 sps:$4 sm:$0xff]  }
 0x251   : > { %2634 = vmatpush1.bf16.msra.mxu1 %v14419_v27  ;;  %10083 = vmatprep.mubr.msk.bf16.mxu1 %vm1305_vm2, %v13308_v17  ;;  %v13363_v17 = vld [vmem:[%s17611_s3 + $0x264] ss:$8 sps:$4 sm:$0xff]  }
 0x252   : > { %2635 = vmatprep.subr.bf16.mxu1 %v17621_v35  ;;  %11994 = vmatprep.subr.bf16.mxu0 %v13371_v50 }
 0x253   : > { %11995 = vmatpush3.bf16.msra.mxu0 %v13371_v50 }
 0x254   : > { %11996 = vmatprep.subr.bf16.mxu0 %v13372_v55 }
 0x255   : > { %2636 = vmatpush1.bf16.msra.mxu1 %v14429_v22 }
 0x256   : > { %2637 = vmatprep.subr.bf16.mxu1 %v17621_v35 }
 0x257   : > { %11997 = vmatpush3.bf16.msra.mxu0 %v13372_v55  ;;  %v13379_v55 = vld [vmem:[%s17611_s3 + $0x294] ss:$8 sps:$4 sm:$0xff]  }
 0x258   : > { %11998 = vmatprep.subr.bf16.mxu0 %v13376_v57 }
 0x259   : > { %2638 = vmatpush1.bf16.msra.mxu1 %v14439_v48 }
 0x25a   : > { %2885 = vmatprep.subr.bf16.mxu1 %v17621_v35 }
 0x25b   : > { %11999 = vmatpush3.bf16.msra.mxu0 %v13376_v57 }
 0x25c   : > { %2654 = vmatmul.mubr.bf16.vlgmr.msra.gmra.mrb[32].mxu1 %v13306_v20  ;;  %12008 = vmatprep.subr.bf16.mxu0 %v14717_v51 }
 0x25d   : > { %2886 = vmatpush1.bf16.msra.mxu1 %v14359_v18  ;;  %10084 = vmatprep.mubr.msk.bf16.mxu1 %vm1305_vm2, %v13309_v16 }
 0x25e   : > { %2887 = vmatprep.subr.bf16.mxu1 %v17621_v35 }
 0x261   : > { %2888 = vmatpush1.bf16.msra.mxu1 %v14369_v23 }
 0x262   : > { %2889 = vmatprep.subr.bf16.mxu1 %v17621_v35 }
 0x264   : > { %2662 = vmatmul.mubr.bf16.gmra.mrb[36].mxu1 %v13311_v36 }
 0x265   : > { %2890 = vmatpush1.bf16.msra.mxu1 %v14379_v44  ;;  %10085 = vmatprep.mubr.msk.bf16.mxu1 %vm1305_vm2, %v13312_v28 }
 0x266   : > { %2891 = vmatprep.subr.bf16.mxu1 %v17621_v35 }
 0x269   : > { %2892 = vmatpush1.bf16.msra.mxu1 %v14389_v60 }
 0x26a   : > { %2893 = vmatprep.subr.bf16.mxu1 %v17621_v35 }
 0x26c   : > { %2670 = vmatmul.mubr.bf16.gmra.mrb[40].mxu1 %v13314_v19  ;;  %v13365_v19 = vld [vmem:[%s17611_s3 + $0x260] ss:$8 sps:$4 sm:$0xff]  }
 0x26d   : > { %2894 = vmatpush1.bf16.msra.mxu1 %v14399_v56  ;;  %10086 = vmatprep.mubr.msk.bf16.mxu1 %vm1305_vm2, %v13315_v39 }
 0x26e   : > { %2895 = vmatprep.subr.bf16.mxu1 %v17621_v35 }
 0x271   : > { %2896 = vmatpush1.bf16.msra.mxu1 %v14409_v21 }
 0x272   : > { %2897 = vmatprep.subr.bf16.mxu1 %v17621_v35 }
 0x274   : > { %2678 = vmatmul.mubr.bf16.gmra.mrb[44].mxu1 %v13317_v30  ;;  %v13368_v30 = vld [vmem:[%s17611_s3 + $0x274] ss:$8 sps:$4 sm:$0xff]  }
 0x275   : > { %2898 = vmatpush1.bf16.msra.mxu1 %v14419_v27  ;;  %10127 = vmatprep.mubr.msk.bf16.mxu1 %vm1305_vm2, %v13320_v31 }
 0x276   : > { %2899 = vmatprep.subr.bf16.mxu1 %v17621_v35 }
 0x279   : > { %2900 = vmatpush1.bf16.msra.mxu1 %v14429_v22 }
 0x27a   : > { %2901 = vmatprep.subr.bf16.mxu1 %v17621_v35 }
 0x27d   : > { %2902 = vmatpush1.bf16.msra.mxu1 %v14439_v48 }
 0x27e   : > { %3149 = vmatprep.subr.bf16.mxu1 %v17621_v35 }
 0x280   : > { %2918 = vmatmul.mubr.bf16.vlgmr.msra.gmra.mrb[48].mxu1 %v13318_v40 }
 0x281   : > { %3150 = vmatpush1.bf16.msra.mxu1 %v14359_v18  ;;  %10128 = vmatprep.mubr.msk.bf16.mxu1 %vm1305_vm2, %v13321_v41  ;;  %v13370_v41 = vld [vmem:[%s17611_s3 + $0x270] ss:$8 sps:$4 sm:$0xff]  }
 0x282   : > { %3151 = vmatprep.subr.bf16.mxu1 %v17621_v35 }
 0x285   : > { %3152 = vmatpush1.bf16.msra.mxu1 %v14369_v23 }
 0x286   : > { %3153 = vmatprep.subr.bf16.mxu1 %v17621_v35 }
 0x288   : > { %2926 = vmatmul.mubr.bf16.gmra.mrb[52].mxu1 %v13323_v47 }
 0x289   : > { %3154 = vmatpush1.bf16.msra.mxu1 %v14379_v44  ;;  %10129 = vmatprep.mubr.msk.bf16.mxu1 %vm1305_vm2, %v13324_v45 }
 0x28a   : > { %3155 = vmatprep.subr.bf16.mxu1 %v17621_v35 }
 0x28d   : > { %3156 = vmatpush1.bf16.msra.mxu1 %v14389_v60 }
 0x28e   : > { %3157 = vmatprep.subr.bf16.mxu1 %v17621_v35 }
 0x290   : > { %2934 = vmatmul.mubr.bf16.gmra.mrb[56].mxu1 %v13326_v52  ;;  %v13373_v52 = vld [vmem:[%s17611_s3 + $0x280] ss:$8 sps:$4 sm:$0xff]  }
 0x291   : > { %3158 = vmatpush1.bf16.msra.mxu1 %v14399_v56  ;;  %10130 = vmatprep.mubr.msk.bf16.mxu1 %vm1305_vm2, %v13327_v53 }
 0x292   : > { %3159 = vmatprep.subr.bf16.mxu1 %v17621_v35 }
 0x295   : > { %3160 = vmatpush1.bf16.msra.mxu1 %v14409_v21 }
 0x296   : > { %3161 = vmatprep.subr.bf16.mxu1 %v17621_v35 }
 0x298   : > { %2942 = vmatmul.mubr.bf16.gmra.mrb[60].mxu1 %v13329_v58 }
 0x299   : > { %3162 = vmatpush1.bf16.msra.mxu1 %v14419_v27  ;;  %10171 = vmatprep.mubr.msk.bf16.mxu1 %vm1305_vm2, %v13332_v49 }
 0x29a   : > { %3163 = vmatprep.subr.bf16.mxu1 %v17621_v35 }
 0x29d   : > { %3164 = vmatpush1.bf16.msra.mxu1 %v14429_v22 }
 0x29e   : > { %3165 = vmatprep.subr.bf16.mxu1 %v17621_v35 }
 0x2a1   : > { %3166 = vmatpush1.bf16.msra.mxu1 %v14439_v48 }
 0x2a2   : > { %3413 = vmatprep.subr.bf16.mxu1 %v17621_v35 }
 0x2a4   : > { %3182 = vmatmul.mubr.bf16.vlgmr.msra.gmra.mrb[64].mxu1 %v13330_v26 }
 0x2a5   : > { %3414 = vmatpush1.bf16.msra.mxu1 %v14359_v18  ;;  %10172 = vmatprep.mubr.msk.bf16.mxu1 %vm1305_vm2, %v13333_v62  ;;  %v13381_v62 = vld [vmem:[%s17611_s3 + $0x290] ss:$8 sps:$4 sm:$0xff]  }
 0x2a6   : > { %3415 = vmatprep.subr.bf16.mxu1 %v17621_v35 }
 0x2a9   : > { %3416 = vmatpush1.bf16.msra.mxu1 %v14369_v23 }
 0x2aa   : > { %3417 = vmatprep.subr.bf16.mxu1 %v17621_v35 }
 0x2ac   : > { %3190 = vmatmul.mubr.bf16.gmra.mrb[68].mxu1 %v13335_v63 }
 0x2ad   : > { %3418 = vmatpush1.bf16.msra.mxu1 %v14379_v44  ;;  %10173 = vmatprep.mubr.msk.bf16.mxu1 %vm1305_vm2, %v13336_v29 }
 0x2ae   : > { %3419 = vmatprep.subr.bf16.mxu1 %v17621_v35 }
 0x2b1   : > { %3420 = vmatpush1.bf16.msra.mxu1 %v14389_v60 }
 0x2b2   : > { %3421 = vmatprep.subr.bf16.mxu1 %v17621_v35 }
 0x2b4   : > { %3198 = vmatmul.mubr.bf16.gmra.mrb[72].mxu1 %v13338_v2 }
 0x2b5   : > { %3422 = vmatpush1.bf16.msra.mxu1 %v14399_v56  ;;  %10174 = vmatprep.mubr.msk.bf16.mxu1 %vm1305_vm2, %v13339_v4  ;;  %v13378_v4 = vld [vmem:[%s17612_s4 + $0x8] sm:$0xff]  }
 0x2b6   : > { %3423 = vmatprep.subr.bf16.mxu1 %v17621_v35 }
 0x2b9   : > { %3424 = vmatpush1.bf16.msra.mxu1 %v14409_v21 }
 0x2ba   : > { %3425 = vmatprep.subr.bf16.mxu1 %v17621_v35 }
 0x2bc   : > { %3206 = vmatmul.mubr.bf16.gmra.mrb[76].mxu1 %v13341_v5  ;;  %v13384_v5 = vld [vmem:[%s17611_s3 + $0x2a4] ss:$8 sps:$4 sm:$0xff]  }
 0x2bd   : > { %3426 = vmatpush1.bf16.msra.mxu1 %v14419_v27  ;;  %10215 = vmatprep.mubr.msk.bf16.mxu1 %vm1305_vm2, %v13344_v7  ;;  %v13382_v7 = vld [vmem:[%s17612_s4 + $0x10] sm:$0xff]  }
 0x2be   : > { %3427 = vmatprep.subr.bf16.mxu1 %v17621_v35 }
 0x2c1   : > { %3428 = vmatpush1.bf16.msra.mxu1 %v14429_v22 }
 0x2c2   : > { %3429 = vmatprep.subr.bf16.mxu1 %v17621_v35 }
 0x2c5   : > { %3430 = vmatpush1.bf16.msra.mxu1 %v14439_v48 }
 0x2c6   : > { %3677 = vmatprep.subr.bf16.mxu1 %v17621_v35 }
 0x2c8   : > { %3446 = vmatmul.mubr.bf16.vlgmr.msra.gmra.mrb[80].mxu1 %v13342_v54 }
 0x2c9   : > { %3678 = vmatpush1.bf16.msra.mxu1 %v14359_v18  ;;  %10216 = vmatprep.mubr.msk.bf16.mxu1 %vm1305_vm2, %v13345_v9 }
 0x2ca   : > { %3679 = vmatprep.subr.bf16.mxu1 %v17621_v35 }
 0x2cd   : > { %3680 = vmatpush1.bf16.msra.mxu1 %v14369_v23 }
 0x2ce   : > { %3681 = vmatprep.subr.bf16.mxu1 %v17621_v35 }
 0x2d0   : > { %3454 = vmatmul.mubr.bf16.gmra.mrb[84].mxu1 %v13347_v33  ;;  %v13386_v33 = vld [vmem:[%s17611_s3 + $0x2a0] ss:$8 sps:$4 sm:$0xff]  }
 0x2d1   : > { %3682 = vmatpush1.bf16.msra.mxu1 %v14379_v44  ;;  %10217 = vmatprep.mubr.msk.bf16.mxu1 %vm1305_vm2, %v13348_v0 }
 0x2d2   : > { %3683 = vmatprep.subr.bf16.mxu1 %v17621_v35 }
 0x2d5   : > { %3684 = vmatpush1.bf16.msra.mxu1 %v14389_v60 }
 0x2d6   : > { %3685 = vmatprep.subr.bf16.mxu1 %v17621_v35 }
 0x2d8   : > { %3462 = vmatmul.mubr.bf16.gmra.mrb[88].mxu1 %v13350_v59 }
 0x2d9   : > { %3686 = vmatpush1.bf16.msra.mxu1 %v14399_v56  ;;  %10218 = vmatprep.mubr.msk.bf16.mxu1 %vm1305_vm2, %v13351_v38  ;;  %v13383_v38 = vld [vmem:[%s17612_s4 + $0x18] sm:$0xff]  }
 0x2da   : > { %3687 = vmatprep.subr.bf16.mxu1 %v17621_v35 }
 0x2dd   : > { %3688 = vmatpush1.bf16.msra.mxu1 %v14409_v21 }
 0x2de   : > { %3689 = vmatprep.subr.bf16.mxu1 %v17621_v35 }
 0x2e0   : > { %3470 = vmatmul.mubr.bf16.gmra.mrb[92].mxu1 %v13353_v12  ;;  %v13389_v12 = vld [vmem:[%s17611_s3 + $0x2b4] ss:$8 sps:$4 sm:$0xff]  }
 0x2e1   : > { %3690 = vmatpush1.bf16.msra.mxu1 %v14419_v27  ;;  %10259 = vmatprep.mubr.msk.bf16.mxu1 %vm1305_vm2, %v13356_v3  ;;  %v13387_v3 = vld [vmem:[%s17612_s4 + $0x20] sm:$0xff]  }
 0x2e2   : > { %3691 = vmatprep.subr.bf16.mxu1 %v17621_v35 }
 0x2e5   : > { %3692 = vmatpush1.bf16.msra.mxu1 %v14429_v22 }
 0x2e6   : > { %3693 = vmatprep.subr.bf16.mxu1 %v17621_v35 }
 0x2e7   : > { %v14818_v61 = vpop.f32.mrb[144].mxu0 }
 0x2e8   : > { %v1354_v15 = vpop.f32.mrb[145].mxu0 }
 0x2e9   : > { %3694 = vmatpush1.bf16.msra.mxu1 %v14439_v48  ;;  %v14824_v8 = vpop.f32.mrb[146].mxu0 }
 0x2ea   : > { %v1383_v11 = vpack.c.bf16 %v14824_v8, %v14818_v61  ;;  %v1357_v10 = vpop.f32.mrb[147].mxu0  ;;  %3941 = vmatprep.subr.bf16.mxu1 %v17621_v35  ;;  %v13393_v61 = vld [vmem:[%s17612_s4 + $0x38] sm:$0xff]   ;;  %v13394_v8 = vld [vmem:[%s17611_s3 + $0x2c0] ss:$8 sps:$4 sm:$0xff]  }
 0x2ec   : > { %3710 = vmatmul.mubr.bf16.vlgmr.msra.gmra.mrb[96].mxu1 %v13354_v6 }
 0x2ed   : > { %3942 = vmatpush1.bf16.msra.mxu1 %v14359_v18  ;;  %10260 = vmatprep.mubr.msk.bf16.mxu1 %vm1305_vm2, %v13358_v43  ;;  %v13391_v43 = vld [vmem:[%s17611_s3 + $0x2b0] ss:$8 sps:$4 sm:$0xff]  }
 0x2ee   : > { %3943 = vmatprep.subr.bf16.mxu1 %v17621_v35 }
 0x2ef   : > { %v14835_v32 = vpop.f32.mrb[148].mxu0 }
 0x2f0   : > { %v1362_v24 = vpop.f32.mrb[149].mxu0 }
 0x2f1   : > { %3944 = vmatpush1.bf16.msra.mxu1 %v14369_v23  ;;  %v14841_v13 = vpop.f32.mrb[150].mxu0 }
 0x2f2   : > { %3945 = vmatprep.subr.bf16.mxu1 %v17621_v35  ;;  %v1384_v20 = vpack.c.bf16 %v14841_v13, %v14835_v32  ;;  %v1365_v16 = vpop.f32.mrb[151].mxu0  ;;  %v13400_v32 = vld [vmem:[%s17611_s3 + $0x2e4] ss:$8 sps:$4 sm:$0xff]  }
 0x2f3   : > { %v13396_v16 = vld [vmem:[%s17611_s3 + $0x2c4] ss:$8 sps:$4 sm:$0xff]  }
 0x2f4   : > { %3718 = vmatmul.mubr.bf16.gmra.mrb[100].mxu1 %v13360_v25  ;;  %v13388_v25 = vld [vmem:[%s17612_s4 + $0x28] sm:$0xff]  }
 0x2f5   : > { %3946 = vmatpush1.bf16.msra.mxu1 %v14379_v44  ;;  %10261 = vmatprep.mubr.msk.bf16.mxu1 %vm1305_vm2, %v13363_v17  ;;  %v13411_v13 = vld [vmem:[%s17611_s3 + $0x84] ss:$8 sps:$4 sm:$0xff]  }
 0x2f6   : > { %3947 = vmatprep.subr.bf16.mxu1 %v17621_v35 }
 0x2f7   : > { %v14852_v36 = vpop.f32.mrb[152].mxu0 }
 0x2f8   : > { %v1370_v28 = vpop.f32.mrb[153].mxu0 }
 0x2f9   : > { %3948 = vmatpush1.bf16.msra.mxu1 %v14389_v60  ;;  %v14858_v39 = vpop.f32.mrb[154].mxu0  ;;  %v13392_v28 = vld [vmem:[%s17612_s4 + $0x30] sm:$0xff]  }
 0x2fa   : > { %3949 = vmatprep.subr.bf16.mxu1 %v17621_v35  ;;  %v1385_v31 = vpack.c.bf16 %v14858_v39, %v14852_v36  ;;  %v1373_v34 = vpop.f32.mrb[155].mxu0  ;;  %v13403_v36 = vld [vmem:[%s17611_s3 + $0x2f4] ss:$8 sps:$4 sm:$0xff]   ;;  %v13405_v39 = vld [vmem:[%s17611_s3 + $0x2f0] ss:$8 sps:$4 sm:$0xff]  }
 0x2fb   : > { %v13415_v34 = vld [vmem:[%s17611_s3 + $0x314] ss:$8 sps:$4 sm:$0xff]  }
 0x2fc   : > { %3726 = vmatmul.mubr.bf16.gmra.mrb[104].mxu1 %v13365_v19  ;;  %v13399_v19 = vld [vmem:[%s17611_s3 + $0x2d0] ss:$8 sps:$4 sm:$0xff]  }
 0x2fd   : > { %3950 = vmatpush1.bf16.msra.mxu1 %v14399_v56  ;;  %10262 = vmatprep.mubr.msk.bf16.mxu1 %vm1305_vm2, %v13368_v30  ;;  %v13408_v30 = vld [vmem:[%s17611_s3 + $0x304] ss:$8 sps:$4 sm:$0xff]  }
 0x2fe   : > { %3951 = vmatprep.subr.bf16.mxu1 %v17621_v35 }
 0x2ff   : > { %v14869_v37 = vpop.f32.mrb[156].mxu0 }
 0x300   : > { %v1378_v40 = vpop.f32.mrb[157].mxu0 }
 0x301   : > { %3952 = vmatpush1.bf16.msra.mxu1 %v14409_v21  ;;  %v14875_v42 = vpop.f32.mrb[158].mxu0  ;;  %v13412_v40 = vld [vmem:[%s17611_s3 + $0x94] ss:$8 sps:$4 sm:$0xff]  }
 0x302   : > { %3953 = vmatprep.subr.bf16.mxu1 %v17621_v35  ;;  %v1386_v47 = vpack.c.bf16 %v14875_v42, %v14869_v37  ;;  %v1381_v45 = vpop.f32.mrb[159].mxu0  ;;  %v13409_v37 = vld [vmem:[%s17611_s3 + $0x80] ss:$8 sps:$4 sm:$0xff]   ;;  %v13421_v42 = vld [vmem:[%s17611_s3 + $0x324] ss:$8 sps:$4 sm:$0xff]  }
 0x303   : > { %v13423_v45 = vld [vmem:[%s17611_s3 + $0x320] ss:$8 sps:$4 sm:$0xff]  }
 0x304   : > { %3734 = vmatmul.mubr.bf16.gmra.mrb[108].mxu1 %v13370_v41  ;;  %v13417_v41 = vld [vmem:[%s17611_s3 + $0x310] ss:$8 sps:$4 sm:$0xff]  }
 0x305   : > { %3954 = vmatpush1.bf16.msra.mxu1 %v14419_v27  ;;  %10303 = vmatprep.mubr.msk.bf16.mxu1 %vm1305_vm2, %v13375_v46  ;;  %v13414_v46 = vld [vmem:[%s17611_s3 + $0x90] ss:$8 sps:$4 sm:$0xff]  }
 0x306   : > { %3955 = vmatprep.subr.bf16.mxu1 %v17621_v35 }
 0x309   : > { %3956 = vmatpush1.bf16.msra.mxu1 %v14429_v22 }
 0x30a   : > { %3957 = vmatprep.subr.bf16.mxu1 %v17621_v35 }
 0x30b   : > { %v1494_v14 = vpop.f32.mrb[160].mxu0 }
 0x30c   : > { %v1496_v50 = vpop.f32.mrb[161].mxu0 }
 0x30d   : > { %3958 = vmatpush1.bf16.msra.mxu1 %v14439_v48  ;;  %v1497_v53 = vpop.f32.mrb[162].mxu0  ;;  %v13420_v50 = vld [vmem:[%s17611_s3 + $0xa0] ss:$8 sps:$4 sm:$0xff]  }
 0x30e   : > { %v1525_v57 = vpack.c.bf16 %v1497_v53, %v1494_v14  ;;  %v1499_v58 = vpop.f32.mrb[163].mxu0  ;;  %4205 = vmatprep.subr.bf16.mxu1 %v17621_v35  ;;  %v13427_v14 = vld [vmem:[%s17611_s3 + $0x334] ss:$8 sps:$4 sm:$0xff]   ;;  %v13429_v53 = vld [vmem:[%s17611_s3 + $0x330] ss:$8 sps:$4 sm:$0xff]  }
 0x30f   : > { %v13430_v58 = vld [vmem:[%s17611_s3 + $0x340] ss:$8 sps:$4 sm:$0xff]  }
 0x310   : > { %3974 = vmatmul.mubr.bf16.vlgmr.msra.gmra.mrb[112].mxu1 %v13373_v52  ;;  %12000 = vmatprep.mubr.bf16.mxu0 %v1525_v57  ;;  %v13424_v52 = vld [vmem:[%s17611_s3 + $0xb4] ss:$8 sps:$4 sm:$0xff]   ;;  %v13426_v57 = vld [vmem:[%s17611_s3 + $0xb0] ss:$8 sps:$4 sm:$0xff]  }
 0x311   : > { %4206 = vmatpush1.bf16.msra.mxu1 %v14359_v18  ;;  %10304 = vmatprep.mubr.msk.bf16.mxu1 %vm1305_vm2, %v13379_v55  ;;  %v13432_v55 = vld [vmem:[%s17611_s3 + $0x344] ss:$8 sps:$4 sm:$0xff]  }
 0x312   : > { %4207 = vmatprep.subr.bf16.mxu1 %v17621_v35 }
 0x313   : > { %v1502_v49 = vpop.f32.mrb[164].mxu0 }
 0x314   : > { %v1504_v26 = vpop.f32.mrb[165].mxu0 }
 0x315   : > { %v1505_v63 = vpop.f32.mrb[166].mxu0  ;;  %4208 = vmatpush1.bf16.msra.mxu1 %v14369_v23  ;;  %v13435_v26 = vld [vmem:[%s17611_s3 + $0x350] ss:$8 sps:$4 sm:$0xff]  }
 0x316   : > { %v1526_v29 = vpack.c.bf16 %v1505_v63, %v1502_v49  ;;  %v1507_v2 = vpop.f32.mrb[167].mxu0  ;;  %4209 = vmatprep.subr.bf16.mxu1 %v17621_v35  ;;  %v13433_v49 = vld [vmem:[%s17611_s3 + $0x354] ss:$8 sps:$4 sm:$0xff]   ;;  %v13438_v63 = vld [vmem:[%s17611_s3 + $0x360] ss:$8 sps:$4 sm:$0xff]  }
 0x317   : > { %v13441_v2 = vld [vmem:[%s17611_s3 + $0x370] ss:$8 sps:$4 sm:$0xff]  }
 0x318   : > { %12001 = vmatmul.mubr.bf16.vlgmr.msra.gmra.mrb[176].mxu0 %v1526_v29  ;;  %3982 = vmatmul.mubr.bf16.gmra.mrb[116].mxu1 %v13381_v62  ;;  %v13436_v62 = vld [vmem:[%s17611_s3 + $0x364] ss:$8 sps:$4 sm:$0xff]   ;;  %v13439_v29 = vld [vmem:[%s17611_s3 + $0x374] ss:$8 sps:$4 sm:$0xff]  }
 0x319   : > { %12009 = vmatpush3.bf16.msra.mxu0 %v14717_v51  ;;  %4210 = vmatpush1.bf16.msra.mxu1 %v14379_v44 }
 0x31a   : > { %12010 = vmatprep.subr.bf16.mxu0 %v13378_v4  ;;  %4211 = vmatprep.subr.bf16.mxu1 %v17621_v35 }
 0x31b   : > { %v1510_v54 = vpop.f32.mrb[168].mxu0  ;;  %10305 = vmatprep.mubr.msk.bf16.mxu1 %vm1305_vm2, %v13384_v5  ;;  %v15147_v5 = vpop.f32.mrb[0].mxu1 }
 0x31c   : > { %v1512_v9 = vpop.f32.mrb[169].mxu0 }
 0x31d   : > { %12011 = vmatpush3.bf16.msra.mxu0 %v13378_v4  ;;  %4212 = vmatpush1.bf16.msra.mxu1 %v14389_v60  ;;  %v1513_v51 = vpop.f32.mrb[170].mxu0  ;;  %v13444_v4 = vld [vmem:[%s17611_s3 + $0x384] ss:$8 sps:$4 sm:$0xff]  }
 0x31e   : > { %12012 = vmatprep.subr.bf16.mxu0 %v13382_v7  ;;  %4213 = vmatprep.subr.bf16.mxu1 %v17621_v35  ;;  %v1527_v0 = vpack.c.bf16 %v1513_v51, %v1510_v54  ;;  %v1515_v59 = vpop.f32.mrb[171].mxu0 }
 0x31f   : > { %v13485_v59 = vld [vmem:[%s17612_s4 + $0x88] sm:$0xff]  }
 0x320   : > { %3990 = vmatmul.mubr.bf16.gmra.mrb[120].mxu1 %v13386_v33  ;;  %12004 = vmatprep.mubr.bf16.mxu0 %v1527_v0  ;;  %v13484_v33 = vld [vmem:[%s17612_s4 + $0x80] sm:$0xff]  }
 0x321   : > { %12013 = vmatpush3.bf16.msra.mxu0 %v13382_v7  ;;  %4214 = vmatpush1.bf16.msra.mxu1 %v14399_v56  ;;  %v2129_v7 = vpop.f32.mrb[1].mxu1  ;;  %v13442_v0 = vld [vmem:[%s17611_s3 + $0x380] ss:$8 sps:$4 sm:$0xff]  }
 0x322   : > { %12014 = vmatprep.subr.bf16.mxu0 %v13383_v38  ;;  %4215 = vmatprep.subr.bf16.mxu1 %v17621_v35  ;;  %v15152_v54 = vpop.f32.mrb[2].mxu1 }
 0x323   : > { %v1518_v15 = vpop.f32.mrb[172].mxu0  ;;  %10306 = vmatprep.mubr.msk.bf16.mxu1 %vm1305_vm2, %v13389_v12  ;;  %v2132_v9 = vpop.f32.mrb[3].mxu1  ;;  %v2158_v51 = vpack.c.bf16 %v15152_v54, %v15147_v5  ;;  %v13489_v12 = vld [vmem:[%s17612_s4 + $0x90] sm:$0xff]   ;;  %v13520_v5 = vld [vmem:[%s17612_s4 + $0xf8] sm:$0xff]  }
 0x324   : > { %v1520_v6 = vpop.f32.mrb[173].mxu0  ;;  %v13462_v9 = vld [vmem:[%s17611_s3 + $0x3e0] ss:$8 sps:$4 sm:$0xff]   ;;  %v13525_v54 = vld [vmem:[%s17611_s3 + $0x514] ss:$8 sps:$4 sm:$0xff]  }
 0x325   : > { %12015 = vmatpush3.bf16.msra.mxu0 %v13383_v38  ;;  %v1521_v10 = vpop.f32.mrb[174].mxu0  ;;  %4216 = vmatpush1.bf16.msra.mxu1 %v14409_v21  ;;  %v13445_v38 = vld [vmem:[%s17611_s3 + $0x394] ss:$8 sps:$4 sm:$0xff]  }
 0x326   : > { %v1528_v24 = vpack.c.bf16 %v1521_v10, %v1518_v15  ;;  %12016 = vmatprep.subr.bf16.mxu0 %v13387_v3  ;;  %4217 = vmatprep.subr.bf16.mxu1 %v17621_v35  ;;  %v1523_v17 = vpop.f32.mrb[175].mxu0  ;;  %v13447_v10 = vld [vmem:[%s17611_s3 + $0x390] ss:$8 sps:$4 sm:$0xff]  }
 0x327   : > { %v13448_v17 = vld [vmem:[%s17611_s3 + $0x3a4] ss:$8 sps:$4 sm:$0xff]  }
 0x328   : > { %12005 = vmatmul.mubr.bf16.gmra.mrb[180].mxu0 %v1528_v24  ;;  %3998 = vmatmul.mubr.bf16.gmra.mrb[124].mxu1 %v13391_v43  ;;  %v13490_v24 = vld [vmem:[%s17612_s4 + $0x98] sm:$0xff]  }
 0x329   : > { %12017 = vmatpush3.bf16.msra.mxu0 %v13387_v3  ;;  %12024 = vmatprep.mubr.bf16.mxu0 %v1383_v11  ;;  %v13397_v11 = vld [vmem:[%s17611_s3 + $0x2d4] ss:$8 sps:$4 sm:$0xff]   ;;  %v15175_v3 = vpop.f32.mrb[4].mxu1 }
 0x32a   : > { %4218 = vmatpush1.bf16.msra.mxu1 %v14419_v27  ;;  %12018 = vmatprep.subr.bf16.mxu0 %v13388_v25  ;;  %v2137_v15 = vpop.f32.mrb[5].mxu1 }
 0x32b   : > { %4219 = vmatprep.subr.bf16.mxu1 %v17621_v35  ;;  %10347 = vmatprep.mubr.msk.bf16.mxu1 %vm1305_vm2, %v13396_v16  ;;  %v15180_v6 = vpop.f32.mrb[6].mxu1  ;;  %v13494_v16 = vld [vmem:[%s17612_s4 + $0xa0] sm:$0xff]  }
 0x32c   : > { %v2140_v43 = vpop.f32.mrb[7].mxu1 }
 0x32d   : > { %12019 = vmatpush3.bf16.msra.mxu0 %v13388_v25  ;;  %v2159_v25 = vpack.c.bf16 %v15180_v6, %v15175_v3  ;;  %v13465_v43 = vld [vmem:[%s17611_s3 + $0x3f0] ss:$8 sps:$4 sm:$0xff]  }
 0x32e   : > { %4220 = vmatpush1.bf16.msra.mxu1 %v14429_v22  ;;  %12020 = vmatprep.subr.bf16.mxu0 %v13392_v28 }
 0x32f   : > { %4221 = vmatprep.subr.bf16.mxu1 %v17621_v35 }
 0x331   : > { %12021 = vmatpush3.bf16.msra.mxu0 %v13392_v28  ;;  %v15198_v28 = vpop.f32.mrb[8].mxu1 }
 0x332   : > { %4222 = vmatpush1.bf16.msra.mxu1 %v14439_v48  ;;  %12022 = vmatprep.subr.bf16.mxu0 %v13393_v61 }
 0x333   : > { %4469 = vmatprep.subr.bf16.mxu1 %v17621_v35 }
 0x335   : > { %12023 = vmatpush3.bf16.msra.mxu0 %v13393_v61  ;;  %4238 = vmatmul.mubr.bf16.vlgmr.msra.gmra.mrb[128].mxu1 %v13394_v8  ;;  %v2145_v61 = vpop.f32.mrb[9].mxu1 }
 0x336   : > { %4470 = vmatpush1.bf16.msra.mxu1 %v14359_v18  ;;  %1829 = vmatprep.subr.bf16.mxu0 %v17621_v35  ;;  %v15203_v8 = vpop.f32.mrb[10].mxu1 }
 0x337   : > { %4471 = vmatprep.subr.bf16.mxu1 %v17621_v35  ;;  %10348 = vmatprep.mubr.msk.bf16.mxu1 %vm1305_vm2, %v13397_v11  ;;  %v2148_v11 = vpop.f32.mrb[11].mxu1 }
 0x338   : > { %12025 = vmatmul.mubr.bf16.vlgmr.msra.gmra.mrb[176].mxu0 %v1384_v20  ;;  %v13402_v20 = vld [vmem:[%s17611_s3 + $0x2e0] ss:$8 sps:$4 sm:$0xff]  }
 0x339   : > { %12028 = vmatprep.mubr.bf16.mxu0 %v1385_v31  ;;  %1830 = vmatpush1.bf16.msra.mxu0 %v14359_v18  ;;  %v13406_v31 = vld [vmem:[%s17611_s3 + $0x300] ss:$8 sps:$4 sm:$0xff]  }
 0x33a   : > { %4472 = vmatpush1.bf16.msra.mxu1 %v14369_v23  ;;  %1831 = vmatprep.subr.bf16.mxu0 %v17621_v35 }
 0x33b   : > { %4473 = vmatprep.subr.bf16.mxu1 %v17621_v35 }
 0x33d   : > { %1832 = vmatpush1.bf16.msra.mxu0 %v14369_v23  ;;  %4246 = vmatmul.mubr.bf16.gmra.mrb[132].mxu1 %v13399_v19  ;;  %v13450_v19 = vld [vmem:[%s17611_s3 + $0x3a0] ss:$8 sps:$4 sm:$0xff]  }
 0x33e   : > { %4474 = vmatpush1.bf16.msra.mxu1 %v14379_v44  ;;  %1833 = vmatprep.subr.bf16.mxu0 %v17621_v35 }
 0x33f   : > { %4475 = vmatprep.subr.bf16.mxu1 %v17621_v35  ;;  %10349 = vmatprep.mubr.msk.bf16.mxu1 %vm1305_vm2, %v13400_v32  ;;  %v13495_v32 = vld [vmem:[%s17612_s4 + $0xa8] sm:$0xff]  }
 0x340   : > { %12029 = vmatmul.mubr.bf16.gmra.mrb[180].mxu0 %v1386_v47  ;;  %v13418_v47 = vld [vmem:[%s17611_s3 + $0xa4] ss:$8 sps:$4 sm:$0xff]  }
 0x341   : > { %1834 = vmatpush1.bf16.msra.mxu0 %v14379_v44  ;;  %9951 = vmatprep.mubr.msk.bf16.mxu0 %vm1305_vm2, %v13411_v13 }
 0x342   : > { %4476 = vmatpush1.bf16.msra.mxu1 %v14389_v60  ;;  %1835 = vmatprep.subr.bf16.mxu0 %v17621_v35 }
 0x343   : > { %4477 = vmatprep.subr.bf16.mxu1 %v17621_v35 }
 0x345   : > { %1836 = vmatpush1.bf16.msra.mxu0 %v14389_v60  ;;  %4254 = vmatmul.mubr.bf16.gmra.mrb[136].mxu1 %v13402_v20  ;;  %v13451_v20 = vld [vmem:[%s17611_s3 + $0x3b4] ss:$8 sps:$4 sm:$0xff]  }
 0x346   : > { %4478 = vmatpush1.bf16.msra.mxu1 %v14399_v56  ;;  %1837 = vmatprep.subr.bf16.mxu0 %v17621_v35 }
 0x347   : > { %4479 = vmatprep.subr.bf16.mxu1 %v17621_v35  ;;  %10350 = vmatprep.mubr.msk.bf16.mxu1 %vm1305_vm2, %v13403_v36  ;;  %v13499_v36 = vld [vmem:[%s17612_s4 + $0xb0] sm:$0xff]  }
 0x349   : > { %1838 = vmatpush1.bf16.msra.mxu0 %v14399_v56 }
 0x34a   : > { %4480 = vmatpush1.bf16.msra.mxu1 %v14409_v21  ;;  %1839 = vmatprep.subr.bf16.mxu0 %v17621_v35 }
 0x34b   : > { %4481 = vmatprep.subr.bf16.mxu1 %v17621_v35 }
 0x34d   : > { %1840 = vmatpush1.bf16.msra.mxu0 %v14409_v21  ;;  %4262 = vmatmul.mubr.bf16.gmra.mrb[140].mxu1 %v13405_v39  ;;  %v15221_v39 = vpop.f32.mrb[12].mxu1 }
 0x34e   : > { %4482 = vmatpush1.bf16.msra.mxu1 %v14419_v27  ;;  %1841 = vmatprep.subr.bf16.mxu0 %v17621_v35 }
 0x34f   : > { %4483 = vmatprep.subr.bf16.mxu1 %v17621_v35  ;;  %10391 = vmatprep.mubr.msk.bf16.mxu1 %vm1305_vm2, %v13408_v30  ;;  %v2153_v30 = vpop.f32.mrb[13].mxu1 }
 0x351   : > { %1842 = vmatpush1.bf16.msra.mxu0 %v14419_v27 }
 0x352   : > { %4484 = vmatpush1.bf16.msra.mxu1 %v14429_v22  ;;  %1843 = vmatprep.subr.bf16.mxu0 %v17621_v35 }
 0x353   : > { %4485 = vmatprep.subr.bf16.mxu1 %v17621_v35 }
 0x355   : > { %1844 = vmatpush1.bf16.msra.mxu0 %v14429_v22 }
 0x356   : > { %4486 = vmatpush1.bf16.msra.mxu1 %v14439_v48  ;;  %1845 = vmatprep.subr.bf16.mxu0 %v17621_v35 }
 0x357   : > { %4733 = vmatprep.subr.bf16.mxu1 %v17621_v35 }
 0x359   : > { %1846 = vmatpush1.bf16.msra.mxu0 %v14439_v48  ;;  %4502 = vmatmul.mubr.bf16.vlgmr.msra.gmra.mrb[144].mxu1 %v13406_v31  ;;  %v15226_v31 = vpop.f32.mrb[14].mxu1 }
 0x35a   : > { %4734 = vmatpush1.bf16.msra.mxu1 %v14359_v18  ;;  %10392 = vmatprep.mubr.msk.bf16.mxu1 %vm1305_vm2, %v13415_v34  ;;  %v2156_v34 = vpop.f32.mrb[15].mxu1 }
 0x35b   : > { %4735 = vmatprep.subr.bf16.mxu1 %v17621_v35  ;;  %12032 = vmatprep.subr.bf16.mxu0 %v13484_v33 }
 0x35c   : > { %1862 = vmatmul.mubr.bf16.vlgmr.msra.gmra.mrb[184].mxu0 %v13409_v37  ;;  %v13453_v37 = vld [vmem:[%s17611_s3 + $0x3b0] ss:$8 sps:$4 sm:$0xff]  }
 0x35d   : > { %9952 = vmatprep.mubr.msk.bf16.mxu0 %vm1305_vm2, %v13412_v40  ;;  %12033 = vmatpush3.bf16.msra.mxu0 %v13484_v33  ;;  %v13500_v40 = vld [vmem:[%s17612_s4 + $0xb8] sm:$0xff]  }
 0x35e   : > { %4736 = vmatpush1.bf16.msra.mxu1 %v14369_v23  ;;  %12034 = vmatprep.subr.bf16.mxu0 %v13485_v59 }
 0x35f   : > { %4737 = vmatprep.subr.bf16.mxu1 %v17621_v35 }
 0x361   : > { %4510 = vmatmul.mubr.bf16.gmra.mrb[148].mxu1 %v13417_v41  ;;  %12035 = vmatpush3.bf16.msra.mxu0 %v13485_v59 }
 0x362   : > { %4738 = vmatpush1.bf16.msra.mxu1 %v14379_v44  ;;  %10393 = vmatprep.mubr.msk.bf16.mxu1 %vm1305_vm2, %v13421_v42  ;;  %v13456_v42 = vld [vmem:[%s17611_s3 + $0x3c4] ss:$8 sps:$4 sm:$0xff]  }
 0x363   : > { %4739 = vmatprep.subr.bf16.mxu1 %v17621_v35  ;;  %12036 = vmatprep.subr.bf16.mxu0 %v13489_v12 }
 0x364   : > { %1870 = vmatmul.mubr.bf16.gmra.mrb[188].mxu0 %v13414_v46  ;;  %v15244_v46 = vld [vmem:[%s17612_s4 + $0xc0] sm:$0xff]  }
 0x365   : > { %9953 = vmatprep.mubr.msk.bf16.mxu0 %vm1305_vm2, %v13418_v47  ;;  %12037 = vmatpush3.bf16.msra.mxu0 %v13489_v12  ;;  %v15248_v47 = vpop.f32.mrb[16].mxu1 }
 0x366   : > { %4740 = vmatpush1.bf16.msra.mxu1 %v14389_v60  ;;  %12038 = vmatprep.subr.bf16.mxu0 %v13490_v24 }
 0x367   : > { %4741 = vmatprep.subr.bf16.mxu1 %v17621_v35 }
 0x369   : > { %4518 = vmatmul.mubr.bf16.gmra.mrb[152].mxu1 %v13423_v45  ;;  %12039 = vmatpush3.bf16.msra.mxu0 %v13490_v24  ;;  %v2393_v45 = vpop.f32.mrb[17].mxu1  ;;  %v13468_v24 = vld [vmem:[%s17611_s3 + $0x404] ss:$8 sps:$4 sm:$0xff]  }
 0x36a   : > { %4742 = vmatpush1.bf16.msra.mxu1 %v14399_v56  ;;  %10394 = vmatprep.mubr.msk.bf16.mxu1 %vm1305_vm2, %v13427_v14  ;;  %v15252_v14 = vpop.f32.mrb[18].mxu1  ;;  %v13472_v45 = vld [vmem:[%s17611_s3 + $0x424] ss:$8 sps:$4 sm:$0xff]  }
 0x36b   : > { %4743 = vmatprep.subr.bf16.mxu1 %v17621_v35  ;;  %12040 = vmatprep.subr.bf16.mxu0 %v13494_v16 }
 0x36c   : > { %1878 = vmatmul.mubr.bf16.gmra.mrb[192].mxu0 %v13420_v50  ;;  %v2396_v50 = vpop.f32.mrb[19].mxu1 }
 0x36d   : > { %9954 = vmatprep.mubr.msk.bf16.mxu0 %vm1305_vm2, %v13424_v52  ;;  %12041 = vmatpush3.bf16.msra.mxu0 %v13494_v16 }
 0x36e   : > { %4744 = vmatpush1.bf16.msra.mxu1 %v14409_v21  ;;  %12042 = vmatprep.subr.bf16.mxu0 %v13495_v32 }
 0x36f   : > { %4745 = vmatprep.subr.bf16.mxu1 %v17621_v35 }
 0x371   : > { %4526 = vmatmul.mubr.bf16.gmra.mrb[156].mxu1 %v13429_v53  ;;  %12043 = vmatpush3.bf16.msra.mxu0 %v13495_v32  ;;  %v13454_v53 = vld [vmem:[%s17611_s3 + $0x3c0] ss:$8 sps:$4 sm:$0xff]  }
 0x372   : > { %4746 = vmatpush1.bf16.msra.mxu1 %v14419_v27  ;;  %10435 = vmatprep.mubr.msk.bf16.mxu1 %vm1305_vm2, %v13432_v55  ;;  %v13457_v55 = vld [vmem:[%s17611_s3 + $0x3d4] ss:$8 sps:$4 sm:$0xff]  }
 0x373   : > { %4747 = vmatprep.subr.bf16.mxu1 %v17621_v35  ;;  %12044 = vmatprep.subr.bf16.mxu0 %v13499_v36 }
 0x374   : > { %1886 = vmatmul.mubr.bf16.gmra.mrb[196].mxu0 %v13426_v57  ;;  %v15268_v57 = vpop.f32.mrb[20].mxu1 }
 0x375   : > { %12045 = vmatpush3.bf16.msra.mxu0 %v13499_v36  ;;  %v13469_v36 = vld [vmem:[%s17611_s3 + $0x414] ss:$8 sps:$4 sm:$0xff]  }
 0x376   : > { %4748 = vmatpush1.bf16.msra.mxu1 %v14429_v22  ;;  %12046 = vmatprep.subr.bf16.mxu0 %v13500_v40 }
 0x377   : > { %4749 = vmatprep.subr.bf16.mxu1 %v17621_v35 }
 0x379   : > { %12047 = vmatpush3.bf16.msra.mxu0 %v13500_v40  ;;  %v13471_v40 = vld [vmem:[%s17611_s3 + $0x410] ss:$8 sps:$4 sm:$0xff]  }
 0x37a   : > { %4750 = vmatpush1.bf16.msra.mxu1 %v14439_v48  ;;  %12056 = vmatprep.subr.bf16.mxu0 %v15244_v46 }
 0x37b   : > { %4997 = vmatprep.subr.bf16.mxu1 %v17621_v35 }
 0x37d   : > { %4766 = vmatmul.mubr.bf16.vlgmr.msra.gmra.mrb[160].mxu1 %v13430_v58  ;;  %v2401_v58 = vpop.f32.mrb[21].mxu1 }
 0x37e   : > { %4998 = vmatpush1.bf16.msra.mxu1 %v14359_v18  ;;  %10436 = vmatprep.mubr.msk.bf16.mxu1 %vm1305_vm2, %v13433_v49  ;;  %v15271_v49 = vpop.f32.mrb[22].mxu1 }
 0x37f   : > { %4999 = vmatprep.subr.bf16.mxu1 %v17621_v35 }
 0x382   : > { %5000 = vmatpush1.bf16.msra.mxu1 %v14369_v23 }
 0x383   : > { %5001 = vmatprep.subr.bf16.mxu1 %v17621_v35 }
 0x385   : > { %4774 = vmatmul.mubr.bf16.gmra.mrb[164].mxu1 %v13435_v26  ;;  %v13459_v26 = vld [vmem:[%s17611_s3 + $0x3d0] ss:$8 sps:$4 sm:$0xff]  }
 0x386   : > { %5002 = vmatpush1.bf16.msra.mxu1 %v14379_v44  ;;  %10437 = vmatprep.mubr.msk.bf16.mxu1 %vm1305_vm2, %v13436_v62  ;;  %v2404_v62 = vpop.f32.mrb[23].mxu1 }
 0x387   : > { %5003 = vmatprep.subr.bf16.mxu1 %v17621_v35 }
 0x38a   : > { %5004 = vmatpush1.bf16.msra.mxu1 %v14389_v60 }
 0x38b   : > { %5005 = vmatprep.subr.bf16.mxu1 %v17621_v35 }
 0x38d   : > { %4782 = vmatmul.mubr.bf16.gmra.mrb[168].mxu1 %v13438_v63  ;;  %v13460_v63 = vld [vmem:[%s17611_s3 + $0x3e4] ss:$8 sps:$4 sm:$0xff]  }
 0x38e   : > { %5006 = vmatpush1.bf16.msra.mxu1 %v14399_v56  ;;  %10438 = vmatprep.mubr.msk.bf16.mxu1 %vm1305_vm2, %v13439_v29 }
 0x38f   : > { %5007 = vmatprep.subr.bf16.mxu1 %v17621_v35 }
 0x392   : > { %5008 = vmatpush1.bf16.msra.mxu1 %v14409_v21 }
 0x393   : > { %5009 = vmatprep.subr.bf16.mxu1 %v17621_v35 }
 0x395   : > { %4790 = vmatmul.mubr.bf16.gmra.mrb[172].mxu1 %v13441_v2  ;;  %v15285_v2 = vpop.f32.mrb[24].mxu1 }
 0x396   : > { %5010 = vmatpush1.bf16.msra.mxu1 %v14419_v27  ;;  %10479 = vmatprep.mubr.msk.bf16.mxu1 %vm1305_vm2, %v13444_v4  ;;  %v2409_v4 = vpop.f32.mrb[25].mxu1 }
 0x397   : > { %5011 = vmatprep.subr.bf16.mxu1 %v17621_v35  ;;  %v15288_v7 = vpop.f32.mrb[26].mxu1 }
 0x398   : > { %v2412_v33 = vpop.f32.mrb[27].mxu1 }
 0x39a   : > { %5012 = vmatpush1.bf16.msra.mxu1 %v14429_v22 }
 0x39b   : > { %5013 = vmatprep.subr.bf16.mxu1 %v17621_v35 }
 0x39e   : > { %5014 = vmatpush1.bf16.msra.mxu1 %v14439_v48 }
 0x39f   : > { %5261 = vmatprep.subr.bf16.mxu1 %v17621_v35 }
 0x3a1   : > { %5030 = vmatmul.mubr.bf16.vlgmr.msra.gmra.mrb[176].mxu1 %v13442_v0  ;;  %v13463_v0 = vld [vmem:[%s17611_s3 + $0x3f4] ss:$8 sps:$4 sm:$0xff]  }
 0x3a2   : > { %5262 = vmatpush1.bf16.msra.mxu1 %v14359_v18  ;;  %10480 = vmatprep.mubr.msk.bf16.mxu1 %vm1305_vm2, %v13445_v38  ;;  %v15302_v38 = vpop.f32.mrb[28].mxu1 }
 0x3a3   : > { %5263 = vmatprep.subr.bf16.mxu1 %v17621_v35  ;;  %v2417_v12 = vpop.f32.mrb[29].mxu1 }
 0x3a4   : > { %v15305_v15 = vpop.f32.mrb[30].mxu1  ;;  %v13477_v12 = vld [vmem:[%s17611_s3 + $0x430] ss:$8 sps:$4 sm:$0xff]  }
 0x3a6   : > { %5264 = vmatpush1.bf16.msra.mxu1 %v14369_v23 }
 0x3a7   : > { %5265 = vmatprep.subr.bf16.mxu1 %v17621_v35 }
 0x3a9   : > { %5038 = vmatmul.mubr.bf16.gmra.mrb[180].mxu1 %v13447_v10  ;;  %v2420_v10 = vpop.f32.mrb[31].mxu1 }
 0x3aa   : > { %5266 = vmatpush1.bf16.msra.mxu1 %v14379_v44  ;;  %10481 = vmatprep.mubr.msk.bf16.mxu1 %vm1305_vm2, %v13448_v17  ;;  %v15319_v16 = vpop.f32.mrb[32].mxu1  ;;  %v13480_v10 = vld [vmem:[%s17611_s3 + $0x444] ss:$8 sps:$4 sm:$0xff]  }
 0x3ab   : > { %5267 = vmatprep.subr.bf16.mxu1 %v17621_v35  ;;  %v2657_v61 = vpop.f32.mrb[33].mxu1 }
 0x3ac   : > { %v15322_v11 = vpop.f32.mrb[34].mxu1 }
 0x3ae   : > { %5268 = vmatpush1.bf16.msra.mxu1 %v14389_v60 }
 0x3af   : > { %5269 = vmatprep.subr.bf16.mxu1 %v17621_v35 }
 0x3b1   : > { %5046 = vmatmul.mubr.bf16.gmra.mrb[184].mxu1 %v13450_v19  ;;  %v2660_v19 = vpop.f32.mrb[35].mxu1 }
 0x3b2   : > { %5270 = vmatpush1.bf16.msra.mxu1 %v14399_v56  ;;  %10482 = vmatprep.mubr.msk.bf16.mxu1 %vm1305_vm2, %v13451_v20  ;;  %v13466_v20 = vld [vmem:[%s17611_s3 + $0x400] ss:$8 sps:$4 sm:$0xff]   ;;  %v15338_v30 = vpop.f32.mrb[36].mxu1 }
 0x3b3   : > { %5271 = vmatprep.subr.bf16.mxu1 %v17621_v35  ;;  %v2665_v34 = vpop.f32.mrb[37].mxu1 }
 0x3b6   : > { %5272 = vmatpush1.bf16.msra.mxu1 %v14409_v21 }
 0x3b7   : > { %5273 = vmatprep.subr.bf16.mxu1 %v17621_v35 }
 0x3b9   : > { %5054 = vmatmul.mubr.bf16.gmra.mrb[188].mxu1 %v13453_v37  ;;  %v15341_v37 = vpop.f32.mrb[38].mxu1 }
 0x3ba   : > { %5274 = vmatpush1.bf16.msra.mxu1 %v14419_v27  ;;  %10523 = vmatprep.mubr.msk.bf16.mxu1 %vm1305_vm2, %v13456_v42  ;;  %v2668_v42 = vpop.f32.mrb[39].mxu1 }
 0x3bb   : > { %5275 = vmatprep.subr.bf16.mxu1 %v17621_v35  ;;  %v13481_v42 = vld [vmem:[%s17611_s3 + $0x454] ss:$8 sps:$4 sm:$0xff]  }
 0x3be   : > { %5276 = vmatpush1.bf16.msra.mxu1 %v14429_v22 }
 0x3bf   : > { %5277 = vmatprep.subr.bf16.mxu1 %v17621_v35 }
 0x3c2   : > { %5278 = vmatpush1.bf16.msra.mxu1 %v14439_v48 }
 0x3c3   : > { %5525 = vmatprep.subr.bf16.mxu1 %v17621_v35 }
 0x3c5   : > { %5294 = vmatmul.mubr.bf16.vlgmr.msra.gmra.mrb[192].mxu1 %v13454_v53  ;;  %v15355_v53 = vpop.f32.mrb[40].mxu1 }
 0x3c6   : > { %5526 = vmatpush1.bf16.msra.mxu1 %v14359_v18  ;;  %10524 = vmatprep.mubr.msk.bf16.mxu1 %vm1305_vm2, %v13457_v55  ;;  %v2673_v55 = vpop.f32.mrb[41].mxu1 }
 0x3c7   : > { %5527 = vmatprep.subr.bf16.mxu1 %v17621_v35  ;;  %v15358_v58 = vpop.f32.mrb[42].mxu1 }
 0x3c8   : > { %v2676_v62 = vpop.f32.mrb[43].mxu1 }
 0x3c9   : > { %v13483_v62 = vld [vmem:[%s17611_s3 + $0x450] ss:$8 sps:$4 sm:$0xff]  }
 0x3ca   : > { %5528 = vmatpush1.bf16.msra.mxu1 %v14369_v23 }
 0x3cb   : > { %5529 = vmatprep.subr.bf16.mxu1 %v17621_v35 }
 0x3cd   : > { %5302 = vmatmul.mubr.bf16.gmra.mrb[196].mxu1 %v13459_v26  ;;  %v13474_v26 = vld [vmem:[%s17611_s3 + $0x420] ss:$8 sps:$4 sm:$0xff]  }
 0x3ce   : > { %5530 = vmatpush1.bf16.msra.mxu1 %v14379_v44  ;;  %10525 = vmatprep.mubr.msk.bf16.mxu1 %vm1305_vm2, %v13460_v63  ;;  %v13475_v63 = vld [vmem:[%s17611_s3 + $0x434] ss:$8 sps:$4 sm:$0xff]  }
 0x3cf   : > { %5531 = vmatprep.subr.bf16.mxu1 %v17621_v35 }
 0x3d2   : > { %5532 = vmatpush1.bf16.msra.mxu1 %v14389_v60 }
 0x3d3   : > { %5533 = vmatprep.subr.bf16.mxu1 %v17621_v35 }
 0x3d5   : > { %5310 = vmatmul.mubr.bf16.gmra.mrb[200].mxu1 %v13462_v9  ;;  %v15372_v9 = vpop.f32.mrb[44].mxu1 }
 0x3d6   : > { %5534 = vmatpush1.bf16.msra.mxu1 %v14399_v56  ;;  %10526 = vmatprep.mubr.msk.bf16.mxu1 %vm1305_vm2, %v13463_v0  ;;  %v2681_v33 = vpop.f32.mrb[45].mxu1 }
 0x3d7   : > { %5535 = vmatprep.subr.bf16.mxu1 %v17621_v35  ;;  %v15375_v0 = vpop.f32.mrb[46].mxu1  ;;  %v13486_v33 = vld [vmem:[%s17611_s3 + $0x464] ss:$8 sps:$4 sm:$0xff]  }
 0x3da   : > { %5536 = vmatpush1.bf16.msra.mxu1 %v14409_v21 }
 0x3db   : > { %5537 = vmatprep.subr.bf16.mxu1 %v17621_v35 }
 0x3dd   : > { %5318 = vmatmul.mubr.bf16.gmra.mrb[204].mxu1 %v13465_v43  ;;  %v2684_v43 = vpop.f32.mrb[47].mxu1 }
 0x3de   : > { %5538 = vmatpush1.bf16.msra.mxu1 %v14419_v27  ;;  %10567 = vmatprep.mubr.msk.bf16.mxu1 %vm1305_vm2, %v13468_v24  ;;  %v15389_v61 = vpop.f32.mrb[48].mxu1 }
 0x3df   : > { %5539 = vmatprep.subr.bf16.mxu1 %v17621_v35  ;;  %v2921_v19 = vpop.f32.mrb[49].mxu1 }
 0x3e2   : > { %5540 = vmatpush1.bf16.msra.mxu1 %v14429_v22 }
 0x3e3   : > { %5541 = vmatprep.subr.bf16.mxu1 %v17621_v35 }
 0x3e6   : > { %5542 = vmatpush1.bf16.msra.mxu1 %v14439_v48 }
 0x3e7   : > { %5789 = vmatprep.subr.bf16.mxu1 %v17621_v35 }
 0x3e9   : > { %5558 = vmatmul.mubr.bf16.vlgmr.msra.gmra.mrb[208].mxu1 %v13466_v20  ;;  %v15392_v20 = vpop.f32.mrb[50].mxu1 }
 0x3ea   : > { %5790 = vmatpush1.bf16.msra.mxu1 %v14359_v18  ;;  %10568 = vmatprep.mubr.msk.bf16.mxu1 %vm1305_vm2, %v13469_v36  ;;  %v2924_v36 = vpop.f32.mrb[51].mxu1 }
 0x3eb   : > { %5791 = vmatprep.subr.bf16.mxu1 %v17621_v35  ;;  %v13488_v36 = vld [vmem:[%s17611_s3 + $0x460] ss:$8 sps:$4 sm:$0xff]  }
 0x3ee   : > { %5792 = vmatpush1.bf16.msra.mxu1 %v14369_v23 }
 0x3ef   : > { %5793 = vmatprep.subr.bf16.mxu1 %v17621_v35 }
 0x3f1   : > { %5566 = vmatmul.mubr.bf16.gmra.mrb[212].mxu1 %v13471_v40  ;;  %v13478_v40 = vld [vmem:[%s17611_s3 + $0x440] ss:$8 sps:$4 sm:$0xff]  }
 0x3f2   : > { %5794 = vmatpush1.bf16.msra.mxu1 %v14379_v44  ;;  %10569 = vmatprep.mubr.msk.bf16.mxu1 %vm1305_vm2, %v13472_v45  ;;  %v15408_v45 = vpop.f32.mrb[52].mxu1 }
 0x3f3   : > { %5795 = vmatprep.subr.bf16.mxu1 %v17621_v35  ;;  %v2929_v55 = vpop.f32.mrb[53].mxu1 }
 0x3f6   : > { %5796 = vmatpush1.bf16.msra.mxu1 %v14389_v60 }
 0x3f7   : > { %5797 = vmatprep.subr.bf16.mxu1 %v17621_v35 }
 0x3f9   : > { %5574 = vmatmul.mubr.bf16.gmra.mrb[216].mxu1 %v13474_v26  ;;  %v15411_v26 = vpop.f32.mrb[54].mxu1 }
 0x3fa   : > { %5798 = vmatpush1.bf16.msra.mxu1 %v14399_v56  ;;  %10570 = vmatprep.mubr.msk.bf16.mxu1 %vm1305_vm2, %v13475_v63  ;;  %v2932_v63 = vpop.f32.mrb[55].mxu1 }
 0x3fb   : > { %5799 = vmatprep.subr.bf16.mxu1 %v17621_v35  ;;  %v15425_v43 = vpop.f32.mrb[56].mxu1 }
 0x3fe   : > { %5800 = vmatpush1.bf16.msra.mxu1 %v14409_v21 }
 0x3ff   : > { %5801 = vmatprep.subr.bf16.mxu1 %v17621_v35 }
 0x401   : > { %5582 = vmatmul.mubr.bf16.gmra.mrb[220].mxu1 %v13477_v12 }
 0x402   : > { %5802 = vmatpush1.bf16.msra.mxu1 %v14419_v27  ;;  %10611 = vmatprep.mubr.msk.bf16.mxu1 %vm1305_vm2, %v13480_v10  ;;  %v2937_v10 = vpop.f32.mrb[57].mxu1 }
 0x403   : > { %5803 = vmatprep.subr.bf16.mxu1 %v17621_v35  ;;  %v15428_v19 = vpop.f32.mrb[58].mxu1  ;;  %v13493_v10 = vld [vmem:[%s17611_s3 + $0x470] ss:$8 sps:$4 sm:$0xff]  }
 0x406   : > { %5804 = vmatpush1.bf16.msra.mxu1 %v14429_v22 }
 0x407   : > { %5805 = vmatprep.subr.bf16.mxu1 %v17621_v35 }
 0x40a   : > { %5806 = vmatpush1.bf16.msra.mxu1 %v14439_v48 }
 0x40b   : > { %6317 = vmatprep.subr.bf16.mxu1 %v17621_v35 }
 0x40d   : > { %5822 = vmatmul.mubr.bf16.vlgmr.msra.gmra.mrb[224].mxu1 %v13478_v40  ;;  %v2940_v40 = vpop.f32.mrb[59].mxu1 }
 0x40e   : > { %6318 = vmatpush1.bf16.msra.mxu1 %v14359_v18  ;;  %10612 = vmatprep.mubr.msk.bf16.mxu1 %vm1305_vm2, %v13481_v42  ;;  %v13491_v42 = vld [vmem:[%s17611_s3 + $0x474] ss:$8 sps:$4 sm:$0xff]  }
 0x40f   : > { %6319 = vmatprep.subr.bf16.mxu1 %v17621_v35 }
 0x412   : > { %6320 = vmatpush1.bf16.msra.mxu1 %v14369_v23 }
 0x413   : > { %6321 = vmatprep.subr.bf16.mxu1 %v17621_v35 }
 0x415   : > { %5830 = vmatmul.mubr.bf16.gmra.mrb[228].mxu1 %v13483_v62  ;;  %v15442_v62 = vpop.f32.mrb[60].mxu1 }
 0x416   : > { %6322 = vmatpush1.bf16.msra.mxu1 %v14379_v44  ;;  %10613 = vmatprep.mubr.msk.bf16.mxu1 %vm1305_vm2, %v13486_v33  ;;  %v2945_v63 = vpop.f32.mrb[61].mxu1 }
 0x417   : > { %6323 = vmatprep.subr.bf16.mxu1 %v17621_v35  ;;  %v15445_v33 = vpop.f32.mrb[62].mxu1 }
 0x418   : > { %v2948_v40 = vpop.f32.mrb[63].mxu1 }
 0x419   : > { %v15459_v63 = vpop.f32.mrb[64].mxu1 }
 0x41a   : > { %6324 = vmatpush1.bf16.msra.mxu1 %v14389_v60  ;;  %v3185_v40 = vpop.f32.mrb[65].mxu1 }
 0x41b   : > { %6325 = vmatprep.subr.bf16.mxu1 %v17621_v35  ;;  %v15462_v1 = vpop.f32.mrb[66].mxu1 }
 0x41c   : > { %v3188_v55 = vpop.f32.mrb[67].mxu1 }
 0x41d   : > { %5838 = vmatmul.mubr.bf16.gmra.mrb[232].mxu1 %v13488_v36  ;;  %v13498_v36 = vld [vmem:[%s17611_s3 + $0x4c4] ss:$8 sps:$4 sm:$0xff]   ;;  %v15478_v24 = vpop.f32.mrb[68].mxu1 }
 0x41e   : > { %6326 = vmatpush1.bf16.msra.mxu1 %v14399_v56  ;;  %10614 = vmatprep.mubr.msk.bf16.mxu1 %vm1305_vm2, %v13491_v42  ;;  %v3193_v4 = vpop.f32.mrb[69].mxu1 }
 0x41f   : > { %6327 = vmatprep.subr.bf16.mxu1 %v17621_v35  ;;  %v15481_v50 = vpop.f32.mrb[70].mxu1 }
 0x420   : > { %v3196_v32 = vpop.f32.mrb[71].mxu1 }
 0x421   : > { %v13505_v32 = vld [vmem:[%s17612_s4 + $0xc8] sm:$0xff]   ;;  %v15498_v17 = vpop.f32.mrb[72].mxu1 }
 0x422   : > { %6328 = vmatpush1.bf16.msra.mxu1 %v14409_v21 }
 0x423   : > { %6329 = vmatprep.subr.bf16.mxu1 %v17621_v35 }
 0x425   : > { %5846 = vmatmul.mubr.bf16.gmra.mrb[236].mxu1 %v13493_v10  ;;  %v13496_v10 = vld [vmem:[%s17611_s3 + $0x4c0] ss:$8 sps:$4 sm:$0xff]  }
 0x426   : > { %6330 = vmatpush1.bf16.msra.mxu1 %v14419_v27  ;;  %10699 = vmatprep.mubr.msk.bf16.mxu1 %vm1305_vm2, %v13498_v36  ;;  %v13502_v36 = vld [vmem:[%s17611_s3 + $0x4d4] ss:$8 sps:$4 sm:$0xff]  }
 0x427   : > { %6331 = vmatprep.subr.bf16.mxu1 %v17621_v35 }
 0x42a   : > { %6332 = vmatpush1.bf16.msra.mxu1 %v14429_v22 }
 0x42b   : > { %6333 = vmatprep.subr.bf16.mxu1 %v17621_v35 }
 0x42e   : > { %6334 = vmatpush1.bf16.msra.mxu1 %v14439_v48 }
 0x42f   : > { %v1863_v40 = vpop.f32.mrb[184].mxu0  ;;  %6581 = vmatprep.subr.bf16.mxu1 %v17621_v35 }
 0x430   : > { %v1865_v55 = vpop.f32.mrb[185].mxu0 }
 0x431   : > { %v1866_v12 = vpop.f32.mrb[186].mxu0  ;;  %6350 = vmatmul.mubr.bf16.vlgmr.msra.gmra.mrb[240].mxu1 %v13496_v10  ;;  %v13504_v55 = vld [vmem:[%s17611_s3 + $0x4d0] ss:$8 sps:$4 sm:$0xff]  }
 0x432   : > { %v1894_v34 = vpack.c.bf16 %v1866_v12, %v1863_v40  ;;  %6582 = vmatpush1.bf16.msra.mxu1 %v14359_v18  ;;  %v1868_v42 = vpop.f32.mrb[187].mxu0  ;;  %10700 = vmatprep.mubr.msk.bf16.mxu1 %vm1305_vm2, %v13502_v36  ;;  %v13507_v12 = vld [vmem:[%s17611_s3 + $0x4e4] ss:$8 sps:$4 sm:$0xff]  }
 0x433   : > { %6583 = vmatprep.subr.bf16.mxu1 %v17621_v35  ;;  %v3201_v42 = vpop.f32.mrb[73].mxu1 }
 0x434   : > { %12048 = vmatprep.mubr.bf16.mxu0 %v1894_v34  ;;  %v15501_v59 = vpop.f32.mrb[74].mxu1  ;;  %v13510_v42 = vld [vmem:[%s17612_s4 + $0xd8] sm:$0xff]  }
 0x436   : > { %6584 = vmatpush1.bf16.msra.mxu1 %v14369_v23 }
 0x437   : > { %v1871_v10 = vpop.f32.mrb[188].mxu0  ;;  %6585 = vmatprep.subr.bf16.mxu1 %v17621_v35 }
 0x438   : > { %v1873_v4 = vpop.f32.mrb[189].mxu0 }
 0x439   : > { %v1874_v34 = vpop.f32.mrb[190].mxu0  ;;  %6358 = vmatmul.mubr.bf16.gmra.mrb[244].mxu1 %v13504_v55  ;;  %v13509_v55 = vld [vmem:[%s17611_s3 + $0x4e0] ss:$8 sps:$4 sm:$0xff]  }
 0x43a   : > { %v1895_v36 = vpack.c.bf16 %v1874_v34, %v1871_v10  ;;  %6586 = vmatpush1.bf16.msra.mxu1 %v14379_v44  ;;  %v1876_v40 = vpop.f32.mrb[191].mxu0  ;;  %10701 = vmatprep.mubr.msk.bf16.mxu1 %vm1305_vm2, %v13507_v12  ;;  %v3204_v10 = vpop.f32.mrb[75].mxu1  ;;  %v13506_v12 = vld [vmem:[%s17612_s4 + $0xd0] sm:$0xff]  }
 0x43b   : > { %6587 = vmatprep.subr.bf16.mxu1 %v17621_v35  ;;  %v15521_v29 = vpop.f32.mrb[76].mxu1 }
 0x43c   : > { %12049 = vmatmul.mubr.bf16.vlgmr.msra.gmra.mrb[176].mxu0 %v1895_v36  ;;  %v3209_v52 = vpop.f32.mrb[77].mxu1 }
 0x43d   : > { %12057 = vmatpush3.bf16.msra.mxu0 %v15244_v46  ;;  %v13512_v46 = vld [vmem:[%s17611_s3 + $0x4f4] ss:$8 sps:$4 sm:$0xff]  }
 0x43e   : > { %6588 = vmatpush1.bf16.msra.mxu1 %v14389_v60  ;;  %12058 = vmatprep.subr.bf16.mxu0 %v13505_v32 }
 0x43f   : > { %6589 = vmatprep.subr.bf16.mxu1 %v17621_v35  ;;  %v1879_v4 = vpop.f32.mrb[192].mxu0 }
 0x440   : > { %v1881_v34 = vpop.f32.mrb[193].mxu0 }
 0x441   : > { %12059 = vmatpush3.bf16.msra.mxu0 %v13505_v32  ;;  %v1882_v36 = vpop.f32.mrb[194].mxu0  ;;  %6366 = vmatmul.mubr.bf16.gmra.mrb[248].mxu1 %v13509_v55  ;;  %v15525_v32 = vpop.f32.mrb[78].mxu1  ;;  %v13514_v55 = vld [vmem:[%s17611_s3 + $0x4f0] ss:$8 sps:$4 sm:$0xff]   ;;  %v13511_v34 = vld [vmem:[%s17612_s4 + $0xe0] sm:$0xff]  }
 0x442   : > { %6590 = vmatpush1.bf16.msra.mxu1 %v14399_v56  ;;  %12060 = vmatprep.subr.bf16.mxu0 %v13506_v12  ;;  %v1896_v40 = vpack.c.bf16 %v1882_v36, %v1879_v4  ;;  %v1884_v10 = vpop.f32.mrb[195].mxu0  ;;  %v3212_v4 = vpop.f32.mrb[79].mxu1 }
 0x443   : > { %6591 = vmatprep.subr.bf16.mxu1 %v17621_v35  ;;  %10702 = vmatprep.mubr.msk.bf16.mxu1 %vm1305_vm2, %v13512_v46  ;;  %v13515_v4 = vld [vmem:[%s17612_s4 + $0xe8] sm:$0xff]   ;;  %v15544_v41 = vpop.f32.mrb[80].mxu1 }
 0x444   : > { %12052 = vmatprep.mubr.bf16.mxu0 %v1896_v40  ;;  %v3449_v13 = vpop.f32.mrb[81].mxu1 }
 0x445   : > { %12061 = vmatpush3.bf16.msra.mxu0 %v13506_v12  ;;  %v13519_v12 = vld [vmem:[%s17611_s3 + $0x504] ss:$8 sps:$4 sm:$0xff]   ;;  %v13517_v13 = vld [vmem:[%s17611_s3 + $0x500] ss:$8 sps:$4 sm:$0xff]  }
 0x446   : > { %6592 = vmatpush1.bf16.msra.mxu1 %v14409_v21  ;;  %12062 = vmatprep.subr.bf16.mxu0 %v13510_v42 }
 0x447   : > { %v1887_v52 = vpop.f32.mrb[196].mxu0  ;;  %6593 = vmatprep.subr.bf16.mxu1 %v17621_v35 }
 0x448   : > { %v1889_v36 = vpop.f32.mrb[197].mxu0 }
 0x449   : > { %12063 = vmatpush3.bf16.msra.mxu0 %v13510_v42  ;;  %v1890_v40 = vpop.f32.mrb[198].mxu0  ;;  %6374 = vmatmul.mubr.bf16.gmra.mrb[252].mxu1 %v13514_v55  ;;  %v15548_v42 = vpop.f32.mrb[82].mxu1 }
 0x44a   : > { %v1897_v10 = vpack.c.bf16 %v1890_v40, %v1887_v52  ;;  %6594 = vmatpush1.bf16.msra.mxu1 %v14419_v27  ;;  %12064 = vmatprep.subr.bf16.mxu0 %v13511_v34  ;;  %v1892_v46 = vpop.f32.mrb[199].mxu0  ;;  %v3452_v55 = vpop.f32.mrb[83].mxu1  ;;  %v3478_v52 = vpack.c.bf16 %v15548_v42, %v15544_v41  ;;  %v13594_v41 = vld [vmem:[%s17612_s4 + $0x228] sm:$0xff]   ;;  %v13595_v42 = vld [vmem:[%s17612_s4 + $0x230] sm:$0xff]  }
 0x44b   : > { %6595 = vmatprep.subr.bf16.mxu1 %v17621_v35  ;;  %10743 = vmatprep.mubr.msk.bf16.mxu1 %vm1305_vm2, %v13519_v12  ;;  %v13516_v46 = vld [vmem:[%s17612_s4 + $0xf0] sm:$0xff]  }
 0x44c   : > { %12053 = vmatmul.mubr.bf16.gmra.mrb[180].mxu0 %v1897_v10  ;;  %v13522_v10 = vld [vmem:[%s17612_s4 + $0x108] sm:$0xff]   ;;  %v13523_v55 = vld [vmem:[%s17611_s3 + $0x510] ss:$8 sps:$4 sm:$0xff]  }
 0x44d   : > { %12065 = vmatpush3.bf16.msra.mxu0 %v13511_v34  ;;  %12072 = vmatprep.mubr.bf16.mxu0 %v2158_v51  ;;  %v13521_v51 = vld [vmem:[%s17612_s4 + $0x100] sm:$0xff]   ;;  %v15575_v34 = vpop.f32.mrb[84].mxu1 }
 0x44e   : > { %6596 = vmatpush1.bf16.msra.mxu1 %v14429_v22  ;;  %12066 = vmatprep.subr.bf16.mxu0 %v13515_v4  ;;  %v3457_v12 = vpop.f32.mrb[85].mxu1 }
 0x44f   : > { %6597 = vmatprep.subr.bf16.mxu1 %v17621_v35  ;;  %v15579_v36 = vpop.f32.mrb[86].mxu1  ;;  %v17626_v12 = vpack.c.bf16 %v15226_v31, %v15221_v39 }
 0x450   : > { %v3460_v40 = vpop.f32.mrb[87].mxu1 }
 0x451   : > { %12067 = vmatpush3.bf16.msra.mxu0 %v13515_v4  ;;  %v3479_v4 = vpack.c.bf16 %v15579_v36, %v15575_v34  ;;  %v13535_v40 = vld [vmem:[%s17611_s3 + $0x534] ss:$8 sps:$4 sm:$0xff]  }
 0x452   : > { %6598 = vmatpush1.bf16.msra.mxu1 %v14439_v48  ;;  %12068 = vmatprep.subr.bf16.mxu0 %v13516_v46  ;;  %v13600_v34 = vld [vmem:[%s17612_s4 + $0x258] sm:$0xff]  }
 0x453   : > { %6845 = vmatprep.subr.bf16.mxu1 %v17621_v35 }
 0x455   : > { %12069 = vmatpush3.bf16.msra.mxu0 %v13516_v46  ;;  %6614 = vmatmul.mubr.bf16.vlgmr.msra.gmra.mrb[0].mxu1 %v13517_v13  ;;  %v13530_v46 = vld [vmem:[%s17611_s3 + $0x524] ss:$8 sps:$4 sm:$0xff]   ;;  %v17625_v13 = vpack.c.bf16 %v15203_v8, %v15198_v28  ;;  %v13527_v28 = vld [vmem:[%s17612_s4 + $0x118] sm:$0xff]  }
 0x456   : > { %6846 = vmatpush1.bf16.msra.mxu1 %v14359_v18  ;;  %12070 = vmatprep.subr.bf16.mxu0 %v13520_v5 }
 0x457   : > { %6847 = vmatprep.subr.bf16.mxu1 %v17621_v35  ;;  %10744 = vmatprep.mubr.msk.bf16.mxu1 %vm1305_vm2, %v13525_v54  ;;  %v15604_v54 = vpop.f32.mrb[88].mxu1 }
 0x458   : > { %v3465_v3 = vpop.f32.mrb[89].mxu1 }
 0x459   : > { %12071 = vmatpush3.bf16.msra.mxu0 %v13520_v5  ;;  %v13526_v5 = vld [vmem:[%s17612_s4 + $0x110] sm:$0xff]   ;;  %v15608_v6 = vpop.f32.mrb[90].mxu1  ;;  %v13540_v3 = vld [vmem:[%s17611_s3 + $0x544] ss:$8 sps:$4 sm:$0xff]  }
 0x45a   : > { %6848 = vmatpush1.bf16.msra.mxu1 %v14369_v23  ;;  %12080 = vmatprep.subr.bf16.mxu0 %v13521_v51  ;;  %v3480_v8 = vpack.c.bf16 %v15608_v6, %v15604_v54  ;;  %v13601_v54 = vld [vmem:[%s17612_s4 + $0x260] sm:$0xff]   ;;  %v13602_v6 = vld [vmem:[%s17612_s4 + $0x268] sm:$0xff]  }
 0x45b   : > { %6849 = vmatprep.subr.bf16.mxu1 %v17621_v35 }
 0x45c   : > { %12073 = vmatmul.mubr.bf16.vlgmr.msra.gmra.mrb[176].mxu0 %v2159_v25  ;;  %v3468_v25 = vpop.f32.mrb[91].mxu1 }
 0x45d   : > { %12076 = vmatprep.mubr.bf16.mxu0 %v17625_v13  ;;  %12081 = vmatpush3.bf16.msra.mxu0 %v13521_v51  ;;  %v13528_v51 = vld [vmem:[%s17611_s3 + $0x520] ss:$8 sps:$4 sm:$0xff]   ;;  %v13536_v25 = vld [vmem:[%s17612_s4 + $0x130] sm:$0xff]  }
 0x45e   : > { %6850 = vmatpush1.bf16.msra.mxu1 %v14379_v44  ;;  %12082 = vmatprep.subr.bf16.mxu0 %v13522_v10  ;;  %v13532_v13 = vld [vmem:[%s17612_s4 + $0x128] sm:$0xff]  }
 0x45f   : > { %6851 = vmatprep.subr.bf16.mxu1 %v17621_v35  ;;  %6622 = vmatmul.mubr.bf16.gmra.mrb[4].mxu1 %v13523_v55  ;;  %v13531_v55 = vld [vmem:[%s17612_s4 + $0x120] sm:$0xff]  }
 0x460   : > { %10745 = vmatprep.mubr.msk.bf16.mxu1 %vm1305_vm2, %v13530_v46  ;;  %v15633_v46 = vpop.f32.mrb[92].mxu1 }
 0x461   : > { %12083 = vmatpush3.bf16.msra.mxu0 %v13522_v10  ;;  %v17627_v10 = vpack.c.bf16 %v15252_v14, %v15248_v47  ;;  %v3473_v39 = vpop.f32.mrb[93].mxu1 }
 0x462   : > { %6852 = vmatpush1.bf16.msra.mxu1 %v14389_v60  ;;  %12084 = vmatprep.subr.bf16.mxu0 %v13526_v5  ;;  %v15637_v31 = vpop.f32.mrb[94].mxu1  ;;  %v13538_v39 = vld [vmem:[%s17611_s3 + $0x540] ss:$8 sps:$4 sm:$0xff]  }
 0x463   : > { %6853 = vmatprep.subr.bf16.mxu1 %v17621_v35  ;;  %v3481_v47 = vpack.c.bf16 %v15637_v31, %v15633_v46  ;;  %v3476_v14 = vpop.f32.mrb[95].mxu1 }
 0x464   : > { %12077 = vmatmul.mubr.bf16.gmra.mrb[180].mxu0 %v17626_v12  ;;  %v13541_v14 = vld [vmem:[%s17612_s4 + $0x140] sm:$0xff]  }
 0x465   : > { %12085 = vmatpush3.bf16.msra.mxu0 %v13526_v5  ;;  %12096 = vmatprep.mubr.bf16.mxu0 %v17627_v10  ;;  %v13533_v5 = vld [vmem:[%s17611_s3 + $0x530] ss:$8 sps:$4 sm:$0xff]  }
 0x466   : > { %6854 = vmatpush1.bf16.msra.mxu1 %v14399_v56  ;;  %12086 = vmatprep.subr.bf16.mxu0 %v13527_v28  ;;  %v13537_v10 = vld [vmem:[%s17612_s4 + $0x138] sm:$0xff]  }
 0x467   : > { %6855 = vmatprep.subr.bf16.mxu1 %v17621_v35  ;;  %6630 = vmatmul.mubr.bf16.gmra.mrb[8].mxu1 %v13528_v51 }
 0x468   : > { %10746 = vmatprep.mubr.msk.bf16.mxu1 %vm1305_vm2, %v13535_v40 }
 0x469   : > { %12087 = vmatpush3.bf16.msra.mxu0 %v13527_v28  ;;  %v15656_v28 = vpop.f32.mrb[96].mxu1 }
 0x46a   : > { %6856 = vmatpush1.bf16.msra.mxu1 %v14409_v21  ;;  %12088 = vmatprep.subr.bf16.mxu0 %v13531_v55  ;;  %v3713_v51 = vpop.f32.mrb[97].mxu1 }
 0x46b   : > { %6857 = vmatprep.subr.bf16.mxu1 %v17621_v35  ;;  %v15660_v12 = vpop.f32.mrb[98].mxu1  ;;  %v17628_v51 = vpack.c.bf16 %v15271_v49, %v15268_v57  ;;  %v13543_v57 = vld [vmem:[%s17612_s4 + $0x150] sm:$0xff]   ;;  %v13551_v49 = vld [vmem:[%s17611_s3 + $0x564] ss:$8 sps:$4 sm:$0xff]  }
 0x46c   : > { %v3716_v40 = vpop.f32.mrb[99].mxu1 }
 0x46d   : > { %12089 = vmatpush3.bf16.msra.mxu0 %v13531_v55 }
 0x46e   : > { %6858 = vmatpush1.bf16.msra.mxu1 %v14419_v27  ;;  %12090 = vmatprep.subr.bf16.mxu0 %v13532_v13 }
 0x46f   : > { %6859 = vmatprep.subr.bf16.mxu1 %v17621_v35  ;;  %6638 = vmatmul.mubr.bf16.gmra.mrb[12].mxu1 %v13533_v5  ;;  %v13542_v5 = vld [vmem:[%s17612_s4 + $0x148] sm:$0xff]  }
 0x470   : > { %10787 = vmatprep.mubr.msk.bf16.mxu1 %vm1305_vm2, %v13540_v3  ;;  %v15684_v3 = vpop.f32.mrb[100].mxu1 }
 0x471   : > { %12091 = vmatpush3.bf16.msra.mxu0 %v13532_v13  ;;  %v13546_v13 = vld [vmem:[%s17611_s3 + $0x554] ss:$8 sps:$4 sm:$0xff]  }
 0x472   : > { %6860 = vmatpush1.bf16.msra.mxu1 %v14429_v22  ;;  %12092 = vmatprep.subr.bf16.mxu0 %v13536_v25 }
 0x473   : > { %6861 = vmatprep.subr.bf16.mxu1 %v17621_v35 }
 0x475   : > { %12093 = vmatpush3.bf16.msra.mxu0 %v13536_v25  ;;  %v3721_v25 = vpop.f32.mrb[101].mxu1 }
 0x476   : > { %6862 = vmatpush1.bf16.msra.mxu1 %v14439_v48  ;;  %12094 = vmatprep.subr.bf16.mxu0 %v13537_v10  ;;  %v15691_v40 = vpop.f32.mrb[102].mxu1  ;;  %v17630_v25 = vpack.c.bf16 %v15305_v15, %v15302_v38  ;;  %v13548_v38 = vld [vmem:[%s17612_s4 + $0x160] sm:$0xff]   ;;  %v13556_v15 = vld [vmem:[%s17611_s3 + $0x574] ss:$8 sps:$4 sm:$0xff]  }
 0x477   : > { %7109 = vmatprep.subr.bf16.mxu1 %v17621_v35  ;;  %v3743_v55 = vpack.c.bf16 %v15691_v40, %v15684_v3 }
 0x479   : > { %12095 = vmatpush3.bf16.msra.mxu0 %v13537_v10  ;;  %6878 = vmatmul.mubr.bf16.vlgmr.msra.gmra.mrb[16].mxu1 %v13538_v39  ;;  %v17629_v10 = vpack.c.bf16 %v15288_v7, %v15285_v2  ;;  %v13544_v39 = vld [vmem:[%s17611_s3 + $0x550] ss:$8 sps:$4 sm:$0xff]  }
 0x47a   : > { %7110 = vmatpush1.bf16.msra.mxu1 %v14359_v18  ;;  %12104 = vmatprep.subr.bf16.mxu0 %v13541_v14  ;;  %v13547_v2 = vld [vmem:[%s17612_s4 + $0x158] sm:$0xff]  }
 0x47b   : > { %7111 = vmatprep.subr.bf16.mxu1 %v17621_v35  ;;  %10788 = vmatprep.mubr.msk.bf16.mxu1 %vm1305_vm2, %v13546_v13  ;;  %v3724_v13 = vpop.f32.mrb[103].mxu1 }
 0x47c   : > { %12097 = vmatmul.mubr.bf16.vlgmr.msra.gmra.mrb[176].mxu0 %v17628_v51  ;;  %v15713_v7 = vpop.f32.mrb[104].mxu1  ;;  %v17631_v51 = vpack.c.bf16 %v15322_v11, %v15319_v16  ;;  %v13552_v16 = vld [vmem:[%s17612_s4 + $0x168] sm:$0xff]  }
 0x47d   : > { %12100 = vmatprep.mubr.bf16.mxu0 %v17629_v10  ;;  %12105 = vmatpush3.bf16.msra.mxu0 %v13541_v14  ;;  %v3729_v14 = vpop.f32.mrb[105].mxu1  ;;  %v13549_v10 = vld [vmem:[%s17611_s3 + $0x560] ss:$8 sps:$4 sm:$0xff]  }
 0x47e   : > { %7112 = vmatpush1.bf16.msra.mxu1 %v14369_v23  ;;  %12106 = vmatprep.subr.bf16.mxu0 %v13542_v5 }
 0x47f   : > { %7113 = vmatprep.subr.bf16.mxu1 %v17621_v35 }
 0x481   : > { %12107 = vmatpush3.bf16.msra.mxu0 %v13542_v5  ;;  %6886 = vmatmul.mubr.bf16.gmra.mrb[20].mxu1 %v13544_v39  ;;  %v15720_v5 = vpop.f32.mrb[106].mxu1 }
 0x482   : > { %7114 = vmatpush1.bf16.msra.mxu1 %v14379_v44  ;;  %12108 = vmatprep.subr.bf16.mxu0 %v13543_v57  ;;  %v3732_v13 = vpop.f32.mrb[107].mxu1 }
 0x483   : > { %7115 = vmatprep.subr.bf16.mxu1 %v17621_v35  ;;  %10789 = vmatprep.mubr.msk.bf16.mxu1 %vm1305_vm2, %v13551_v49  ;;  %v15742_v11 = vpop.f32.mrb[108].mxu1  ;;  %v13557_v13 = vld [vmem:[%s17612_s4 + $0x178] sm:$0xff]  }
 0x484   : > { %12101 = vmatmul.mubr.bf16.gmra.mrb[180].mxu0 %v17630_v25 }
 0x485   : > { %12109 = vmatpush3.bf16.msra.mxu0 %v13543_v57  ;;  %12120 = vmatprep.mubr.bf16.mxu0 %v17631_v51  ;;  %v3737_v57 = vpop.f32.mrb[109].mxu1  ;;  %v13553_v51 = vld [vmem:[%s17612_s4 + $0x170] sm:$0xff]  }
 0x486   : > { %7116 = vmatpush1.bf16.msra.mxu1 %v14389_v60  ;;  %12110 = vmatprep.subr.bf16.mxu0 %v13547_v2  ;;  %v15746_v49 = vpop.f32.mrb[110].mxu1 }
 0x487   : > { %7117 = vmatprep.subr.bf16.mxu1 %v17621_v35  ;;  %v3740_v25 = vpop.f32.mrb[111].mxu1 }
 0x489   : > { %12111 = vmatpush3.bf16.msra.mxu0 %v13547_v2  ;;  %6894 = vmatmul.mubr.bf16.gmra.mrb[24].mxu1 %v13549_v10  ;;  %v13554_v2 = vld [vmem:[%s17611_s3 + $0x570] ss:$8 sps:$4 sm:$0xff]   ;;  %v13561_v10 = vld [vmem:[%s17611_s3 + $0x584] ss:$8 sps:$4 sm:$0xff]  }
 0x48a   : > { %7118 = vmatpush1.bf16.msra.mxu1 %v14399_v56  ;;  %12112 = vmatprep.subr.bf16.mxu0 %v13548_v38 }
 0x48b   : > { %7119 = vmatprep.subr.bf16.mxu1 %v17621_v35  ;;  %10790 = vmatprep.mubr.msk.bf16.mxu1 %vm1305_vm2, %v13556_v15 }
 0x48d   : > { %12113 = vmatpush3.bf16.msra.mxu0 %v13548_v38  ;;  %v15765_v38 = vpop.f32.mrb[112].mxu1 }
 0x48e   : > { %7120 = vmatpush1.bf16.msra.mxu1 %v14409_v21  ;;  %12114 = vmatprep.subr.bf16.mxu0 %v13552_v16  ;;  %v3977_v15 = vpop.f32.mrb[113].mxu1 }
 0x48f   : > { %7121 = vmatprep.subr.bf16.mxu1 %v17621_v35  ;;  %v15769_v57 = vpop.f32.mrb[114].mxu1  ;;  %v13567_v15 = vld [vmem:[%s17611_s3 + $0x594] ss:$8 sps:$4 sm:$0xff]  }
 0x490   : > { %v3980_v25 = vpop.f32.mrb[115].mxu1 }
 0x491   : > { %12115 = vmatpush3.bf16.msra.mxu0 %v13552_v16  ;;  %6902 = vmatmul.mubr.bf16.gmra.mrb[28].mxu1 %v13554_v2  ;;  %v13558_v16 = vld [vmem:[%s17612_s4 + $0x180] sm:$0xff]   ;;  %v17633_v25 = vpack.c.bf16 %v15358_v58, %v15355_v53  ;;  %v13563_v2 = vld [vmem:[%s17612_s4 + $0x190] sm:$0xff]   ;;  %v15798_v14 = vpop.f32.mrb[116].mxu1  ;;  %v13564_v53 = vld [vmem:[%s17612_s4 + $0x198] sm:$0xff]  }
 0x492   : > { %7122 = vmatpush1.bf16.msra.mxu1 %v14419_v27  ;;  %12116 = vmatprep.subr.bf16.mxu0 %v13553_v51  ;;  %v3985_v39 = vpop.f32.mrb[117].mxu1  ;;  %v13565_v58 = vld [vmem:[%s17611_s3 + $0x590] ss:$8 sps:$4 sm:$0xff]  }
 0x493   : > { %7123 = vmatprep.subr.bf16.mxu1 %v17621_v35  ;;  %10831 = vmatprep.mubr.msk.bf16.mxu1 %vm1305_vm2, %v13561_v10  ;;  %v13562_v10 = vld [vmem:[%s17612_s4 + $0x188] sm:$0xff]  }
 0x494   : > { %v13572_v39 = vld [vmem:[%s17611_s3 + $0x5a4] ss:$8 sps:$4 sm:$0xff]  }
 0x495   : > { %12117 = vmatpush3.bf16.msra.mxu0 %v13553_v51  ;;  %v13559_v51 = vld [vmem:[%s17611_s3 + $0x580] ss:$8 sps:$4 sm:$0xff]  }
 0x496   : > { %7124 = vmatpush1.bf16.msra.mxu1 %v14429_v22  ;;  %12118 = vmatprep.subr.bf16.mxu0 %v13557_v13 }
 0x497   : > { %7125 = vmatprep.subr.bf16.mxu1 %v17621_v35 }
 0x499   : > { %12119 = vmatpush3.bf16.msra.mxu0 %v13557_v13  ;;  %v17632_v13 = vpack.c.bf16 %v15341_v37, %v15338_v30  ;;  %v15803_v30 = vpop.f32.mrb[118].mxu1 }
 0x49a   : > { %7126 = vmatpush1.bf16.msra.mxu1 %v14439_v48  ;;  %12128 = vmatprep.subr.bf16.mxu0 %v13558_v16  ;;  %v3988_v37 = vpop.f32.mrb[119].mxu1 }
 0x49b   : > { %7373 = vmatprep.subr.bf16.mxu1 %v17621_v35  ;;  %v13577_v37 = vld [vmem:[%s17611_s3 + $0x5b4] ss:$8 sps:$4 sm:$0xff]  }
 0x49c   : > { %12121 = vmatmul.mubr.bf16.vlgmr.msra.gmra.mrb[176].mxu0 %v17632_v13  ;;  %v15827_v13 = vpop.f32.mrb[120].mxu1 }
 0x49d   : > { %12124 = vmatprep.mubr.bf16.mxu0 %v17633_v25  ;;  %12129 = vmatpush3.bf16.msra.mxu0 %v13558_v16  ;;  %v4007_v16 = vpack.c.bf16 %v15803_v30, %v15798_v14  ;;  %v13570_v25 = vld [vmem:[%s17611_s3 + $0x5a0] ss:$8 sps:$4 sm:$0xff]  }
 0x49e   : > { %7142 = vmatmul.mubr.bf16.vlgmr.msra.gmra.mrb[32].mxu1 %v13559_v51  ;;  %12130 = vmatprep.subr.bf16.mxu0 %v13562_v10  ;;  %v17634_v51 = vpack.c.bf16 %v15375_v0, %v15372_v9  ;;  %v3993_v9 = vpop.f32.mrb[121].mxu1 }
 0x49f   : > { %7374 = vmatpush1.bf16.msra.mxu1 %v14359_v18  ;;  %10832 = vmatprep.mubr.msk.bf16.mxu1 %vm1305_vm2, %v13567_v15  ;;  %v13568_v15 = vld [vmem:[%s17612_s4 + $0x1a0] sm:$0xff]   ;;  %v15832_v0 = vpop.f32.mrb[122].mxu1  ;;  %v13574_v9 = vld [vmem:[%s17612_s4 + $0x1b8] sm:$0xff]  }
 0x4a0   : > { %7375 = vmatprep.subr.bf16.mxu1 %v17621_v35 }
 0x4a1   : > { %12131 = vmatpush3.bf16.msra.mxu0 %v13562_v10  ;;  %v17635_v10 = vpack.c.bf16 %v15392_v20, %v15389_v61  ;;  %v4008_v61 = vpack.c.bf16 %v15832_v0, %v15827_v13  ;;  %v3996_v20 = vpop.f32.mrb[123].mxu1 }
 0x4a2   : > { %12132 = vmatprep.subr.bf16.mxu0 %v13563_v2  ;;  %v13575_v20 = vld [vmem:[%s17611_s3 + $0x5b0] ss:$8 sps:$4 sm:$0xff]  }
 0x4a3   : > { %7376 = vmatpush1.bf16.msra.mxu1 %v14369_v23 }
 0x4a4   : > { %12125 = vmatmul.mubr.bf16.gmra.mrb[180].mxu0 %v17634_v51  ;;  %7377 = vmatprep.subr.bf16.mxu1 %v17621_v35 }
 0x4a5   : > { %12133 = vmatpush3.bf16.msra.mxu0 %v13563_v2  ;;  %12144 = vmatprep.mubr.bf16.mxu0 %v17635_v10  ;;  %v13569_v2 = vld [vmem:[%s17612_s4 + $0x1a8] sm:$0xff]  }
 0x4a6   : > { %12134 = vmatprep.subr.bf16.mxu0 %v13564_v53  ;;  %7150 = vmatmul.mubr.bf16.gmra.mrb[36].mxu1 %v13565_v58  ;;  %v15850_v58 = vpop.f32.mrb[124].mxu1 }
 0x4a7   : > { %7378 = vmatpush1.bf16.msra.mxu1 %v14379_v44  ;;  %10833 = vmatprep.mubr.msk.bf16.mxu1 %vm1305_vm2, %v13572_v39  ;;  %v4001_v39 = vpop.f32.mrb[125].mxu1 }
 0x4a8   : > { %7379 = vmatprep.subr.bf16.mxu1 %v17621_v35  ;;  %v15855_v51 = vpop.f32.mrb[126].mxu1 }
 0x4a9   : > { %12135 = vmatpush3.bf16.msra.mxu0 %v13564_v53  ;;  %v13573_v53 = vld [vmem:[%s17612_s4 + $0x1b0] sm:$0xff]   ;;  %v17648_v13 = vpack.c.bf16 %v15855_v51, %v15850_v58 }
 0x4aa   : > { %12136 = vmatprep.subr.bf16.mxu0 %v13568_v15 }
 0x4ab   : > { %7380 = vmatpush1.bf16.msra.mxu1 %v14389_v60 }
 0x4ac   : > { %7381 = vmatprep.subr.bf16.mxu1 %v17621_v35 }
 0x4ad   : > { %12137 = vmatpush3.bf16.msra.mxu0 %v13568_v15  ;;  %v4004_v15 = vpop.f32.mrb[127].mxu1 }
 0x4ae   : > { %12138 = vmatprep.subr.bf16.mxu0 %v13569_v2  ;;  %7158 = vmatmul.mubr.bf16.gmra.mrb[40].mxu1 %v13570_v25  ;;  %v13582_v25 = vld [vmem:[%s17611_s3 + $0x5c4] ss:$8 sps:$4 sm:$0xff]  }
 0x4af   : > { %7382 = vmatpush1.bf16.msra.mxu1 %v14399_v56  ;;  %10834 = vmatprep.mubr.msk.bf16.mxu1 %vm1305_vm2, %v13577_v37  ;;  %v15873_v37 = vpop.f32.mrb[128].mxu1 }
 0x4b0   : > { %7383 = vmatprep.subr.bf16.mxu1 %v17621_v35  ;;  %v4241_v39 = vpop.f32.mrb[129].mxu1 }
 0x4b1   : > { %12139 = vmatpush3.bf16.msra.mxu0 %v13569_v2  ;;  %v13578_v2 = vld [vmem:[%s17612_s4 + $0x1c0] sm:$0xff]   ;;  %v15878_v15 = vpop.f32.mrb[130].mxu1  ;;  %v13583_v39 = vld [vmem:[%s17612_s4 + $0x1d0] sm:$0xff]  }
 0x4b2   : > { %12140 = vmatprep.subr.bf16.mxu0 %v13573_v53  ;;  %v4244_v10 = vpop.f32.mrb[131].mxu1  ;;  %v17649_v0 = vpack.c.bf16 %v15878_v15, %v15873_v37  ;;  %v13618_v37 = vld [vmem:[%s17612_s4 + $0x2e8] sm:$0xff]   ;;  %v13619_v15 = vld [vmem:[%s17612_s4 + $0x2f0] sm:$0xff]  }
 0x4b3   : > { %7384 = vmatpush1.bf16.msra.mxu1 %v14409_v21  ;;  %v13580_v10 = vld [vmem:[%s17611_s3 + $0x5c0] ss:$8 sps:$4 sm:$0xff]  }
 0x4b4   : > { %7385 = vmatprep.subr.bf16.mxu1 %v17621_v35 }
 0x4b5   : > { %12141 = vmatpush3.bf16.msra.mxu0 %v13573_v53  ;;  %v13579_v53 = vld [vmem:[%s17612_s4 + $0x1c8] sm:$0xff]  }
 0x4b6   : > { %12142 = vmatprep.subr.bf16.mxu0 %v13574_v9  ;;  %7166 = vmatmul.mubr.bf16.gmra.mrb[44].mxu1 %v13575_v20 }
 0x4b7   : > { %7386 = vmatpush1.bf16.msra.mxu1 %v14419_v27  ;;  %10875 = vmatprep.mubr.msk.bf16.mxu1 %vm1305_vm2, %v13582_v25  ;;  %v17636_v25 = vpack.c.bf16 %v15411_v26, %v15408_v45  ;;  %v13584_v45 = vld [vmem:[%s17612_s4 + $0x1d8] sm:$0xff]   ;;  %v15904_v26 = vpop.f32.mrb[132].mxu1 }
 0x4b8   : > { %7387 = vmatprep.subr.bf16.mxu1 %v17621_v35 }
 0x4b9   : > { %12143 = vmatpush3.bf16.msra.mxu0 %v13574_v9  ;;  %v17637_v9 = vpack.c.bf16 %v15428_v19, %v15425_v43  ;;  %v4249_v43 = vpop.f32.mrb[133].mxu1  ;;  %v17638_v19 = vpack.c.bf16 %v15445_v33, %v15442_v62 }
 0x4ba   : > { %12152 = vmatprep.subr.bf16.mxu0 %v13578_v2 }
 0x4bb   : > { %7388 = vmatpush1.bf16.msra.mxu1 %v14429_v22 }
 0x4bc   : > { %12145 = vmatmul.mubr.bf16.vlgmr.msra.gmra.mrb[176].mxu0 %v17636_v25  ;;  %7389 = vmatprep.subr.bf16.mxu1 %v17621_v35 }
 0x4bd   : > { %12148 = vmatprep.mubr.bf16.mxu0 %v17637_v9  ;;  %12153 = vmatpush3.bf16.msra.mxu0 %v13578_v2  ;;  %v15911_v2 = vpop.f32.mrb[134].mxu1 }
 0x4be   : > { %12154 = vmatprep.subr.bf16.mxu0 %v13579_v53  ;;  %v4252_v9 = vpop.f32.mrb[135].mxu1 }
 0x4bf   : > { %7390 = vmatpush1.bf16.msra.mxu1 %v14439_v48  ;;  %v15926_v62 = vpop.f32.mrb[136].mxu1 }
 0x4c0   : > { %7637 = vmatprep.subr.bf16.mxu1 %v17621_v35  ;;  %v4257_v33 = vpop.f32.mrb[137].mxu1 }
 0x4c1   : > { %12155 = vmatpush3.bf16.msra.mxu0 %v13579_v53  ;;  %v17639_v53 = vpack.c.bf16 %v15462_v1, %v15459_v63  ;;  %v13586_v1 = vld [vmem:[%s17612_s4 + $0x1e8] sm:$0xff]   ;;  %v15930_v63 = vpop.f32.mrb[138].mxu1  ;;  %v17640_v33 = vpack.c.bf16 %v15481_v50, %v15478_v24  ;;  %v17643_v50 = vmov 0.0   ;;  %v13593_v24 = vld [vmem:[%s17612_s4 + $0x220] sm:$0xff]  }
 0x4c2   : > { %7406 = vmatmul.mubr.bf16.vlgmr.msra.gmra.mrb[48].mxu1 %v13580_v10  ;;  %12156 = vmatprep.subr.bf16.mxu0 %v13583_v39  ;;  %v13585_v10 = vld [vmem:[%s17612_s4 + $0x1e0] sm:$0xff]   ;;  %v4260_v43 = vpop.f32.mrb[139].mxu1 }
 0x4c3   : > { %7638 = vmatpush1.bf16.msra.mxu1 %v14359_v18 }
 0x4c4   : > { %12149 = vmatmul.mubr.bf16.gmra.mrb[180].mxu0 %v17638_v19  ;;  %7639 = vmatprep.subr.bf16.mxu1 %v17621_v35  ;;  %v13588_v19 = vld [vmem:[%s17612_s4 + $0x1f8] sm:$0xff]  }
 0x4c5   : > { %12157 = vmatpush3.bf16.msra.mxu0 %v13583_v39  ;;  %12168 = vmatprep.mubr.bf16.mxu0 %v17639_v53  ;;  %v15942_v53 = vpop.f32.mrb[140].mxu1 }
 0x4c6   : > { %12158 = vmatprep.subr.bf16.mxu0 %v13584_v45  ;;  %v4265_v9 = vpop.f32.mrb[141].mxu1 }
 0x4c7   : > { %7640 = vmatpush1.bf16.msra.mxu1 %v14369_v23  ;;  %v13590_v9 = vld [vmem:[%s17612_s4 + $0x208] sm:$0xff]  }
 0x4c8   : > { %7641 = vmatprep.subr.bf16.mxu1 %v17621_v35 }
 0x4c9   : > { %12159 = vmatpush3.bf16.msra.mxu0 %v13584_v45  ;;  %v13587_v45 = vld [vmem:[%s17612_s4 + $0x1f0] sm:$0xff]  }
 0x4ca   : > { %12160 = vmatprep.subr.bf16.mxu0 %v13585_v10 }
 0x4cb   : > { %7642 = vmatpush1.bf16.msra.mxu1 %v14379_v44 }
 0x4cc   : > { %7643 = vmatprep.subr.bf16.mxu1 %v17621_v35 }
 0x4cd   : > { %12161 = vmatpush3.bf16.msra.mxu0 %v13585_v10  ;;  %v15946_v10 = vpop.f32.mrb[142].mxu1 }
 0x4ce   : > { %12162 = vmatprep.subr.bf16.mxu0 %v13586_v1  ;;  %v4268_v43 = vpop.f32.mrb[143].mxu1 }
 0x4cf   : > { %7644 = vmatpush1.bf16.msra.mxu1 %v14389_v60 }
 0x4d0   : > { %7645 = vmatprep.subr.bf16.mxu1 %v17621_v35 }
 0x4d1   : > { %12163 = vmatpush3.bf16.msra.mxu0 %v13586_v1  ;;  %v13589_v1 = vld [vmem:[%s17612_s4 + $0x200] sm:$0xff]  }
 0x4d2   : > { %12164 = vmatprep.subr.bf16.mxu0 %v13587_v45 }
 0x4d3   : > { %7646 = vmatpush1.bf16.msra.mxu1 %v14399_v56 }
 0x4d4   : > { %7647 = vmatprep.subr.bf16.mxu1 %v17621_v35 }
 0x4d5   : > { %12165 = vmatpush3.bf16.msra.mxu0 %v13587_v45  ;;  %v15958_v45 = vpop.f32.mrb[144].mxu1 }
 0x4d6   : > { %12166 = vmatprep.subr.bf16.mxu0 %v13588_v19  ;;  %v4505_v43 = vpop.f32.mrb[145].mxu1 }
 0x4d7   : > { %7648 = vmatpush1.bf16.msra.mxu1 %v14409_v21  ;;  %v15965_v39 = vpop.f32.mrb[146].mxu1  ;;  %v13591_v43 = vld [vmem:[%s17612_s4 + $0x210] sm:$0xff]  }
 0x4d8   : > { %7649 = vmatprep.subr.bf16.mxu1 %v17621_v35  ;;  %v4534_v25 = vpack.c.bf16 %v15965_v39, %v15958_v45  ;;  %v4508_v20 = vpop.f32.mrb[147].mxu1 }
 0x4d9   : > { %12167 = vmatpush3.bf16.msra.mxu0 %v13588_v19  ;;  %v17641_v19 = vpack.c.bf16 %v15501_v59, %v15498_v17  ;;  %v13592_v59 = vld [vmem:[%s17612_s4 + $0x218] sm:$0xff]   ;;  %v17642_v17 = vpack.c.bf16 %v15525_v32, %v15521_v29  ;;  %v15991_v20 = vpop.f32.mrb[148].mxu1 }
 0x4da   : > { %12176 = vmatprep.subr.bf16.mxu0 %v13589_v1 }
 0x4db   : > { %7650 = vmatpush1.bf16.msra.mxu1 %v14419_v27 }
 0x4dc   : > { %12169 = vmatmul.mubr.bf16.vlgmr.msra.gmra.mrb[176].mxu0 %v17640_v33  ;;  %7651 = vmatprep.subr.bf16.mxu1 %v17621_v35  ;;  %v4513_v33 = vpop.f32.mrb[149].mxu1 }
 0x4dd   : > { %12172 = vmatprep.mubr.bf16.mxu0 %v17641_v19  ;;  %12177 = vmatpush3.bf16.msra.mxu0 %v13589_v1  ;;  %v15993_v1 = vpop.f32.mrb[150].mxu1 }
 0x4de   : > { %12178 = vmatprep.subr.bf16.mxu0 %v13590_v9  ;;  %v4535_v29 = vpack.c.bf16 %v15993_v1, %v15991_v20  ;;  %v4516_v32 = vpop.f32.mrb[151].mxu1  ;;  %v13632_v1 = vld [vmem:[%s17612_s4 + $0x358] sm:$0xff]  }
 0x4df   : > { %7652 = vmatpush1.bf16.msra.mxu1 %v14429_v22 }
 0x4e0   : > { %7653 = vmatprep.subr.bf16.mxu1 %v17621_v35 }
 0x4e1   : > { %12179 = vmatpush3.bf16.msra.mxu0 %v13590_v9 }
 0x4e2   : > { %12180 = vmatprep.subr.bf16.mxu0 %v13591_v43 }
 0x4e3   : > { %7654 = vmatpush1.bf16.msra.mxu1 %v14439_v48 }
 0x4e4   : > { %12173 = vmatmul.mubr.bf16.gmra.mrb[180].mxu0 %v17642_v17  ;;  %12584 = vmatprep.subr.bf16.mxu1 %v17643_v50  ;;  %v13596_v17 = vld [vmem:[%s17612_s4 + $0x238] sm:$0xff]  }
 0x4e5   : > { %12181 = vmatpush3.bf16.msra.mxu0 %v13591_v43  ;;  %12192 = vmatprep.mubr.bf16.mxu0 %v3478_v52  ;;  %v16003_v52 = vpop.f32.mrb[152].mxu1 }
 0x4e6   : > { %12182 = vmatprep.subr.bf16.mxu0 %v13592_v59  ;;  %v4521_v9 = vpop.f32.mrb[153].mxu1 }
 0x4e7   : > { %v16005_v19 = vpop.f32.mrb[154].mxu1 }
 0x4e8   : > { %v4536_v43 = vpack.c.bf16 %v16005_v19, %v16003_v52  ;;  %v13633_v19 = vld [vmem:[%s17612_s4 + $0x360] sm:$0xff]  }
 0x4e9   : > { %12183 = vmatpush3.bf16.msra.mxu0 %v13592_v59  ;;  %v4524_v59 = vpop.f32.mrb[155].mxu1 }
 0x4ea   : > { %12184 = vmatprep.subr.bf16.mxu0 %v13593_v24  ;;  %v16015_v33 = vpop.f32.mrb[156].mxu1 }
 0x4eb   : > { %v4529_v32 = vpop.f32.mrb[157].mxu1 }
 0x4ec   : > { %v16017_v9 = vpop.f32.mrb[158].mxu1 }
 0x4ed   : > { %12185 = vmatpush3.bf16.msra.mxu0 %v13593_v24  ;;  %v13597_v24 = vld [vmem:[%s17612_s4 + $0x240] sm:$0xff]   ;;  %v4532_v59 = vpop.f32.mrb[159].mxu1 }
 0x4ee   : > { %12186 = vmatprep.subr.bf16.mxu0 %v13594_v41  ;;  %v16033_v32 = vpop.f32.mrb[160].mxu1 }
 0x4ef   : > { %v4769_v59 = vpop.f32.mrb[161].mxu1 }
 0x4f0   : > { %v16035_v35 = vpop.f32.mrb[162].mxu1 }
 0x4f1   : > { %12187 = vmatpush3.bf16.msra.mxu0 %v13594_v41  ;;  %v4772_v41 = vpop.f32.mrb[163].mxu1  ;;  %v4798_v36 = vpack.c.bf16 %v16035_v35, %v16033_v32  ;;  %v13634_v35 = vld [vmem:[%s17612_s4 + $0x368] sm:$0xff]   ;;  %v13635_v32 = vld [vmem:[%s17612_s4 + $0x370] sm:$0xff]  }
 0x4f2   : > { %12188 = vmatprep.subr.bf16.mxu0 %v13595_v42 }
 0x4f5   : > { %12189 = vmatpush3.bf16.msra.mxu0 %v13595_v42  ;;  %v13598_v42 = vld [vmem:[%s17612_s4 + $0x248] sm:$0xff]  }
 0x4f6   : > { %12190 = vmatprep.subr.bf16.mxu0 %v13596_v17 }
 0x4f9   : > { %12191 = vmatpush3.bf16.msra.mxu0 %v13596_v17  ;;  %v13599_v17 = vld [vmem:[%s17612_s4 + $0x250] sm:$0xff]  }
 0x4fa   : > { %12200 = vmatprep.subr.bf16.mxu0 %v13597_v24 }
 0x4fc   : > { %12193 = vmatmul.mubr.bf16.vlgmr.msra.gmra.mrb[176].mxu0 %v3479_v4  ;;  %v17644_v4 = vpack.c.bf16 %v15660_v12, %v15656_v28  ;;  %v13603_v12 = vld [vmem:[%s17612_s4 + $0x270] sm:$0xff]  }
 0x4fd   : > { %12196 = vmatprep.mubr.bf16.mxu0 %v3480_v8  ;;  %12201 = vmatpush3.bf16.msra.mxu0 %v13597_v24  ;;  %v16054_v8 = vpop.f32.mrb[164].mxu1  ;;  %v13604_v24 = vld [vmem:[%s17612_s4 + $0x278] sm:$0xff]  }
 0x4fe   : > { %12202 = vmatprep.subr.bf16.mxu0 %v13598_v42  ;;  %v4777_v46 = vpop.f32.mrb[165].mxu1 }
 0x4ff   : > { %v16056_v31 = vpop.f32.mrb[166].mxu1 }
 0x500   : > { %v4780_v28 = vpop.f32.mrb[167].mxu1 }
 0x501   : > { %12203 = vmatpush3.bf16.msra.mxu0 %v13598_v42  ;;  %v16066_v41 = vpop.f32.mrb[168].mxu1 }
 0x502   : > { %12204 = vmatprep.subr.bf16.mxu0 %v13599_v17  ;;  %v4785_v42 = vpop.f32.mrb[169].mxu1 }
 0x504   : > { %12197 = vmatmul.mubr.bf16.gmra.mrb[180].mxu0 %v3481_v47  ;;  %v4799_v47 = vpack.c.bf16 %v16056_v31, %v16054_v8  ;;  %v13641_v8 = vld [vmem:[%s17612_s4 + $0x3a0] sm:$0xff]  }
 0x505   : > { %12205 = vmatpush3.bf16.msra.mxu0 %v13599_v17  ;;  %12216 = vmatprep.mubr.bf16.mxu0 %v17644_v4  ;;  %v16068_v17 = vpop.f32.mrb[170].mxu1  ;;  %v13605_v4 = vld [vmem:[%s17612_s4 + $0x280] sm:$0xff]  }
 0x506   : > { %12206 = vmatprep.subr.bf16.mxu0 %v13600_v34  ;;  %v4800_v59 = vpack.c.bf16 %v16068_v17, %v16066_v41  ;;  %v13642_v41 = vld [vmem:[%s17612_s4 + $0x3a8] sm:$0xff]  }
 0x509   : > { %12207 = vmatpush3.bf16.msra.mxu0 %v13600_v34  ;;  %v4788_v34 = vpop.f32.mrb[171].mxu1 }
 0x50a   : > { %12208 = vmatprep.subr.bf16.mxu0 %v13601_v54  ;;  %v13607_v34 = vld [vmem:[%s17612_s4 + $0x290] sm:$0xff]  }
 0x50d   : > { %12209 = vmatpush3.bf16.msra.mxu0 %v13601_v54  ;;  %v13606_v54 = vld [vmem:[%s17612_s4 + $0x288] sm:$0xff]  }
 0x50e   : > { %12210 = vmatprep.subr.bf16.mxu0 %v13602_v6 }
 0x511   : > { %12211 = vmatpush3.bf16.msra.mxu0 %v13602_v6  ;;  %v16078_v6 = vpop.f32.mrb[172].mxu1 }
 0x512   : > { %12212 = vmatprep.subr.bf16.mxu0 %v13603_v12  ;;  %v4793_v46 = vpop.f32.mrb[173].mxu1 }
 0x513   : > { %v16083_v28 = vpop.f32.mrb[174].mxu1 }
 0x514   : > { %v4796_v42 = vpop.f32.mrb[175].mxu1 }
 0x515   : > { %12213 = vmatpush3.bf16.msra.mxu0 %v13603_v12  ;;  %v17645_v12 = vpack.c.bf16 %v15720_v5, %v15713_v7  ;;  %v16096_v3 = vpop.f32.mrb[176].mxu1  ;;  %v17646_v7 = vpack.c.bf16 %v15746_v49, %v15742_v11  ;;  %v13610_v11 = vld [vmem:[%s17612_s4 + $0x2a8] sm:$0xff]   ;;  %v13611_v49 = vld [vmem:[%s17612_s4 + $0x2b0] sm:$0xff]  }
 0x516   : > { %12214 = vmatprep.subr.bf16.mxu0 %v13604_v24  ;;  %v5033_v40 = vpop.f32.mrb[177].mxu1 }
 0x517   : > { %v16101_v5 = vpop.f32.mrb[178].mxu1  ;;  %v13612_v40 = vld [vmem:[%s17612_s4 + $0x2b8] sm:$0xff]  }
 0x518   : > { %v5036_v46 = vpop.f32.mrb[179].mxu1 }
 0x519   : > { %12215 = vmatpush3.bf16.msra.mxu0 %v13604_v24  ;;  %v4801_v24 = vpack.c.bf16 %v16083_v28, %v16078_v6  ;;  %v13643_v28 = vld [vmem:[%s17612_s4 + $0x3b0] sm:$0xff]  }
 0x51a   : > { %12224 = vmatprep.subr.bf16.mxu0 %v13605_v4 }
 0x51c   : > { %12217 = vmatmul.mubr.bf16.vlgmr.msra.gmra.mrb[176].mxu0 %v3743_v55  ;;  %v13608_v55 = vld [vmem:[%s17612_s4 + $0x298] sm:$0xff]  }
 0x51d   : > { %12220 = vmatprep.mubr.bf16.mxu0 %v17645_v12  ;;  %12225 = vmatpush3.bf16.msra.mxu0 %v13605_v4  ;;  %v17647_v4 = vpack.c.bf16 %v15769_v57, %v15765_v38  ;;  %v13609_v12 = vld [vmem:[%s17612_s4 + $0x2a0] sm:$0xff]   ;;  %v16117_v38 = vpop.f32.mrb[180].mxu1 }
 0x51e   : > { %12226 = vmatprep.subr.bf16.mxu0 %v13606_v54  ;;  %v5041_v57 = vpop.f32.mrb[181].mxu1 }
 0x51f   : > { %v16119_v42 = vpop.f32.mrb[182].mxu1 }
 0x521   : > { %12227 = vmatpush3.bf16.msra.mxu0 %v13606_v54  ;;  %v5062_v54 = vpack.c.bf16 %v16101_v5, %v16096_v3  ;;  %v13644_v5 = vld [vmem:[%s17612_s4 + $0x3b8] sm:$0xff]  }
 0x522   : > { %12228 = vmatprep.subr.bf16.mxu0 %v13607_v34 }
 0x524   : > { %12221 = vmatmul.mubr.bf16.gmra.mrb[180].mxu0 %v17646_v7  ;;  %v13613_v7 = vld [vmem:[%s17612_s4 + $0x2c0] sm:$0xff]  }
 0x525   : > { %12229 = vmatpush3.bf16.msra.mxu0 %v13607_v34  ;;  %12240 = vmatprep.mubr.bf16.mxu0 %v17647_v4  ;;  %v5063_v34 = vpack.c.bf16 %v16119_v42, %v16117_v38  ;;  %v13649_v42 = vld [vmem:[%s17612_s4 + $0x3e0] sm:$0xff]  }
 0x526   : > { %12230 = vmatprep.subr.bf16.mxu0 %v13608_v55 }
 0x529   : > { %12231 = vmatpush3.bf16.msra.mxu0 %v13608_v55  ;;  %v5044_v55 = vpop.f32.mrb[183].mxu1 }
 0x52a   : > { %12232 = vmatprep.subr.bf16.mxu0 %v13609_v12  ;;  %v16129_v4 = vpop.f32.mrb[184].mxu1  ;;  %v13615_v55 = vld [vmem:[%s17612_s4 + $0x2d0] sm:$0xff]  }
 0x52b   : > { %v5049_v46 = vpop.f32.mrb[185].mxu1 }
 0x52d   : > { %12233 = vmatpush3.bf16.msra.mxu0 %v13609_v12  ;;  %v16131_v12 = vpop.f32.mrb[186].mxu1 }
 0x52e   : > { %12234 = vmatprep.subr.bf16.mxu0 %v13610_v11  ;;  %v5052_v57 = vpop.f32.mrb[187].mxu1 }
 0x531   : > { %12235 = vmatpush3.bf16.msra.mxu0 %v13610_v11  ;;  %v5064_v11 = vpack.c.bf16 %v16131_v12, %v16129_v4  ;;  %v13651_v4 = vld [vmem:[%s17612_s4 + $0x3f0] sm:$0xff]   ;;  %v13652_v12 = vld [vmem:[%s17612_s4 + $0x3f8] sm:$0xff]  }
 0x532   : > { %12236 = vmatprep.subr.bf16.mxu0 %v13611_v49 }
 0x535   : > { %12237 = vmatpush3.bf16.msra.mxu0 %v13611_v49  ;;  %v13614_v49 = vld [vmem:[%s17612_s4 + $0x2c8] sm:$0xff]  }
 0x536   : > { %12238 = vmatprep.subr.bf16.mxu0 %v13612_v40 }
 0x539   : > { %12239 = vmatpush3.bf16.msra.mxu0 %v13612_v40  ;;  %v16147_v40 = vpop.f32.mrb[188].mxu1 }
 0x53a   : > { %12248 = vmatprep.subr.bf16.mxu0 %v13613_v7  ;;  %v5057_v46 = vpop.f32.mrb[189].mxu1 }
 0x53b   : > { %v16149_v57 = vpop.f32.mrb[190].mxu1 }
 0x53c   : > { %12241 = vmatmul.mubr.bf16.vlgmr.msra.gmra.mrb[176].mxu0 %v4007_v16  ;;  %v5065_v14 = vpack.c.bf16 %v16149_v57, %v16147_v40  ;;  %v5060_v30 = vpop.f32.mrb[191].mxu1  ;;  %v13616_v16 = vld [vmem:[%s17612_s4 + $0x2d8] sm:$0xff]  }
 0x53d   : > { %12244 = vmatprep.mubr.bf16.mxu0 %v4008_v61  ;;  %12249 = vmatpush3.bf16.msra.mxu0 %v13613_v7  ;;  %v13617_v61 = vld [vmem:[%s17612_s4 + $0x2e0] sm:$0xff]   ;;  %v16165_v7 = vpop.f32.mrb[192].mxu1  ;;  %v13681_v40 = vld [vmem:[%s17611_s3 + $0x5d0] ss:$8 sps:$4 sm:$0xff]   ;;  %v13683_v57 = vld [vmem:[%s17611_s3 + $0x5d4] ss:$8 sps:$4 sm:$0xff]  }
 0x53e   : > { %12250 = vmatprep.subr.bf16.mxu0 %v13614_v49  ;;  %10876 = vmatprep.mubr.msk.bf16.mxu1 %vm1305_vm2, %v13683_v57 }
 0x53f   : > { %7414 = vmatmul.mubr.bf16.gmra.mrb[52].mxu1 %v13681_v40 }
 0x541   : > { %12251 = vmatpush3.bf16.msra.mxu0 %v13614_v49  ;;  %v5297_v49 = vpop.f32.mrb[193].mxu1 }
 0x542   : > { %12252 = vmatprep.subr.bf16.mxu0 %v13615_v55  ;;  %v16167_v46 = vpop.f32.mrb[194].mxu1  ;;  %v13621_v49 = vld [vmem:[%s17612_s4 + $0x300] sm:$0xff]  }
 0x543   : > { %v5300_v51 = vpop.f32.mrb[195].mxu1  ;;  %v17654_v38 = vpack.c.bf16 %v16167_v46, %v16165_v7  ;;  %v13654_v7 = vld [vmem:[%s17612_s4 + $0x408] sm:$0xff]  }
 0x544   : > { %12245 = vmatmul.mubr.bf16.gmra.mrb[180].mxu0 %v17648_v13  ;;  %v16180_v30 = vpop.f32.mrb[196].mxu1  ;;  %v13622_v51 = vld [vmem:[%s17612_s4 + $0x308] sm:$0xff]  }
 0x545   : > { %12253 = vmatpush3.bf16.msra.mxu0 %v13615_v55  ;;  %12264 = vmatprep.mubr.bf16.mxu0 %v17649_v0  ;;  %v13620_v55 = vld [vmem:[%s17612_s4 + $0x2f8] sm:$0xff]  }
 0x546   : > { %12254 = vmatprep.subr.bf16.mxu0 %v13616_v16 }
 0x549   : > { %12255 = vmatpush3.bf16.msra.mxu0 %v13616_v16  ;;  %v5305_v16 = vpop.f32.mrb[197].mxu1 }
 0x54a   : > { %12256 = vmatprep.subr.bf16.mxu0 %v13617_v61  ;;  %v16182_v13 = vpop.f32.mrb[198].mxu1 }
 0x54b   : > { %v17655_v46 = vpack.c.bf16 %v16182_v13, %v16180_v30  ;;  %v13689_v30 = vld [vmem:[%s17611_s3 + $0x5f4] ss:$8 sps:$4 sm:$0xff]  }
 0x54c   : > { %v13656_v13 = vld [vmem:[%s17612_s4 + $0x418] sm:$0xff]  }
 0x54d   : > { %12257 = vmatpush3.bf16.msra.mxu0 %v13617_v61  ;;  %v5308_v61 = vpop.f32.mrb[199].mxu1 }
 0x54e   : > { %12258 = vmatprep.subr.bf16.mxu0 %v13618_v37  ;;  %v17651_v61 = vpack.c.bf16 %v15930_v63, %v15926_v62  ;;  %v17652_v63 = vpack.c.bf16 %v15946_v10, %v15942_v53  ;;  %v13626_v53 = vld [vmem:[%s17612_s4 + $0x328] sm:$0xff]  }
 0x551   : > { %12259 = vmatpush3.bf16.msra.mxu0 %v13618_v37  ;;  %v16192_v37 = vpop.f32.mrb[200].mxu1 }
 0x552   : > { %12260 = vmatprep.subr.bf16.mxu0 %v13619_v15  ;;  %v5313_v16 = vpop.f32.mrb[201].mxu1 }
 0x553   : > { %v16197_v0 = vpop.f32.mrb[202].mxu1  ;;  %v13623_v16 = vld [vmem:[%s17612_s4 + $0x310] sm:$0xff]  }
 0x554   : > { %v5316_v58 = vpop.f32.mrb[203].mxu1 }
 0x555   : > { %12261 = vmatpush3.bf16.msra.mxu0 %v13619_v15  ;;  %v17650_v15 = vpack.c.bf16 %v15911_v2, %v15904_v26  ;;  %v13624_v26 = vld [vmem:[%s17612_s4 + $0x318] sm:$0xff]   ;;  %v16210_v2 = vpop.f32.mrb[204].mxu1 }
 0x556   : > { %12262 = vmatprep.subr.bf16.mxu0 %v13620_v55  ;;  %v5321_v62 = vpop.f32.mrb[205].mxu1 }
 0x559   : > { %12263 = vmatpush3.bf16.msra.mxu0 %v13620_v55  ;;  %v5328_v55 = vpack.c.bf16 %v16197_v0, %v16192_v37  ;;  %v13657_v0 = vld [vmem:[%s17612_s4 + $0x420] sm:$0xff]   ;;  %v13687_v37 = vld [vmem:[%s17611_s3 + $0x5f0] ss:$8 sps:$4 sm:$0xff]  }
 0x55a   : > { %12272 = vmatprep.subr.bf16.mxu0 %v13621_v49 }
 0x55c   : > { %12265 = vmatmul.mubr.bf16.vlgmr.msra.gmra.mrb[176].mxu0 %v17650_v15  ;;  %v13625_v15 = vld [vmem:[%s17612_s4 + $0x320] sm:$0xff]  }
 0x55d   : > { %12268 = vmatprep.mubr.bf16.mxu0 %v17651_v61  ;;  %12273 = vmatpush3.bf16.msra.mxu0 %v13621_v49  ;;  %v16215_v49 = vpop.f32.mrb[206].mxu1 }
 0x55e   : > { %12274 = vmatprep.subr.bf16.mxu0 %v13622_v51  ;;  %v5329_v58 = vpack.c.bf16 %v16215_v49, %v16210_v2  ;;  %v13658_v2 = vld [vmem:[%s17612_s4 + $0x428] sm:$0xff]   ;;  %v13659_v49 = vld [vmem:[%s17612_s4 + $0x430] sm:$0xff]  }
 0x561   : > { %12275 = vmatpush3.bf16.msra.mxu0 %v13622_v51  ;;  %v5324_v51 = vpop.f32.mrb[207].mxu1 }
 0x562   : > { %12276 = vmatprep.subr.bf16.mxu0 %v13623_v16  ;;  %v16228_v10 = vpop.f32.mrb[208].mxu1 }
 0x563   : > { %v5561_v61 = vpop.f32.mrb[209].mxu1 }
 0x564   : > { %12269 = vmatmul.mubr.bf16.gmra.mrb[180].mxu0 %v17652_v63  ;;  %v16230_v39 = vpop.f32.mrb[210].mxu1  ;;  %v13629_v63 = vld [vmem:[%s17612_s4 + $0x340] sm:$0xff]  }
 0x565   : > { %12277 = vmatpush3.bf16.msra.mxu0 %v13623_v16  ;;  %12288 = vmatprep.mubr.bf16.mxu0 %v4534_v25  ;;  %v5590_v25 = vpack.c.bf16 %v16230_v39, %v16228_v10  ;;  %v5564_v45 = vpop.f32.mrb[211].mxu1  ;;  %v13627_v16 = vld [vmem:[%s17612_s4 + $0x330] sm:$0xff]   ;;  %v13660_v39 = vld [vmem:[%s17612_s4 + $0x438] sm:$0xff]  }
 0x566   : > { %12278 = vmatprep.subr.bf16.mxu0 %v13624_v26  ;;  %v16240_v62 = vpop.f32.mrb[212].mxu1  ;;  %v13630_v45 = vld [vmem:[%s17612_s4 + $0x348] sm:$0xff]   ;;  %v13695_v10 = vld [vmem:[%s17611_s3 + $0x614] ss:$8 sps:$4 sm:$0xff]  }
 0x567   : > { %v5569_v51 = vpop.f32.mrb[213].mxu1 }
 0x569   : > { %12279 = vmatpush3.bf16.msra.mxu0 %v13624_v26  ;;  %v13628_v26 = vld [vmem:[%s17612_s4 + $0x338] sm:$0xff]  }
 0x56a   : > { %12280 = vmatprep.subr.bf16.mxu0 %v13625_v15 }
 0x56d   : > { %12281 = vmatpush3.bf16.msra.mxu0 %v13625_v15  ;;  %v16245_v15 = vpop.f32.mrb[214].mxu1 }
 0x56e   : > { %12282 = vmatprep.subr.bf16.mxu0 %v13626_v53  ;;  %v5572_v61 = vpop.f32.mrb[215].mxu1 }
 0x571   : > { %12283 = vmatpush3.bf16.msra.mxu0 %v13626_v53 }
 0x572   : > { %12284 = vmatprep.subr.bf16.mxu0 %v13627_v16 }
 0x575   : > { %12285 = vmatpush3.bf16.msra.mxu0 %v13627_v16  ;;  %v16258_v16 = vpop.f32.mrb[216].mxu1 }
 0x576   : > { %12286 = vmatprep.subr.bf16.mxu0 %v13628_v26  ;;  %v5577_v51 = vpop.f32.mrb[217].mxu1 }
 0x577   : > { %v16263_v61 = vpop.f32.mrb[218].mxu1 }
 0x578   : > { %v5580_v53 = vpop.f32.mrb[219].mxu1  ;;  %v5592_v20 = vpack.c.bf16 %v16263_v61, %v16258_v16  ;;  %v13665_v16 = vld [vmem:[%s17612_s4 + $0x460] sm:$0xff]   ;;  %v13703_v61 = vld [vmem:[%s17611_s3 + $0x630] ss:$8 sps:$4 sm:$0xff]  }
 0x579   : > { %12287 = vmatpush3.bf16.msra.mxu0 %v13628_v26  ;;  %v13631_v26 = vld [vmem:[%s17612_s4 + $0x350] sm:$0xff]   ;;  %v16276_v52 = vpop.f32.mrb[220].mxu1 }
 0x57a   : > { %12296 = vmatprep.subr.bf16.mxu0 %v13629_v63 }
 0x57c   : > { %12289 = vmatmul.mubr.bf16.vlgmr.msra.gmra.mrb[176].mxu0 %v4535_v29  ;;  %v17653_v29 = vpack.c.bf16 %v16017_v9, %v16015_v33 }
 0x57d   : > { %12292 = vmatprep.mubr.bf16.mxu0 %v4536_v43  ;;  %12297 = vmatpush3.bf16.msra.mxu0 %v13629_v63  ;;  %v5585_v43 = vpop.f32.mrb[221].mxu1 }
 0x57e   : > { %12298 = vmatprep.subr.bf16.mxu0 %v13630_v45  ;;  %v16281_v63 = vpop.f32.mrb[222].mxu1 }
 0x57f   : > { %v5588_v53 = vpop.f32.mrb[223].mxu1  ;;  %v5593_v33 = vpack.c.bf16 %v16281_v63, %v16276_v52  ;;  %v13667_v52 = vld [vmem:[%s17612_s4 + $0x470] sm:$0xff]   ;;  %v13668_v63 = vld [vmem:[%s17612_s4 + $0x478] sm:$0xff]  }
 0x580   : > { %v16288_v9 = vpop.f32.mrb[224].mxu1 }
 0x581   : > { %12299 = vmatpush3.bf16.msra.mxu0 %v13630_v45 }
 0x582   : > { %12300 = vmatprep.subr.bf16.mxu0 %v13631_v26 }
 0x584   : > { %12293 = vmatmul.mubr.bf16.gmra.mrb[180].mxu0 %v17653_v29 }
 0x585   : > { %12301 = vmatpush3.bf16.msra.mxu0 %v13631_v26  ;;  %12312 = vmatprep.mubr.bf16.mxu0 %v4798_v36  ;;  %v5825_v36 = vpop.f32.mrb[225].mxu1 }
 0x586   : > { %12302 = vmatprep.subr.bf16.mxu0 %v13632_v1  ;;  %v16293_v45 = vpop.f32.mrb[226].mxu1 }
 0x587   : > { %v5828_v26 = vpop.f32.mrb[227].mxu1  ;;  %v5854_v51 = vpack.c.bf16 %v16293_v45, %v16288_v9  ;;  %v13671_v9 = vld [vmem:[%s17611_s3 + $0x484] ss:$8 sps:$4 sm:$0xff]   ;;  %v13677_v45 = vld [vmem:[%s17611_s3 + $0x4a0] ss:$8 sps:$4 sm:$0xff]  }
 0x588   : > { %v16300_v29 = vpop.f32.mrb[228].mxu1  ;;  %v13639_v26 = vld [vmem:[%s17612_s4 + $0x390] sm:$0xff]  }
 0x589   : > { %12303 = vmatpush3.bf16.msra.mxu0 %v13632_v1  ;;  %v13636_v1 = vld [vmem:[%s17612_s4 + $0x378] sm:$0xff]   ;;  %v5833_v43 = vpop.f32.mrb[229].mxu1 }
 0x58a   : > { %12304 = vmatprep.subr.bf16.mxu0 %v13633_v19  ;;  %v16305_v53 = vpop.f32.mrb[230].mxu1 }
 0x58b   : > { %v5855_v36 = vpack.c.bf16 %v16305_v53, %v16300_v29  ;;  %v13707_v29 = vld [vmem:[%s17612_s4 + $0x4a8] sm:$0xff]   ;;  %v13680_v53 = vld [vmem:[%s17611_s3 + $0x4b0] ss:$8 sps:$4 sm:$0xff]  }
 0x58d   : > { %12305 = vmatpush3.bf16.msra.mxu0 %v13633_v19  ;;  %v13637_v19 = vld [vmem:[%s17612_s4 + $0x380] sm:$0xff]  }
 0x58e   : > { %12306 = vmatprep.subr.bf16.mxu0 %v13634_v35 }
 0x591   : > { %12307 = vmatpush3.bf16.msra.mxu0 %v13634_v35  ;;  %v5836_v35 = vpop.f32.mrb[231].mxu1 }
 0x592   : > { %12308 = vmatprep.subr.bf16.mxu0 %v13635_v32  ;;  %v16333_v31 = vpop.f32.mrb[232].mxu1  ;;  %v13645_v35 = vld [vmem:[%s17612_s4 + $0x3c0] sm:$0xff]  }
 0x595   : > { %12309 = vmatpush3.bf16.msra.mxu0 %v13635_v32  ;;  %v13638_v32 = vld [vmem:[%s17612_s4 + $0x388] sm:$0xff]  }
 0x596   : > { %12310 = vmatprep.subr.bf16.mxu0 %v13636_v1 }
 0x599   : > { %12311 = vmatpush3.bf16.msra.mxu0 %v13636_v1  ;;  %v13640_v1 = vld [vmem:[%s17612_s4 + $0x398] sm:$0xff]  }
 0x59a   : > { %12320 = vmatprep.subr.bf16.mxu0 %v13637_v19 }
 0x59c   : > { %12313 = vmatmul.mubr.bf16.vlgmr.msra.gmra.mrb[176].mxu0 %v4799_v47  ;;  %v5841_v47 = vpop.f32.mrb[233].mxu1 }
 0x59d   : > { %12316 = vmatprep.mubr.bf16.mxu0 %v4800_v59  ;;  %12321 = vmatpush3.bf16.msra.mxu0 %v13637_v19  ;;  %v16338_v17 = vpop.f32.mrb[234].mxu1  ;;  %v13684_v47 = vld [vmem:[%s17611_s3 + $0x5e0] ss:$8 sps:$4 sm:$0xff]  }
 0x59e   : > { %12322 = vmatprep.subr.bf16.mxu0 %v13638_v32  ;;  %v5844_v59 = vpop.f32.mrb[235].mxu1  ;;  %v5856_v6 = vpack.c.bf16 %v16338_v17, %v16333_v31  ;;  %v13708_v31 = vld [vmem:[%s17612_s4 + $0x4b0] sm:$0xff]  }
 0x59f   : > { %v13700_v59 = vld [vmem:[%s17611_s3 + $0x624] ss:$8 sps:$4 sm:$0xff]  }
 0x5a1   : > { %12323 = vmatpush3.bf16.msra.mxu0 %v13638_v32  ;;  %v13646_v32 = vld [vmem:[%s17612_s4 + $0x3c8] sm:$0xff]  }
 0x5a2   : > { %12324 = vmatprep.subr.bf16.mxu0 %v13639_v26 }
 0x5a4   : > { %12317 = vmatmul.mubr.bf16.gmra.mrb[180].mxu0 %v4801_v24  ;;  %v16345_v24 = vpop.f32.mrb[236].mxu1 }
 0x5a5   : > { %12325 = vmatpush3.bf16.msra.mxu0 %v13639_v26  ;;  %12336 = vmatprep.mubr.bf16.mxu0 %v5062_v54  ;;  %v5849_v3 = vpop.f32.mrb[237].mxu1  ;;  %v13647_v26 = vld [vmem:[%s17612_s4 + $0x3d0] sm:$0xff]  }
 0x5a6   : > { %12326 = vmatprep.subr.bf16.mxu0 %v13640_v1  ;;  %v16350_v54 = vpop.f32.mrb[238].mxu1  ;;  %v17656_v3 = vpack.c.bf16 %v16245_v15, %v16240_v62  ;;  %v13705_v62 = vld [vmem:[%s17611_s3 + $0x634] ss:$8 sps:$4 sm:$0xff]  }
 0x5a7   : > { %v5857_v19 = vpack.c.bf16 %v16350_v54, %v16345_v24  ;;  %v5852_v43 = vpop.f32.mrb[239].mxu1  ;;  %v13664_v15 = vld [vmem:[%s17612_s4 + $0x458] sm:$0xff]  }
 0x5a8   : > { %v13698_v43 = vld [vmem:[%s17611_s3 + $0x620] ss:$8 sps:$4 sm:$0xff]  }
 0x5a9   : > { %12327 = vmatpush3.bf16.msra.mxu0 %v13640_v1  ;;  %v13648_v1 = vld [vmem:[%s17612_s4 + $0x3d8] sm:$0xff]  }
 0x5aa   : > { %12328 = vmatprep.subr.bf16.mxu0 %v13641_v8 }
 0x5ad   : > { %12329 = vmatpush3.bf16.msra.mxu0 %v13641_v8  ;;  %v13655_v8 = vld [vmem:[%s17612_s4 + $0x410] sm:$0xff]  }
 0x5ae   : > { %12330 = vmatprep.subr.bf16.mxu0 %v13642_v41 }
 0x5b1   : > { %12331 = vmatpush3.bf16.msra.mxu0 %v13642_v41  ;;  %v13693_v41 = vld [vmem:[%s17611_s3 + $0x610] ss:$8 sps:$4 sm:$0xff]  }
 0x5b2   : > { %12332 = vmatprep.subr.bf16.mxu0 %v13643_v28 }
 0x5b5   : > { %12333 = vmatpush3.bf16.msra.mxu0 %v13643_v28  ;;  %v13662_v28 = vld [vmem:[%s17612_s4 + $0x448] sm:$0xff]  }
 0x5b6   : > { %12334 = vmatprep.subr.bf16.mxu0 %v13644_v5 }
 0x5b9   : > { %12335 = vmatpush3.bf16.msra.mxu0 %v13644_v5  ;;  %v13663_v5 = vld [vmem:[%s17612_s4 + $0x450] sm:$0xff]  }
 0x5ba   : > { %12344 = vmatprep.subr.bf16.mxu0 %v13645_v35 }
 0x5bc   : > { %12337 = vmatmul.mubr.bf16.vlgmr.msra.gmra.mrb[176].mxu0 %v5063_v34  ;;  %v13650_v34 = vld [vmem:[%s17612_s4 + $0x3e8] sm:$0xff]  }
 0x5bd   : > { %12345 = vmatpush3.bf16.msra.mxu0 %v13645_v35  ;;  %12340 = vmatprep.mubr.bf16.mxu0 %v5064_v11  ;;  %v13653_v11 = vld [vmem:[%s17612_s4 + $0x400] sm:$0xff]  }
 0x5be   : > { %12346 = vmatprep.subr.bf16.mxu0 %v13646_v32  ;;  %v16601_v35 = vld [vmem:[%s17612_s4 + $0x4c0] sm:$0xff]  }
 0x5c1   : > { %12347 = vmatpush3.bf16.msra.mxu0 %v13646_v32 }
 0x5c2   : > { %12348 = vmatprep.subr.bf16.mxu0 %v13647_v26 }
 0x5c4   : > { %12341 = vmatmul.mubr.bf16.gmra.mrb[180].mxu0 %v5065_v14  ;;  %v13686_v14 = vld [vmem:[%s17611_s3 + $0x5e4] ss:$8 sps:$4 sm:$0xff]  }
 0x5c5   : > { %12349 = vmatpush3.bf16.msra.mxu0 %v13647_v26  ;;  %12360 = vmatprep.mubr.bf16.mxu0 %v17654_v38 }
 0x5c6   : > { %12350 = vmatprep.subr.bf16.mxu0 %v13648_v1  ;;  %10877 = vmatprep.mubr.msk.bf16.mxu1 %vm1305_vm2, %v13686_v14 }
 0x5c7   : > { %7422 = vmatmul.mubr.bf16.gmra.mrb[56].mxu1 %v13684_v47 }
 0x5c8   : > { %10878 = vmatprep.mubr.msk.bf16.mxu1 %vm1305_vm2, %v13689_v30 }
 0x5c9   : > { %12351 = vmatpush3.bf16.msra.mxu0 %v13648_v1 }
 0x5ca   : > { %12352 = vmatprep.subr.bf16.mxu0 %v13649_v42 }
 0x5cd   : > { %12353 = vmatpush3.bf16.msra.mxu0 %v13649_v42 }
 0x5ce   : > { %12354 = vmatprep.subr.bf16.mxu0 %v13650_v34 }
 0x5cf   : > { %7430 = vmatmul.mubr.bf16.gmra.mrb[60].mxu1 %v13687_v37 }
 0x5d1   : > { %12355 = vmatpush3.bf16.msra.mxu0 %v13650_v34 }
 0x5d2   : > { %12356 = vmatprep.subr.bf16.mxu0 %v13651_v4 }
 0x5d5   : > { %12357 = vmatpush3.bf16.msra.mxu0 %v13651_v4 }
 0x5d6   : > { %12358 = vmatprep.subr.bf16.mxu0 %v13652_v12 }
 0x5d9   : > { %12359 = vmatpush3.bf16.msra.mxu0 %v13652_v12 }
 0x5da   : > { %12368 = vmatprep.subr.bf16.mxu0 %v13653_v11 }
 0x5dc   : > { %12361 = vmatmul.mubr.bf16.vlgmr.msra.gmra.mrb[176].mxu0 %v17655_v46 }
 0x5dd   : > { %12369 = vmatpush3.bf16.msra.mxu0 %v13653_v11  ;;  %12364 = vmatprep.mubr.bf16.mxu0 %v5328_v55  ;;  %v13692_v55 = vld [vmem:[%s17611_s3 + $0x604] ss:$8 sps:$4 sm:$0xff]  }
 0x5de   : > { %12370 = vmatprep.subr.bf16.mxu0 %v13654_v7  ;;  %10919 = vmatprep.mubr.msk.bf16.mxu1 %vm1305_vm2, %v13692_v55 }
 0x5e1   : > { %12371 = vmatpush3.bf16.msra.mxu0 %v13654_v7 }
 0x5e2   : > { %12372 = vmatprep.subr.bf16.mxu0 %v13655_v8 }
 0x5e4   : > { %12365 = vmatmul.mubr.bf16.gmra.mrb[180].mxu0 %v5329_v58  ;;  %v13690_v58 = vld [vmem:[%s17611_s3 + $0x600] ss:$8 sps:$4 sm:$0xff]  }
 0x5e5   : > { %12373 = vmatpush3.bf16.msra.mxu0 %v13655_v8  ;;  %12384 = vmatprep.mubr.bf16.mxu0 %v5590_v25  ;;  %v13661_v25 = vld [vmem:[%s17612_s4 + $0x440] sm:$0xff]  }
 0x5e6   : > { %12374 = vmatprep.subr.bf16.mxu0 %v13656_v13  ;;  %7670 = vmatmul.mubr.bf16.vlgmr.msra.gmra.mrb[64].mxu1 %v13690_v58 }
 0x5e7   : > { %10920 = vmatprep.mubr.msk.bf16.mxu1 %vm1305_vm2, %v13695_v10 }
 0x5e9   : > { %12375 = vmatpush3.bf16.msra.mxu0 %v13656_v13 }
 0x5ea   : > { %12376 = vmatprep.subr.bf16.mxu0 %v13657_v0 }
 0x5ed   : > { %12377 = vmatpush3.bf16.msra.mxu0 %v13657_v0 }
 0x5ee   : > { %12378 = vmatprep.subr.bf16.mxu0 %v13658_v2  ;;  %7678 = vmatmul.mubr.bf16.gmra.mrb[68].mxu1 %v13693_v41 }
 0x5ef   : > { %10921 = vmatprep.mubr.msk.bf16.mxu1 %vm1305_vm2, %v13700_v59 }
 0x5f1   : > { %12379 = vmatpush3.bf16.msra.mxu0 %v13658_v2 }
 0x5f2   : > { %12380 = vmatprep.subr.bf16.mxu0 %v13659_v49 }
 0x5f5   : > { %12381 = vmatpush3.bf16.msra.mxu0 %v13659_v49 }
 0x5f6   : > { %12382 = vmatprep.subr.bf16.mxu0 %v13660_v39  ;;  %7686 = vmatmul.mubr.bf16.gmra.mrb[72].mxu1 %v13698_v43 }
 0x5f7   : > { %10922 = vmatprep.mubr.msk.bf16.mxu1 %vm1305_vm2, %v13705_v62 }
 0x5f9   : > { %12383 = vmatpush3.bf16.msra.mxu0 %v13660_v39 }
 0x5fa   : > { %12392 = vmatprep.subr.bf16.mxu0 %v13661_v25 }
 0x5fc   : > { %12385 = vmatmul.mubr.bf16.vlgmr.msra.gmra.mrb[176].mxu0 %v17656_v3 }
 0x5fd   : > { %12393 = vmatpush3.bf16.msra.mxu0 %v13661_v25  ;;  %12388 = vmatprep.mubr.bf16.mxu0 %v5592_v20  ;;  %v13666_v20 = vld [vmem:[%s17612_s4 + $0x468] sm:$0xff]  }
 0x5fe   : > { %12394 = vmatprep.subr.bf16.mxu0 %v13662_v28  ;;  %7694 = vmatmul.mubr.bf16.gmra.mrb[76].mxu1 %v13703_v61 }
 0x5ff   : > { %12600 = vmatprep.mubr.msk.bf16.mxu1 %vm13964_vm0, %v17643_v50 }
 0x601   : > { %12395 = vmatpush3.bf16.msra.mxu0 %v13662_v28 }
 0x602   : > { %12396 = vmatprep.subr.bf16.mxu0 %v13663_v5 }
 0x604   : > { %12389 = vmatmul.mubr.bf16.gmra.mrb[180].mxu0 %v5593_v33  ;;  %v17657_v33 = vmov 0  }
 0x605   : > { %12397 = vmatpush3.bf16.msra.mxu0 %v13663_v5  ;;  %12408 = vmatprep.mubr.bf16.mxu0 %v5854_v51  ;;  %v13678_v51 = vld [vmem:[%s17611_s3 + $0x4b4] ss:$8 sps:$4 sm:$0xff]  }
 0x606   : > { %12398 = vmatprep.subr.bf16.mxu0 %v13664_v15 }
 0x609   : > { %12399 = vmatpush3.bf16.msra.mxu0 %v13664_v15 }
 0x60a   : > { %12400 = vmatprep.subr.bf16.mxu0 %v13665_v16 }
 0x60d   : > { %12401 = vmatpush3.bf16.msra.mxu0 %v13665_v16 }
 0x60e   : > { %12402 = vmatprep.subr.bf16.mxu0 %v13666_v20 }
 0x611   : > { %12403 = vmatpush3.bf16.msra.mxu0 %v13666_v20 }
 0x612   : > { %12404 = vmatprep.subr.bf16.mxu0 %v13667_v52 }
 0x615   : > { %12405 = vmatpush3.bf16.msra.mxu0 %v13667_v52 }
 0x616   : > { %12406 = vmatprep.subr.bf16.mxu0 %v13668_v63 }
 0x619   : > { %12407 = vmatpush3.bf16.msra.mxu0 %v13668_v63 }
 0x61a   : > { %6053 = vmatprep.subr.bf16.mxu0 %v17657_v33 }
 0x61c   : > { %12409 = vmatmul.mubr.bf16.vlgmr.msra.gmra.mrb[176].mxu0 %v5855_v36  ;;  %v16586_v36 = vpop.f32.mrb[240].mxu1 }
 0x61d   : > { %6054 = vmatpush1.bf16.msra.mxu0 %v14359_v18  ;;  %12412 = vmatprep.mubr.bf16.mxu0 %v5856_v6  ;;  %v13696_v18 = vld [vmem:[%s17612_s4 + $0x480] sm:$0xff]   ;;  %v6353_v17 = vpop.f32.mrb[241].mxu1 }
 0x61e   : > { %6055 = vmatprep.subr.bf16.mxu0 %v17657_v33  ;;  %v16591_v6 = vpop.f32.mrb[242].mxu1 }
 0x61f   : > { %v6356_v24 = vpop.f32.mrb[243].mxu1  ;;  %v6382_v54 = vpack.c.bf16 %v16591_v6, %v16586_v36 }
 0x620   : > { %v16604_v32 = vpop.f32.mrb[244].mxu1 }
 0x621   : > { %6056 = vmatpush1.bf16.msra.mxu0 %v14369_v23  ;;  %v13669_v23 = vld [vmem:[%s17611_s3 + $0x480] ss:$8 sps:$4 sm:$0xff]   ;;  %v6361_v26 = vpop.f32.mrb[245].mxu1 }
 0x622   : > { %6057 = vmatprep.subr.bf16.mxu0 %v17657_v33  ;;  %v16606_v1 = vpop.f32.mrb[246].mxu1 }
 0x623   : > { %v6364_v38 = vpop.f32.mrb[247].mxu1  ;;  %v6383_v42 = vpack.c.bf16 %v16606_v1, %v16604_v32  ;;  %v13721_v1 = vld [vmem:[%s17612_s4 + $0x518] sm:$0xff]  }
 0x624   : > { %12413 = vmatmul.mubr.bf16.gmra.mrb[180].mxu0 %v5857_v19  ;;  %v13709_v19 = vld [vmem:[%s17612_s4 + $0x4b8] sm:$0xff]   ;;  %v16610_v34 = vpop.f32.mrb[248].mxu1 }
 0x625   : > { %6058 = vmatpush1.bf16.msra.mxu0 %v14379_v44  ;;  %10655 = vmatprep.mubr.msk.bf16.mxu0 %vm1305_vm2, %v13671_v9  ;;  %v13672_v44 = vld [vmem:[%s17611_s3 + $0x494] ss:$8 sps:$4 sm:$0xff]   ;;  %v6369_v4 = vpop.f32.mrb[249].mxu1 }
 0x626   : > { %6059 = vmatprep.subr.bf16.mxu0 %v17657_v33  ;;  %v16612_v12 = vpop.f32.mrb[250].mxu1 }
 0x627   : > { %v6372_v11 = vpop.f32.mrb[251].mxu1  ;;  %v6384_v40 = vpack.c.bf16 %v16612_v12, %v16610_v34  ;;  %v13722_v12 = vld [vmem:[%s17612_s4 + $0x520] sm:$0xff]  }
 0x628   : > { %v16616_v57 = vpop.f32.mrb[252].mxu1 }
 0x629   : > { %6060 = vmatpush1.bf16.msra.mxu0 %v14389_v60  ;;  %v13697_v60 = vld [vmem:[%s17612_s4 + $0x488] sm:$0xff]   ;;  %v6377_v14 = vpop.f32.mrb[253].mxu1 }
 0x62a   : > { %6061 = vmatprep.subr.bf16.mxu0 %v17657_v33  ;;  %v16618_v7 = vpop.f32.mrb[254].mxu1 }
 0x62b   : > { %v6380_v46 = vpop.f32.mrb[255].mxu1  ;;  %v6385_v8 = vpack.c.bf16 %v16618_v7, %v16616_v57  ;;  %v13723_v7 = vld [vmem:[%s17612_s4 + $0x528] sm:$0xff]  }
 0x62c   : > { %v16622_v47 = vpop.f32.mrb[0].mxu1 }
 0x62d   : > { %6062 = vmatpush1.bf16.msra.mxu0 %v14399_v56  ;;  %v13701_v56 = vld [vmem:[%s17612_s4 + $0x490] sm:$0xff]   ;;  %v6617_v30 = vpop.f32.mrb[1].mxu1 }
 0x62e   : > { %6063 = vmatprep.subr.bf16.mxu0 %v17657_v33  ;;  %v16624_v13 = vpop.f32.mrb[2].mxu1 }
 0x62f   : > { %v6620_v0 = vpop.f32.mrb[3].mxu1  ;;  %v6646_v37 = vpack.c.bf16 %v16624_v13, %v16622_v47  ;;  %v13724_v13 = vld [vmem:[%s17612_s4 + $0x530] sm:$0xff]  }
 0x630   : > { %v16628_v55 = vpop.f32.mrb[4].mxu1 }
 0x631   : > { %6064 = vmatpush1.bf16.msra.mxu0 %v14409_v21  ;;  %v13674_v21 = vld [vmem:[%s17611_s3 + $0x490] ss:$8 sps:$4 sm:$0xff]   ;;  %v6625_v2 = vpop.f32.mrb[5].mxu1 }
 0x632   : > { %6065 = vmatprep.subr.bf16.mxu0 %v17657_v33  ;;  %v16630_v49 = vpop.f32.mrb[6].mxu1 }
 0x633   : > { %v6628_v58 = vpop.f32.mrb[7].mxu1  ;;  %v6647_v10 = vpack.c.bf16 %v16630_v49, %v16628_v55  ;;  %v13729_v49 = vld [vmem:[%s17612_s4 + $0x558] sm:$0xff]  }
 0x634   : > { %v16634_v39 = vpop.f32.mrb[8].mxu1 }
 0x635   : > { %6066 = vmatpush1.bf16.msra.mxu0 %v14419_v27  ;;  %v13675_v27 = vld [vmem:[%s17611_s3 + $0x4a4] ss:$8 sps:$4 sm:$0xff]   ;;  %v6633_v25 = vpop.f32.mrb[9].mxu1 }
 0x636   : > { %6067 = vmatprep.subr.bf16.mxu0 %v17657_v33  ;;  %v16636_v41 = vpop.f32.mrb[10].mxu1 }
 0x637   : > { %v6636_v59 = vpop.f32.mrb[11].mxu1  ;;  %v6648_v28 = vpack.c.bf16 %v16636_v41, %v16634_v39  ;;  %v13730_v39 = vld [vmem:[%s17612_s4 + $0x560] sm:$0xff]   ;;  %v13759_v41 = vld [vmem:[%s17614_s6 + $0x8] sm:$0xff]  }
 0x638   : > { %v16640_v3 = vpop.f32.mrb[12].mxu1 }
 0x639   : > { %6068 = vmatpush1.bf16.msra.mxu0 %v14429_v22  ;;  %v13702_v22 = vld [vmem:[%s17612_s4 + $0x498] sm:$0xff]   ;;  %v6641_v5 = vpop.f32.mrb[13].mxu1 }
 0x63a   : > { %6069 = vmatprep.subr.bf16.mxu0 %v17657_v33  ;;  %v16642_v43 = vpop.f32.mrb[14].mxu1 }
 0x63b   : > { %v6644_v62 = vpop.f32.mrb[15].mxu1  ;;  %v6649_v15 = vpack.c.bf16 %v16642_v43, %v16640_v3  ;;  %v13760_v3 = vld [vmem:[%s17614_s6 + $0x10] sm:$0xff]  }
 0x63c   : > { %v16646_v16 = vpop.f32.mrb[16].mxu1  ;;  %v13732_v43 = vld [vmem:[%s17612_s4 + $0x570] sm:$0xff]  }
 0x63d   : > { %6070 = vmatpush1.bf16.msra.mxu0 %v14439_v48  ;;  %v13706_v48 = vld [vmem:[%s17612_s4 + $0x4a0] sm:$0xff]   ;;  %v6881_v61 = vpop.f32.mrb[17].mxu1 }
 0x63e   : > { %12416 = vmatprep.subr.bf16.mxu0 %v13696_v18  ;;  %v16648_v20 = vpop.f32.mrb[18].mxu1 }
 0x63f   : > { %v6884_v52 = vpop.f32.mrb[19].mxu1  ;;  %v6910_v63 = vpack.c.bf16 %v16648_v20, %v16646_v16  ;;  %v13734_v16 = vld [vmem:[%s17612_s4 + $0x580] sm:$0xff]   ;;  %v13735_v20 = vld [vmem:[%s17612_s4 + $0x588] sm:$0xff]  }
 0x640   : > { %6086 = vmatmul.mubr.bf16.vlgmr.msra.gmra.mrb[200].mxu0 %v13669_v23  ;;  %v16652_v33 = vpop.f32.mrb[20].mxu1 }
 0x641   : > { %10656 = vmatprep.mubr.msk.bf16.mxu0 %vm1305_vm2, %v13672_v44  ;;  %12417 = vmatpush3.bf16.msra.mxu0 %v13696_v18  ;;  %v6889_v9 = vpop.f32.mrb[21].mxu1 }
 0x642   : > { %12418 = vmatprep.subr.bf16.mxu0 %v13697_v60  ;;  %v16654_v18 = vpop.f32.mrb[22].mxu1 }
 0x643   : > { %v6892_v23 = vpop.f32.mrb[23].mxu1  ;;  %v6911_v44 = vpack.c.bf16 %v16654_v18, %v16652_v33  ;;  %v13738_v33 = vld [vmem:[%s17612_s4 + $0x5a0] sm:$0xff]   ;;  %v13739_v18 = vld [vmem:[%s17612_s4 + $0x5a8] sm:$0xff]  }
 0x645   : > { %12419 = vmatpush3.bf16.msra.mxu0 %v13697_v60  ;;  %v16658_v60 = vpop.f32.mrb[24].mxu1 }
 0x646   : > { %12420 = vmatprep.subr.bf16.mxu0 %v13701_v56 }
 0x648   : > { %6094 = vmatmul.mubr.bf16.gmra.mrb[204].mxu0 %v13674_v21 }
 0x649   : > { %10657 = vmatprep.mubr.msk.bf16.mxu0 %vm1305_vm2, %v13675_v27  ;;  %12421 = vmatpush3.bf16.msra.mxu0 %v13701_v56  ;;  %v6897_v56 = vpop.f32.mrb[25].mxu1 }
 0x64a   : > { %12422 = vmatprep.subr.bf16.mxu0 %v13702_v22  ;;  %v16660_v21 = vpop.f32.mrb[26].mxu1 }
 0x64b   : > { %v6900_v27 = vpop.f32.mrb[27].mxu1 }
 0x64d   : > { %12423 = vmatpush3.bf16.msra.mxu0 %v13702_v22  ;;  %v6912_v22 = vpack.c.bf16 %v16660_v21, %v16658_v60  ;;  %v13741_v60 = vld [vmem:[%s17612_s4 + $0x5b8] sm:$0xff]   ;;  %v13742_v21 = vld [vmem:[%s17612_s4 + $0x5c0] sm:$0xff]  }
 0x64e   : > { %12424 = vmatprep.subr.bf16.mxu0 %v13706_v48 }
 0x650   : > { %6102 = vmatmul.mubr.bf16.gmra.mrb[208].mxu0 %v13677_v45 }
 0x651   : > { %10658 = vmatprep.mubr.msk.bf16.mxu0 %vm1305_vm2, %v13678_v51  ;;  %12425 = vmatpush3.bf16.msra.mxu0 %v13706_v48  ;;  %v16664_v48 = vpop.f32.mrb[28].mxu1 }
 0x652   : > { %12426 = vmatprep.subr.bf16.mxu0 %v13707_v29  ;;  %v6905_v45 = vpop.f32.mrb[29].mxu1 }
 0x653   : > { %v16666_v51 = vpop.f32.mrb[30].mxu1 }
 0x655   : > { %12427 = vmatpush3.bf16.msra.mxu0 %v13707_v29  ;;  %v6908_v29 = vpop.f32.mrb[31].mxu1 }
 0x656   : > { %12428 = vmatprep.subr.bf16.mxu0 %v13708_v31 }
 0x658   : > { %6110 = vmatmul.mubr.bf16.gmra.mrb[212].mxu0 %v13680_v53  ;;  %v6913_v53 = vpack.c.bf16 %v16666_v51, %v16664_v48  ;;  %v13744_v48 = vld [vmem:[%s17612_s4 + $0x5d0] sm:$0xff]   ;;  %v13745_v51 = vld [vmem:[%s17612_s4 + $0x5d8] sm:$0xff]  }
 0x659   : > { %12429 = vmatpush3.bf16.msra.mxu0 %v13708_v31  ;;  %v16670_v31 = vpop.f32.mrb[32].mxu1 }
 0x65a   : > { %12430 = vmatprep.subr.bf16.mxu0 %v13709_v19  ;;  %v7145_v17 = vpop.f32.mrb[33].mxu1 }
 0x65b   : > { %v16672_v24 = vpop.f32.mrb[34].mxu1  ;;  %v13711_v17 = vld [vmem:[%s17612_s4 + $0x4c8] sm:$0xff]  }
 0x65c   : > { %v7174_v26 = vpack.c.bf16 %v16672_v24, %v16670_v31  ;;  %v13747_v31 = vld [vmem:[%s17612_s4 + $0x5e8] sm:$0xff]   ;;  %v13748_v24 = vld [vmem:[%s17612_s4 + $0x5f0] sm:$0xff]  }
 0x65d   : > { %12431 = vmatpush3.bf16.msra.mxu0 %v13709_v19  ;;  %v7148_v19 = vpop.f32.mrb[35].mxu1 }
 0x65e   : > { %12440 = vmatprep.subr.bf16.mxu0 %v16601_v35  ;;  %v16676_v38 = vpop.f32.mrb[36].mxu1 }
 0x65f   : > { %v7153_v4 = vpop.f32.mrb[37].mxu1 }
 0x660   : > { %v16678_v11 = vpop.f32.mrb[38].mxu1 }
 0x661   : > { %v7156_v14 = vpop.f32.mrb[39].mxu1  ;;  %v7175_v46 = vpack.c.bf16 %v16678_v11, %v16676_v38  ;;  %v13750_v38 = vld [vmem:[%s17612_s4 + $0x600] sm:$0xff]   ;;  %v13751_v11 = vld [vmem:[%s17612_s4 + $0x608] sm:$0xff]  }
 0x662   : > { %v16682_v58 = vpop.f32.mrb[40].mxu1 }
 0x663   : > { %v7161_v5 = vpop.f32.mrb[41].mxu1 }
 0x664   : > { %v16684_v62 = vpop.f32.mrb[42].mxu1 }
 0x665   : > { %v7164_v61 = vpop.f32.mrb[43].mxu1  ;;  %v7176_v52 = vpack.c.bf16 %v16684_v62, %v16682_v58  ;;  %v13753_v58 = vld [vmem:[%s17612_s4 + $0x618] sm:$0xff]   ;;  %v13754_v62 = vld [vmem:[%s17612_s4 + $0x620] sm:$0xff]  }
 0x666   : > { %v16688_v27 = vpop.f32.mrb[44].mxu1 }
 0x667   : > { %v7169_v19 = vpop.f32.mrb[45].mxu1 }
 0x668   : > { %v16693_v4 = vpop.f32.mrb[46].mxu1 }
 0x669   : > { %v7172_v14 = vpop.f32.mrb[47].mxu1 }
 0x66a   : > { %v16701_v5 = vpop.f32.mrb[48].mxu1 }
 0x713   : > { %v6087_v30 = vpop.f32.mrb[200].mxu0 }
 0x714   : > { %v6089_v0 = vpop.f32.mrb[201].mxu0 }
 0x715   : > { %v6090_v2 = vpop.f32.mrb[202].mxu0  ;;  %v13712_v0 = vld [vmem:[%s17612_s4 + $0x4d0] sm:$0xff]  }
 0x716   : > { %v6118_v25 = vpack.c.bf16 %v6090_v2, %v6087_v30  ;;  %v6092_v59 = vpop.f32.mrb[203].mxu0  ;;  %v7177_v30 = vpack.c.bf16 %v16693_v4, %v16688_v27  ;;  %v13756_v27 = vld [vmem:[%s17612_s4 + $0x630] sm:$0xff]   ;;  %v13757_v4 = vld [vmem:[%s17612_s4 + $0x638] sm:$0xff]  }
 0x718   : > { %12432 = vmatprep.mubr.bf16.mxu0 %v6118_v25 }
 0x71b   : > { %v6095_v9 = vpop.f32.mrb[204].mxu0 }
 0x71c   : > { %v6097_v23 = vpop.f32.mrb[205].mxu0 }
 0x71d   : > { %v6098_v56 = vpop.f32.mrb[206].mxu0  ;;  %v7409_v23 = vpop.f32.mrb[49].mxu1 }
 0x71e   : > { %v6119_v45 = vpack.c.bf16 %v6098_v56, %v6095_v9  ;;  %v6100_v29 = vpop.f32.mrb[207].mxu0  ;;  %v16706_v56 = vpop.f32.mrb[50].mxu1 }
 0x71f   : > { %v7438_v29 = vpack.c.bf16 %v16706_v56, %v16701_v5  ;;  %v13762_v5 = vld [vmem:[%s17614_s6 + $0x20] sm:$0xff]   ;;  %v13763_v56 = vld [vmem:[%s17614_s6 + $0x28] sm:$0xff]  }
 0x720   : > { %12433 = vmatmul.mubr.bf16.vlgmr.msra.gmra.mrb[176].mxu0 %v6119_v45  ;;  %v7412_v45 = vpop.f32.mrb[51].mxu1 }
 0x721   : > { %12441 = vmatpush3.bf16.msra.mxu0 %v16601_v35  ;;  %v13713_v35 = vld [vmem:[%s17612_s4 + $0x4d8] sm:$0xff]  }
 0x722   : > { %12442 = vmatprep.subr.bf16.mxu0 %v13711_v17 }
 0x723   : > { %v6103_v2 = vpop.f32.mrb[208].mxu0 }
 0x724   : > { %v6105_v25 = vpop.f32.mrb[209].mxu0 }
 0x725   : > { %12443 = vmatpush3.bf16.msra.mxu0 %v13711_v17  ;;  %v6106_v59 = vpop.f32.mrb[210].mxu0  ;;  %v13714_v17 = vld [vmem:[%s17612_s4 + $0x4e0] sm:$0xff]  }
 0x726   : > { %12444 = vmatprep.subr.bf16.mxu0 %v13712_v0  ;;  %v6120_v61 = vpack.c.bf16 %v6106_v59, %v6103_v2  ;;  %v6108_v9 = vpop.f32.mrb[211].mxu0  ;;  %v13715_v59 = vld [vmem:[%s17612_s4 + $0x4e8] sm:$0xff]  }
 0x728   : > { %12436 = vmatprep.mubr.bf16.mxu0 %v6120_v61 }
 0x729   : > { %12445 = vmatpush3.bf16.msra.mxu0 %v13712_v0  ;;  %v16716_v0 = vpop.f32.mrb[52].mxu1 }
 0x72a   : > { %12446 = vmatprep.subr.bf16.mxu0 %v13713_v35  ;;  %v7417_v9 = vpop.f32.mrb[53].mxu1 }
 0x72b   : > { %v6111_v19 = vpop.f32.mrb[212].mxu0  ;;  %v16724_v23 = vpop.f32.mrb[54].mxu1 }
 0x72c   : > { %v6113_v14 = vpop.f32.mrb[213].mxu0  ;;  %v7420_v45 = vpop.f32.mrb[55].mxu1 }
 0x72d   : > { %12447 = vmatpush3.bf16.msra.mxu0 %v13713_v35  ;;  %v6114_v2 = vpop.f32.mrb[214].mxu0  ;;  %v13716_v35 = vld [vmem:[%s17612_s4 + $0x4f0] sm:$0xff]   ;;  %v16731_v36 = vpop.f32.mrb[56].mxu1 }
 0x72e   : > { %v6121_v25 = vpack.c.bf16 %v6114_v2, %v6111_v19  ;;  %12448 = vmatprep.subr.bf16.mxu0 %v13714_v17  ;;  %v6116_v61 = vpop.f32.mrb[215].mxu0  ;;  %v7439_v19 = vpack.c.bf16 %v16724_v23, %v16716_v0  ;;  %v7425_v6 = vpop.f32.mrb[57].mxu1  ;;  %v13765_v0 = vld [vmem:[%s17614_s6 + $0x38] sm:$0xff]   ;;  %v10947_v23 = vld [vmem:[%s17613_s5] ss:$0 sm:$0xff] }
 0x72f   : > { %v16736_v14 = vpop.f32.mrb[58].mxu1 }
 0x730   : > { %12437 = vmatmul.mubr.bf16.gmra.mrb[180].mxu0 %v6121_v25  ;;  %v7428_v2 = vpop.f32.mrb[59].mxu1  ;;  %v7440_v25 = vpack.c.bf16 %v16736_v14, %v16731_v36 }
 0x731   : > { %12449 = vmatpush3.bf16.msra.mxu0 %v13714_v17  ;;  %12456 = vmatprep.mubr.bf16.mxu0 %v6382_v54  ;;  %v13717_v17 = vld [vmem:[%s17612_s4 + $0x4f8] sm:$0xff]   ;;  %v13718_v54 = vld [vmem:[%s17612_s4 + $0x500] sm:$0xff]   ;;  %v16746_v61 = vpop.f32.mrb[60].mxu1 }
 0x732   : > { %12450 = vmatprep.subr.bf16.mxu0 %v13715_v59  ;;  %v7433_v9 = vpop.f32.mrb[61].mxu1 }
 0x733   : > { %v16754_v45 = vpop.f32.mrb[62].mxu1 }
 0x734   : > { %v7441_v32 = vpack.c.bf16 %v16754_v45, %v16746_v61 }
 0x735   : > { %12451 = vmatpush3.bf16.msra.mxu0 %v13715_v59  ;;  %v13719_v59 = vld [vmem:[%s17612_s4 + $0x508] sm:$0xff]  }
 0x736   : > { %12452 = vmatprep.subr.bf16.mxu0 %v13716_v35 }
 0x739   : > { %12453 = vmatpush3.bf16.msra.mxu0 %v13716_v35  ;;  %v13720_v35 = vld [vmem:[%s17612_s4 + $0x510] sm:$0xff]  }
 0x73a   : > { %12454 = vmatprep.subr.bf16.mxu0 %v13717_v17 }
 0x73d   : > { %12455 = vmatpush3.bf16.msra.mxu0 %v13717_v17  ;;  %v7436_v17 = vpop.f32.mrb[63].mxu1 }
 0x73e   : > { %12464 = vmatprep.subr.bf16.mxu0 %v13718_v54  ;;  %v13726_v17 = vld [vmem:[%s17612_s4 + $0x540] sm:$0xff]  }
 0x740   : > { %12457 = vmatmul.mubr.bf16.vlgmr.msra.gmra.mrb[176].mxu0 %v6383_v42  ;;  %v16764_v42 = vpop.f32.mrb[64].mxu1 }
 0x741   : > { %12460 = vmatprep.mubr.bf16.mxu0 %v6384_v40  ;;  %12465 = vmatpush3.bf16.msra.mxu0 %v13718_v54  ;;  %v7673_v34 = vpop.f32.mrb[65].mxu1 }
 0x742   : > { %12466 = vmatprep.subr.bf16.mxu0 %v13719_v59  ;;  %v16772_v40 = vpop.f32.mrb[66].mxu1 }
 0x743   : > { %v7676_v6 = vpop.f32.mrb[67].mxu1  ;;  %v7702_v57 = vpack.c.bf16 %v16772_v40, %v16764_v42 }
 0x744   : > { %v13727_v6 = vld [vmem:[%s17612_s4 + $0x548] sm:$0xff]  }
 0x745   : > { %12467 = vmatpush3.bf16.msra.mxu0 %v13719_v59  ;;  %v13725_v59 = vld [vmem:[%s17612_s4 + $0x538] sm:$0xff]  }
 0x746   : > { %12468 = vmatprep.subr.bf16.mxu0 %v13720_v35 }
 0x748   : > { %12461 = vmatmul.mubr.bf16.gmra.mrb[180].mxu0 %v6385_v8  ;;  %v16779_v8 = vpop.f32.mrb[68].mxu1 }
 0x749   : > { %12469 = vmatpush3.bf16.msra.mxu0 %v13720_v35  ;;  %12480 = vmatprep.mubr.bf16.mxu0 %v6646_v37  ;;  %v7681_v47 = vpop.f32.mrb[69].mxu1 }
 0x74a   : > { %12470 = vmatprep.subr.bf16.mxu0 %v13721_v1  ;;  %v16784_v37 = vpop.f32.mrb[70].mxu1 }
 0x74b   : > { %v7684_v54 = vpop.f32.mrb[71].mxu1  ;;  %v7703_v2 = vpack.c.bf16 %v16784_v37, %v16779_v8 }
 0x74c   : > { %v16791_v9 = vpop.f32.mrb[72].mxu1 }
 0x74d   : > { %12471 = vmatpush3.bf16.msra.mxu0 %v13721_v1  ;;  %v7689_v35 = vpop.f32.mrb[73].mxu1 }
 0x74e   : > { %12472 = vmatprep.subr.bf16.mxu0 %v13722_v12  ;;  %v16796_v1 = vpop.f32.mrb[74].mxu1  ;;  %v13737_v35 = vld [vmem:[%s17612_s4 + $0x598] sm:$0xff]  }
 0x74f   : > { %v7692_v34 = vpop.f32.mrb[75].mxu1 }
 0x751   : > { %12473 = vmatpush3.bf16.msra.mxu0 %v13722_v12  ;;  %v7704_v12 = vpack.c.bf16 %v16796_v1, %v16791_v9 }
 0x752   : > { %12474 = vmatprep.subr.bf16.mxu0 %v13723_v7 }
 0x755   : > { %12475 = vmatpush3.bf16.msra.mxu0 %v13723_v7  ;;  %v16806_v7 = vpop.f32.mrb[76].mxu1 }
 0x756   : > { %12476 = vmatprep.subr.bf16.mxu0 %v13724_v13  ;;  %v7697_v47 = vpop.f32.mrb[77].mxu1 }
 0x757   : > { %v16814_v54 = vpop.f32.mrb[78].mxu1 }
 0x758   : > { %v7700_v55 = vpop.f32.mrb[79].mxu1 }
 0x759   : > { %12477 = vmatpush3.bf16.msra.mxu0 %v13724_v13  ;;  %v13728_v13 = vld [vmem:[%s17612_s4 + $0x550] sm:$0xff]   ;;  %v13766_v55 = vld [vmem:[%s17614_s6 + $0x40] sm:$0xff]  }
 0x75a   : > { %12478 = vmatprep.subr.bf16.mxu0 %v13725_v59 }
 0x75d   : > { %12479 = vmatpush3.bf16.msra.mxu0 %v13725_v59  ;;  %v7705_v59 = vpack.c.bf16 %v16814_v54, %v16806_v7 }
 0x75e   : > { %12488 = vmatprep.subr.bf16.mxu0 %v13726_v17 }
 0x760   : > { %12481 = vmatmul.mubr.bf16.vlgmr.msra.gmra.mrb[176].mxu0 %v6647_v10  ;;  %v13758_v10 = vld [vmem:[%s17614_s6] sm:$0xff]  }
 0x761   : > { %12484 = vmatprep.mubr.bf16.mxu0 %v6648_v28  ;;  %12489 = vmatpush3.bf16.msra.mxu0 %v13726_v17  ;;  %v13731_v28 = vld [vmem:[%s17612_s4 + $0x568] sm:$0xff]  }
 0x762   : > { %12490 = vmatprep.subr.bf16.mxu0 %v13727_v6  ;;  %12585 = vmatpush3.bf16.msra.mxu1 %v13758_v10  ;;  %v13767_v10 = vld [vmem:[%s17614_s6 + $0x48] sm:$0xff]  }
 0x763   : > { %12586 = vmatprep.subr.bf16.mxu1 %v17643_v50 }
 0x765   : > { %12491 = vmatpush3.bf16.msra.mxu0 %v13727_v6 }
 0x766   : > { %12492 = vmatprep.subr.bf16.mxu0 %v13728_v13  ;;  %12587 = vmatpush3.bf16.msra.mxu1 %v13759_v41  ;;  %v13769_v41 = vld [vmem:[%s17614_s6 + $0x58] sm:$0xff]  }
 0x767   : > { %12588 = vmatprep.subr.bf16.mxu1 %v17643_v50 }
 0x768   : > { %12485 = vmatmul.mubr.bf16.gmra.mrb[180].mxu0 %v6649_v15  ;;  %v13733_v15 = vld [vmem:[%s17612_s4 + $0x578] sm:$0xff]  }
 0x769   : > { %12493 = vmatpush3.bf16.msra.mxu0 %v13728_v13  ;;  %12504 = vmatprep.mubr.bf16.mxu0 %v6910_v63  ;;  %v13736_v63 = vld [vmem:[%s17612_s4 + $0x590] sm:$0xff]  }
 0x76a   : > { %12494 = vmatprep.subr.bf16.mxu0 %v13729_v49  ;;  %12589 = vmatpush3.bf16.msra.mxu1 %v13760_v3  ;;  %v13771_v3 = vld [vmem:[%s17614_s6 + $0x68] sm:$0xff]  }
 0x76b   : > { %12590 = vmatprep.subr.bf16.mxu1 %v17643_v50 }
 0x76d   : > { %12495 = vmatpush3.bf16.msra.mxu0 %v13729_v49 }
 0x76e   : > { %12496 = vmatprep.subr.bf16.mxu0 %v13730_v39 }
 0x771   : > { %12497 = vmatpush3.bf16.msra.mxu0 %v13730_v39  ;;  %v13768_v39 = vld [vmem:[%s17614_s6 + $0x50] sm:$0xff]  }
 0x772   : > { %12498 = vmatprep.subr.bf16.mxu0 %v13731_v28 }
 0x775   : > { %12499 = vmatpush3.bf16.msra.mxu0 %v13731_v28  ;;  %v13770_v28 = vld [vmem:[%s17614_s6 + $0x60] sm:$0xff]  }
 0x776   : > { %12500 = vmatprep.subr.bf16.mxu0 %v13732_v43 }
 0x779   : > { %12501 = vmatpush3.bf16.msra.mxu0 %v13732_v43  ;;  %v13772_v43 = vld [vmem:[%s17614_s6 + $0x70] sm:$0xff]  }
 0x77a   : > { %12502 = vmatprep.subr.bf16.mxu0 %v13733_v15 }
 0x77d   : > { %12503 = vmatpush3.bf16.msra.mxu0 %v13733_v15  ;;  %v13773_v15 = vld [vmem:[%s17614_s6 + $0x78] sm:$0xff]  }
 0x77e   : > { %12512 = vmatprep.subr.bf16.mxu0 %v13734_v16 }
 0x780   : > { %12505 = vmatmul.mubr.bf16.vlgmr.msra.gmra.mrb[176].mxu0 %v6911_v44  ;;  %v13740_v44 = vld [vmem:[%s17612_s4 + $0x5b0] sm:$0xff]  }
 0x781   : > { %12508 = vmatprep.mubr.bf16.mxu0 %v6912_v22  ;;  %12513 = vmatpush3.bf16.msra.mxu0 %v13734_v16  ;;  %v13743_v22 = vld [vmem:[%s17612_s4 + $0x5c8] sm:$0xff]   ;;  %v13774_v16 = vld [vmem:[%s17614_s6 + $0x80] sm:$0xff]  }
 0x782   : > { %12514 = vmatprep.subr.bf16.mxu0 %v13735_v20 }
 0x785   : > { %12515 = vmatpush3.bf16.msra.mxu0 %v13735_v20 }
 0x786   : > { %12516 = vmatprep.subr.bf16.mxu0 %v13736_v63 }
 0x788   : > { %12509 = vmatmul.mubr.bf16.gmra.mrb[180].mxu0 %v6913_v53  ;;  %v13746_v53 = vld [vmem:[%s17612_s4 + $0x5e0] sm:$0xff]  }
 0x789   : > { %12517 = vmatpush3.bf16.msra.mxu0 %v13736_v63  ;;  %12528 = vmatprep.mubr.bf16.mxu0 %v7174_v26  ;;  %v13749_v26 = vld [vmem:[%s17612_s4 + $0x5f8] sm:$0xff]   ;;  %v13775_v63 = vld [vmem:[%s17614_s6 + $0x88] sm:$0xff]  }
 0x78a   : > { %12518 = vmatprep.subr.bf16.mxu0 %v13737_v35 }
 0x78d   : > { %12519 = vmatpush3.bf16.msra.mxu0 %v13737_v35  ;;  %v13776_v35 = vld [vmem:[%s17614_s6 + $0x90] sm:$0xff]  }
 0x78e   : > { %12520 = vmatprep.subr.bf16.mxu0 %v13738_v33 }
 0x791   : > { %12521 = vmatpush3.bf16.msra.mxu0 %v13738_v33  ;;  %v13777_v33 = vld [vmem:[%s17614_s6 + $0x98] sm:$0xff]  }
 0x792   : > { %12522 = vmatprep.subr.bf16.mxu0 %v13739_v18 }
 0x795   : > { %12523 = vmatpush3.bf16.msra.mxu0 %v13739_v18  ;;  %v13778_v18 = vld [vmem:[%s17614_s6 + $0xa0] sm:$0xff]  }
 0x796   : > { %12524 = vmatprep.subr.bf16.mxu0 %v13740_v44 }
 0x799   : > { %12525 = vmatpush3.bf16.msra.mxu0 %v13740_v44  ;;  %v13779_v44 = vld [vmem:[%s17614_s6 + $0xa8] sm:$0xff]  }
 0x79a   : > { %12526 = vmatprep.subr.bf16.mxu0 %v13741_v60 }
 0x79d   : > { %12527 = vmatpush3.bf16.msra.mxu0 %v13741_v60  ;;  %v13780_v60 = vld [vmem:[%s17614_s6 + $0xb0] sm:$0xff]  }
 0x79e   : > { %12536 = vmatprep.subr.bf16.mxu0 %v13742_v21 }
 0x7a0   : > { %12529 = vmatmul.mubr.bf16.vlgmr.msra.gmra.mrb[176].mxu0 %v7175_v46  ;;  %v13752_v46 = vld [vmem:[%s17612_s4 + $0x610] sm:$0xff]  }
 0x7a1   : > { %12532 = vmatprep.mubr.bf16.mxu0 %v7176_v52  ;;  %12537 = vmatpush3.bf16.msra.mxu0 %v13742_v21  ;;  %v13755_v52 = vld [vmem:[%s17612_s4 + $0x628] sm:$0xff]   ;;  %v13781_v21 = vld [vmem:[%s17614_s6 + $0xb8] sm:$0xff]  }
 0x7a2   : > { %12538 = vmatprep.subr.bf16.mxu0 %v13743_v22 }
 0x7a5   : > { %12539 = vmatpush3.bf16.msra.mxu0 %v13743_v22  ;;  %v13782_v22 = vld [vmem:[%s17614_s6 + $0xc0] sm:$0xff]  }
 0x7a6   : > { %12540 = vmatprep.subr.bf16.mxu0 %v13744_v48 }
 0x7a8   : > { %12533 = vmatmul.mubr.bf16.gmra.mrb[180].mxu0 %v7177_v30  ;;  %v13761_v30 = vld [vmem:[%s17614_s6 + $0x18] sm:$0xff]  }
 0x7a9   : > { %12541 = vmatpush3.bf16.msra.mxu0 %v13744_v48  ;;  %12552 = vmatprep.mubr.bf16.mxu0 %v7438_v29  ;;  %v13764_v29 = vld [vmem:[%s17614_s6 + $0x30] sm:$0xff]  }
 0x7aa   : > { %12542 = vmatprep.subr.bf16.mxu0 %v13745_v51  ;;  %12591 = vmatpush3.bf16.msra.mxu1 %v13761_v30  ;;  %v13795_v30 = vld [vmem:[%s17614_s6 + $0x128] sm:$0xff]  }
 0x7ab   : > { %12592 = vmatprep.subr.bf16.mxu1 %v17643_v50 }
 0x7ad   : > { %12543 = vmatpush3.bf16.msra.mxu0 %v13745_v51  ;;  %v13783_v51 = vld [vmem:[%s17614_s6 + $0xc8] sm:$0xff]  }
 0x7ae   : > { %12544 = vmatprep.subr.bf16.mxu0 %v13746_v53  ;;  %12593 = vmatpush3.bf16.msra.mxu1 %v13762_v5  ;;  %v13796_v5 = vld [vmem:[%s17614_s6 + $0x130] sm:$0xff]  }
 0x7af   : > { %12594 = vmatprep.subr.bf16.mxu1 %v17643_v50 }
 0x7b1   : > { %12545 = vmatpush3.bf16.msra.mxu0 %v13746_v53  ;;  %v13784_v53 = vld [vmem:[%s17614_s6 + $0xd0] sm:$0xff]  }
 0x7b2   : > { %12546 = vmatprep.subr.bf16.mxu0 %v13747_v31  ;;  %12595 = vmatpush3.bf16.msra.mxu1 %v13763_v56  ;;  %v13797_v56 = vld [vmem:[%s17614_s6 + $0x138] sm:$0xff]  }
 0x7b3   : > { %12596 = vmatprep.subr.bf16.mxu1 %v17643_v50 }
 0x7b5   : > { %12547 = vmatpush3.bf16.msra.mxu0 %v13747_v31  ;;  %v13785_v31 = vld [vmem:[%s17614_s6 + $0xd8] sm:$0xff]  }
 0x7b6   : > { %12548 = vmatprep.subr.bf16.mxu0 %v13748_v24  ;;  %12597 = vmatpush3.bf16.msra.mxu1 %v13764_v29  ;;  %v13798_v29 = vld [vmem:[%s17614_s6 + $0x140] sm:$0xff]  }
 0x7b7   : > { %12598 = vmatprep.subr.bf16.mxu1 %v17643_v50 }
 0x7b9   : > { %12549 = vmatpush3.bf16.msra.mxu0 %v13748_v24  ;;  %v13786_v24 = vld [vmem:[%s17614_s6 + $0xe0] sm:$0xff]  }
 0x7ba   : > { %12550 = vmatprep.subr.bf16.mxu0 %v13749_v26  ;;  %12599 = vmatpush3.bf16.msra.mxu1 %v13765_v0 }
 0x7bb   : > { %12604 = vmatprep.subr.bf16.mxu1 %v17643_v50 }
 0x7bd   : > { %12551 = vmatpush3.bf16.msra.mxu0 %v13749_v26  ;;  %v13787_v26 = vld [vmem:[%s17614_s6 + $0xe8] sm:$0xff]  }
 0x7be   : > { %12560 = vmatprep.subr.bf16.mxu0 %v13750_v38 }
 0x7c0   : > { %12553 = vmatmul.mubr.bf16.vlgmr.msra.gmra.mrb[176].mxu0 %v7439_v19 }
 0x7c1   : > { %12561 = vmatpush3.bf16.msra.mxu0 %v13750_v38  ;;  %12556 = vmatprep.mubr.bf16.mxu0 %v7440_v25  ;;  %v13788_v38 = vld [vmem:[%s17614_s6 + $0xf0] sm:$0xff]  }
 0x7c2   : > { %12562 = vmatprep.subr.bf16.mxu0 %v13751_v11 }
 0x7c5   : > { %12563 = vmatpush3.bf16.msra.mxu0 %v13751_v11  ;;  %v13789_v11 = vld [vmem:[%s17614_s6 + $0xf8] sm:$0xff]  }
 0x7c6   : > { %12564 = vmatprep.subr.bf16.mxu0 %v13752_v46 }
 0x7c8   : > { %12557 = vmatmul.mubr.bf16.gmra.mrb[180].mxu0 %v7441_v32 }
 0x7c9   : > { %12565 = vmatpush3.bf16.msra.mxu0 %v13752_v46  ;;  %12576 = vmatprep.mubr.bf16.mxu0 %v7702_v57  ;;  %v13790_v46 = vld [vmem:[%s17614_s6 + $0x100] sm:$0xff]  }
 0x7ca   : > { %12566 = vmatprep.subr.bf16.mxu0 %v13753_v58 }
 0x7cd   : > { %12567 = vmatpush3.bf16.msra.mxu0 %v13753_v58 }
 0x7ce   : > { %12568 = vmatprep.subr.bf16.mxu0 %v13754_v62 }
 0x7d1   : > { %12569 = vmatpush3.bf16.msra.mxu0 %v13754_v62  ;;  %v13791_v62 = vld [vmem:[%s17614_s6 + $0x108] sm:$0xff]  }
 0x7d2   : > { %12570 = vmatprep.subr.bf16.mxu0 %v13755_v52 }
 0x7d5   : > { %12571 = vmatpush3.bf16.msra.mxu0 %v13755_v52  ;;  %v13792_v52 = vld [vmem:[%s17614_s6 + $0x110] sm:$0xff]  }
 0x7d6   : > { %12572 = vmatprep.subr.bf16.mxu0 %v13756_v27 }
 0x7d9   : > { %12573 = vmatpush3.bf16.msra.mxu0 %v13756_v27  ;;  %v13793_v27 = vld [vmem:[%s17614_s6 + $0x118] sm:$0xff]  }
 0x7da   : > { %12574 = vmatprep.subr.bf16.mxu0 %v13757_v4 }
 0x7dd   : > { %12575 = vmatpush3.bf16.msra.mxu0 %v13757_v4  ;;  %v13794_v4 = vld [vmem:[%s17614_s6 + $0x120] sm:$0xff]  }
 0x7de   : > { %12904 = vmatprep.subr.bf16.mxu0 %v17643_v50 }
 0x7e0   : > { %12577 = vmatmul.mubr.bf16.vlgmr.msra.gmra.mrb[176].mxu0 %v7703_v2 }
 0x7e1   : > { %12580 = vmatprep.mubr.bf16.mxu0 %v7704_v12 }
 0x7e8   : > { %12581 = vmatmul.mubr.bf16.gmra.mrb[180].mxu0 %v7705_v59 }
 0x7e9   : > { %12920 = vmatprep.mubr.msk.bf16.mxu0 %vm13964_vm0, %v17643_v50 }
 0x8b3   : > { %v12578_v19 = vpop.f32.mrb[176].mxu0 }
 0x8b4   : > { %v7853_v36 = vadd.f32 %v12578_v19, %v10947_v23  ;;  %v7805_v14 = vpop.f32.mrb[177].mxu0  ;;  %v13800_v19 = vld [vmem:[%s17614_s6 + $0x150] sm:$0xff]  }
 0x8b5   : > { %v7851_v25 = vadd.f32 %v10947_v23, %v7805_v14  ;;  %v12579_v61 = vpop.f32.mrb[178].mxu0  ;;  %v13802_v14 = vld [vmem:[%s17614_s6 + $0x160] sm:$0xff]  }
 0x8b6   : > { %v7854_v45 = vadd.f32 %v12579_v61, %v10947_v23  ;;  %v7808_v32 = vpop.f32.mrb[179].mxu0  ;;  %v13804_v61 = vld [vmem:[%s17614_s6 + $0x170] sm:$0xff]  }
 0x8b7   : > { %v7859_v42 = vmax.f32 %v7851_v25, %v7853_v36  ;;  %v7852_v40 = vadd.f32 %v10947_v23, %v7808_v32  ;;  %v13801_v36 = vld [vmem:[%s17614_s6 + $0x158] sm:$0xff]   ;;  %v13803_v25 = vld [vmem:[%s17614_s6 + $0x168] sm:$0xff]   ;;  %v13806_v32 = vld [vmem:[%s17614_s6 + $0x180] sm:$0xff]  }
 0x8b9   : > { %v7860_v57 = vmax.f32 %v7852_v40, %v7854_v45  ;;  %v13805_v45 = vld [vmem:[%s17614_s6 + $0x178] sm:$0xff]   ;;  %v13807_v40 = vld [vmem:[%s17614_s6 + $0x188] sm:$0xff]  }
 0x8bb   : > { %v12582_v8 = vpop.f32.mrb[180].mxu0 }
 0x8bc   : > { %v7857_v37 = vadd.f32 %v12582_v8, %v10947_v23  ;;  %v7821_v2 = vpop.f32.mrb[181].mxu0  ;;  %v13809_v8 = vld [vmem:[%s17614_s6 + $0x198] sm:$0xff]  }
 0x8bd   : > { %v7855_v9 = vadd.f32 %v10947_v23, %v7821_v2  ;;  %v12583_v17 = vpop.f32.mrb[182].mxu0  ;;  %v13811_v2 = vld [vmem:[%s17614_s6 + $0x1a8] sm:$0xff]  }
 0x8be   : > { %v7858_v1 = vadd.f32 %v12583_v17, %v10947_v23  ;;  %v7824_v34 = vpop.f32.mrb[183].mxu0  ;;  %v13813_v17 = vld [vmem:[%s17614_s6 + $0x1b8] sm:$0xff]  }
 0x8bf   : > { %v7861_v12 = vmax.f32 %v7855_v9, %v7857_v37  ;;  %v7856_v6 = vadd.f32 %v10947_v23, %v7824_v34  ;;  %v13799_v23 = vld [vmem:[%s17614_s6 + $0x148] sm:$0xff]   ;;  %v13810_v37 = vld [vmem:[%s17614_s6 + $0x1a0] sm:$0xff]   ;;  %v13812_v9 = vld [vmem:[%s17614_s6 + $0x1b0] sm:$0xff]  }
 0x8c1   : > { %v7863_v7 = vmax.f32 %v7859_v42, %v7861_v12  ;;  %v7862_v47 = vmax.f32 %v7856_v6, %v7858_v1  ;;  %v13814_v1 = vld [vmem:[%s17614_s6 + $0x1c0] sm:$0xff]   ;;  %v13815_v12 = vld [vmem:[%s17614_s6 + $0x1c8] sm:$0xff]   ;;  %v13816_v6 = vld [vmem:[%s17614_s6 + $0x1d0] sm:$0xff]  }
 0x8c3   : > { %v7864_v13 = vmax.f32 %v7860_v57, %v7862_v47  ;;  %v7865_v54 = vmax.f32 %v7863_v7, 0.0  ;;  %v13808_v57 = vld [vmem:[%s17614_s6 + $0x190] sm:$0xff]   ;;  %v13817_v7 = vld [vmem:[%s17614_s6 + $0x1d8] sm:$0xff]   ;;  %v13818_v47 = vld [vmem:[%s17614_s6 + $0x1e0] sm:$0xff]  }
 0x8c5   : > { %v7866_v59 = vmax.f32 %v7864_v13, 0.0  ;;  %v13819_v13 = vld [vmem:[%s17614_s6 + $0x1e8] sm:$0xff]  }
 0x8c7   : > { %v16997_v49 = vpack.c.bf16 %v7866_v59, %v7865_v54  ;;  %v13820_v54 = vld [vmem:[%s17614_s6 + $0x1f0] sm:$0xff]   ;;  %v13821_v59 = vld [vmem:[%s17614_s6 + $0x1f8] sm:$0xff]  }
 0x8c9   : > { %12601 = vmatmul.mubr.bf16.vlgmr.msra.gmra.mrb[80].mxu1 %v16997_v49  ;;  %v17034_v20 = vshrl.u32 %v16997_v49, 16  ;;  %v8102_v48 = vrot.slane %v16997_v49, 1  ;;  %v8318_v0 = vrot.slane %v16997_v49, 2  ;;  %v8534_v34 = vrot.slane %v16997_v49, 3 }
 0x8ca   : > { %12605 = vmatpush3.bf16.msra.mxu1 %v13766_v55  ;;  %12620 = vmatprep.mubr.msk.bf16.mxu1 %vm13964_vm0, %v17643_v50  ;;  %v13822_v55 = vld [vmem:[%s17614_s6 + $0x200] sm:$0xff]  }
 0x8cb   : > { %12606 = vmatprep.subr.bf16.mxu1 %v17643_v50  ;;  %v8210_v58 = vrot.slane %v17034_v20, 1  ;;  %v8426_v42 = vrot.slane %v17034_v20, 2 }
 0x8ce   : > { %12607 = vmatpush3.bf16.msra.mxu1 %v13767_v10  ;;  %v8642_v10 = vrot.slane %v17034_v20, 3 }
 0x8cf   : > { %12608 = vmatprep.subr.bf16.mxu1 %v17643_v50 }
 0x8d2   : > { %12609 = vmatpush3.bf16.msra.mxu1 %v13768_v39  ;;  %v13823_v39 = vld [vmem:[%s17614_s6 + $0x208] sm:$0xff]  }
 0x8d3   : > { %12610 = vmatprep.subr.bf16.mxu1 %v17643_v50 }
 0x8d6   : > { %12611 = vmatpush3.bf16.msra.mxu1 %v13769_v41  ;;  %v13824_v41 = vld [vmem:[%s17614_s6 + $0x210] sm:$0xff]  }
 0x8d7   : > { %12612 = vmatprep.subr.bf16.mxu1 %v17643_v50 }
 0x8da   : > { %12613 = vmatpush3.bf16.msra.mxu1 %v13770_v28  ;;  %v13825_v28 = vld [vmem:[%s17614_s6 + $0x218] sm:$0xff]  }
 0x8db   : > { %12614 = vmatprep.subr.bf16.mxu1 %v17643_v50 }
 0x8de   : > { %12615 = vmatpush3.bf16.msra.mxu1 %v13771_v3  ;;  %v13826_v3 = vld [vmem:[%s17614_s6 + $0x220] sm:$0xff]  }
 0x8df   : > { %12616 = vmatprep.subr.bf16.mxu1 %v17643_v50 }
 0x8e2   : > { %12617 = vmatpush3.bf16.msra.mxu1 %v13772_v43  ;;  %v13827_v43 = vld [vmem:[%s17614_s6 + $0x228] sm:$0xff]  }
 0x8e3   : > { %12618 = vmatprep.subr.bf16.mxu1 %v17643_v50 }
 0x8e6   : > { %12619 = vmatpush3.bf16.msra.mxu1 %v13773_v15  ;;  %v13828_v15 = vld [vmem:[%s17614_s6 + $0x230] sm:$0xff]  }
 0x8e7   : > { %12624 = vmatprep.subr.bf16.mxu1 %v17643_v50 }
 0x8e9   : > { %12621 = vmatmul.mubr.bf16.vlgmr.msra.gmra.mrb[80].mxu1 %v17034_v20 }
 0x8ea   : > { %12625 = vmatpush3.bf16.msra.mxu1 %v13774_v16  ;;  %12640 = vmatprep.mubr.msk.bf16.mxu1 %vm13964_vm0, %v17643_v50  ;;  %v13829_v16 = vld [vmem:[%s17614_s6 + $0x238] sm:$0xff]  }
 0x8eb   : > { %12626 = vmatprep.subr.bf16.mxu1 %v17643_v50 }
 0x8ee   : > { %12627 = vmatpush3.bf16.msra.mxu1 %v13775_v63  ;;  %v13830_v63 = vld [vmem:[%s17614_s6 + $0x240] sm:$0xff]  }
 0x8ef   : > { %12628 = vmatprep.subr.bf16.mxu1 %v17643_v50 }
 0x8f2   : > { %12629 = vmatpush3.bf16.msra.mxu1 %v13776_v35  ;;  %v8750_v35 = vrot.slane %v16997_v49, 4 }
 0x8f3   : > { %12630 = vmatprep.subr.bf16.mxu1 %v17643_v50 }
 0x8f6   : > { %12631 = vmatpush3.bf16.msra.mxu1 %v13777_v33  ;;  %v13831_v33 = vld [vmem:[%s17614_s6 + $0x248] sm:$0xff]  }
 0x8f7   : > { %12632 = vmatprep.subr.bf16.mxu1 %v17643_v50 }
 0x8fa   : > { %12633 = vmatpush3.bf16.msra.mxu1 %v13778_v18  ;;  %v13832_v18 = vld [vmem:[%s17614_s6 + $0x250] sm:$0xff]  }
 0x8fb   : > { %12634 = vmatprep.subr.bf16.mxu1 %v17643_v50 }
 0x8fe   : > { %12635 = vmatpush3.bf16.msra.mxu1 %v13779_v44  ;;  %v13833_v44 = vld [vmem:[%s17614_s6 + $0x258] sm:$0xff]  }
 0x8ff   : > { %12636 = vmatprep.subr.bf16.mxu1 %v17643_v50 }
 0x902   : > { %12637 = vmatpush3.bf16.msra.mxu1 %v13780_v60  ;;  %v13834_v60 = vld [vmem:[%s17614_s6 + $0x260] sm:$0xff]  }
 0x903   : > { %12638 = vmatprep.subr.bf16.mxu1 %v17643_v50 }
 0x906   : > { %12639 = vmatpush3.bf16.msra.mxu1 %v13781_v21  ;;  %v13835_v21 = vld [vmem:[%s17614_s6 + $0x268] sm:$0xff]  }
 0x907   : > { %12644 = vmatprep.subr.bf16.mxu1 %v17643_v50 }
 0x909   : > { %12641 = vmatmul.mubr.bf16.vlgmr.msra.gmra.mrb[80].mxu1 %v8102_v48  ;;  %v13837_v48 = vld [vmem:[%s17614_s6 + $0x278] sm:$0xff]  }
 0x90a   : > { %12645 = vmatpush3.bf16.msra.mxu1 %v13782_v22  ;;  %12660 = vmatprep.mubr.msk.bf16.mxu1 %vm13964_vm0, %v17643_v50  ;;  %v13836_v22 = vld [vmem:[%s17614_s6 + $0x270] sm:$0xff]  }
 0x90b   : > { %12646 = vmatprep.subr.bf16.mxu1 %v17643_v50 }
 0x90e   : > { %12647 = vmatpush3.bf16.msra.mxu1 %v13783_v51  ;;  %v13838_v51 = vld [vmem:[%s17614_s6 + $0x280] sm:$0xff]  }
 0x90f   : > { %12648 = vmatprep.subr.bf16.mxu1 %v17643_v50 }
 0x912   : > { %12649 = vmatpush3.bf16.msra.mxu1 %v13784_v53  ;;  %v8858_v53 = vrot.slane %v17034_v20, 4 }
 0x913   : > { %12650 = vmatprep.subr.bf16.mxu1 %v17643_v50 }
 0x916   : > { %12651 = vmatpush3.bf16.msra.mxu1 %v13785_v31  ;;  %v13839_v31 = vld [vmem:[%s17614_s6 + $0x288] sm:$0xff]  }
 0x917   : > { %12652 = vmatprep.subr.bf16.mxu1 %v17643_v50 }
 0x91a   : > { %12653 = vmatpush3.bf16.msra.mxu1 %v13786_v24  ;;  %v13840_v24 = vld [vmem:[%s17614_s6 + $0x290] sm:$0xff]  }
 0x91b   : > { %12654 = vmatprep.subr.bf16.mxu1 %v17643_v50 }
 0x91e   : > { %12655 = vmatpush3.bf16.msra.mxu1 %v13787_v26  ;;  %v13841_v26 = vld [vmem:[%s17614_s6 + $0x298] sm:$0xff]  }
 0x91f   : > { %12656 = vmatprep.subr.bf16.mxu1 %v17643_v50 }
 0x922   : > { %12657 = vmatpush3.bf16.msra.mxu1 %v13788_v38  ;;  %v13842_v38 = vld [vmem:[%s17614_s6 + $0x2a0] sm:$0xff]  }
 0x923   : > { %12658 = vmatprep.subr.bf16.mxu1 %v17643_v50 }
 0x926   : > { %12659 = vmatpush3.bf16.msra.mxu1 %v13789_v11  ;;  %v13843_v11 = vld [vmem:[%s17614_s6 + $0x2a8] sm:$0xff]  }
 0x927   : > { %12664 = vmatprep.subr.bf16.mxu1 %v17643_v50 }
 0x929   : > { %12661 = vmatmul.mubr.bf16.vlgmr.msra.gmra.mrb[80].mxu1 %v8210_v58  ;;  %v13845_v58 = vld [vmem:[%s17614_s6 + $0x2b8] sm:$0xff]  }
 0x92a   : > { %12665 = vmatpush3.bf16.msra.mxu1 %v13790_v46  ;;  %12680 = vmatprep.mubr.msk.bf16.mxu1 %vm13964_vm0, %v17643_v50  ;;  %v13844_v46 = vld [vmem:[%s17614_s6 + $0x2b0] sm:$0xff]  }
 0x92b   : > { %12666 = vmatprep.subr.bf16.mxu1 %v17643_v50 }
 0x92e   : > { %12667 = vmatpush3.bf16.msra.mxu1 %v13791_v62  ;;  %v13846_v62 = vld [vmem:[%s17614_s6 + $0x2c0] sm:$0xff]  }
 0x92f   : > { %12668 = vmatprep.subr.bf16.mxu1 %v17643_v50 }
 0x932   : > { %12669 = vmatpush3.bf16.msra.mxu1 %v13792_v52  ;;  %v8966_v52 = vrot.slane %v16997_v49, 5 }
 0x933   : > { %12670 = vmatprep.subr.bf16.mxu1 %v17643_v50 }
 0x936   : > { %12671 = vmatpush3.bf16.msra.mxu1 %v13793_v27  ;;  %v13847_v27 = vld [vmem:[%s17614_s6 + $0x2c8] sm:$0xff]  }
 0x937   : > { %12672 = vmatprep.subr.bf16.mxu1 %v17643_v50 }
 0x93a   : > { %12673 = vmatpush3.bf16.msra.mxu1 %v13794_v4  ;;  %v13848_v4 = vld [vmem:[%s17614_s6 + $0x2d0] sm:$0xff]  }
 0x93b   : > { %12674 = vmatprep.subr.bf16.mxu1 %v17643_v50 }
 0x93e   : > { %12675 = vmatpush3.bf16.msra.mxu1 %v13795_v30  ;;  %v13849_v30 = vld [vmem:[%s17614_s6 + $0x2d8] sm:$0xff]  }
 0x93f   : > { %12676 = vmatprep.subr.bf16.mxu1 %v17643_v50 }
 0x942   : > { %12677 = vmatpush3.bf16.msra.mxu1 %v13796_v5  ;;  %v13850_v5 = vld [vmem:[%s17614_s6 + $0x2e0] sm:$0xff]  }
 0x943   : > { %12678 = vmatprep.subr.bf16.mxu1 %v17643_v50 }
 0x946   : > { %12679 = vmatpush3.bf16.msra.mxu1 %v13797_v56  ;;  %v13851_v56 = vld [vmem:[%s17614_s6 + $0x2e8] sm:$0xff]  }
 0x947   : > { %12684 = vmatprep.subr.bf16.mxu1 %v17643_v50 }
 0x949   : > { %12681 = vmatmul.mubr.bf16.vlgmr.msra.gmra.mrb[80].mxu1 %v8318_v0  ;;  %v13853_v0 = vld [vmem:[%s17614_s6 + $0x2f8] sm:$0xff]  }
 0x94a   : > { %12685 = vmatpush3.bf16.msra.mxu1 %v13798_v29  ;;  %12700 = vmatprep.mubr.msk.bf16.mxu1 %vm13964_vm0, %v17643_v50  ;;  %v13852_v29 = vld [vmem:[%s17614_s6 + $0x2f0] sm:$0xff]  }
 0x94b   : > { %12686 = vmatprep.subr.bf16.mxu1 %v17643_v50 }
 0x94e   : > { %12687 = vmatpush3.bf16.msra.mxu1 %v13799_v23  ;;  %v13854_v23 = vld [vmem:[%s17614_s6 + $0x300] sm:$0xff]  }
 0x94f   : > { %12688 = vmatprep.subr.bf16.mxu1 %v17643_v50 }
 0x952   : > { %12689 = vmatpush3.bf16.msra.mxu1 %v13800_v19  ;;  %v9074_v19 = vrot.slane %v17034_v20, 5 }
 0x953   : > { %12690 = vmatprep.subr.bf16.mxu1 %v17643_v50 }
 0x956   : > { %12691 = vmatpush3.bf16.msra.mxu1 %v13801_v36  ;;  %v13886_v36 = vld [vmem:[%s17616_s8] sm:$0xff]  }
 0x957   : > { %12692 = vmatprep.subr.bf16.mxu1 %v17643_v50  ;;  %12905 = vmatpush3.bf16.msra.mxu0 %v13886_v36 }
 0x958   : > { %12906 = vmatprep.subr.bf16.mxu0 %v17643_v50 }
 0x95a   : > { %12693 = vmatpush3.bf16.msra.mxu1 %v13802_v14  ;;  %v13855_v14 = vld [vmem:[%s17614_s6 + $0x308] sm:$0xff]  }
 0x95b   : > { %12694 = vmatprep.subr.bf16.mxu1 %v17643_v50 }
 0x95e   : > { %12695 = vmatpush3.bf16.msra.mxu1 %v13803_v25  ;;  %v13887_v25 = vld [vmem:[%s17616_s8 + $0x8] sm:$0xff]  }
 0x95f   : > { %12696 = vmatprep.subr.bf16.mxu1 %v17643_v50  ;;  %12907 = vmatpush3.bf16.msra.mxu0 %v13887_v25 }
 0x960   : > { %12908 = vmatprep.subr.bf16.mxu0 %v17643_v50 }
 0x962   : > { %12697 = vmatpush3.bf16.msra.mxu1 %v13804_v61  ;;  %v13856_v61 = vld [vmem:[%s17614_s6 + $0x310] sm:$0xff]  }
 0x963   : > { %12698 = vmatprep.subr.bf16.mxu1 %v17643_v50 }
 0x966   : > { %12699 = vmatpush3.bf16.msra.mxu1 %v13805_v45  ;;  %v13888_v45 = vld [vmem:[%s17616_s8 + $0x10] sm:$0xff]  }
 0x967   : > { %12704 = vmatprep.subr.bf16.mxu1 %v17643_v50  ;;  %12909 = vmatpush3.bf16.msra.mxu0 %v13888_v45 }
 0x968   : > { %12910 = vmatprep.subr.bf16.mxu0 %v17643_v50 }
 0x969   : > { %12701 = vmatmul.mubr.bf16.vlgmr.msra.gmra.mrb[80].mxu1 %v8426_v42  ;;  %v13889_v42 = vld [vmem:[%s17616_s8 + $0x18] sm:$0xff]  }
 0x96a   : > { %12705 = vmatpush3.bf16.msra.mxu1 %v13806_v32  ;;  %12720 = vmatprep.mubr.msk.bf16.mxu1 %vm13964_vm0, %v17643_v50  ;;  %v13857_v32 = vld [vmem:[%s17614_s6 + $0x318] sm:$0xff]  }
 0x96b   : > { %12706 = vmatprep.subr.bf16.mxu1 %v17643_v50  ;;  %12911 = vmatpush3.bf16.msra.mxu0 %v13889_v42 }
 0x96c   : > { %12912 = vmatprep.subr.bf16.mxu0 %v17643_v50 }
 0x96e   : > { %12707 = vmatpush3.bf16.msra.mxu1 %v13807_v40  ;;  %v13858_v40 = vld [vmem:[%s17614_s6 + $0x320] sm:$0xff]  }
 0x96f   : > { %12708 = vmatprep.subr.bf16.mxu1 %v17643_v50 }
 0x972   : > { %12709 = vmatpush3.bf16.msra.mxu1 %v13808_v57  ;;  %v13890_v57 = vld [vmem:[%s17616_s8 + $0x20] sm:$0xff]  }
 0x973   : > { %12710 = vmatprep.subr.bf16.mxu1 %v17643_v50  ;;  %12913 = vmatpush3.bf16.msra.mxu0 %v13890_v57 }
 0x974   : > { %12914 = vmatprep.subr.bf16.mxu0 %v17643_v50 }
 0x976   : > { %12711 = vmatpush3.bf16.msra.mxu1 %v13809_v8  ;;  %v13859_v8 = vld [vmem:[%s17614_s6 + $0x328] sm:$0xff]  }
 0x977   : > { %12712 = vmatprep.subr.bf16.mxu1 %v17643_v50 }
 0x97a   : > { %12713 = vmatpush3.bf16.msra.mxu1 %v13810_v37  ;;  %v13891_v37 = vld [vmem:[%s17616_s8 + $0x28] sm:$0xff]  }
 0x97b   : > { %12714 = vmatprep.subr.bf16.mxu1 %v17643_v50  ;;  %12915 = vmatpush3.bf16.msra.mxu0 %v13891_v37 }
 0x97c   : > { %12916 = vmatprep.subr.bf16.mxu0 %v17643_v50 }
 0x97e   : > { %12715 = vmatpush3.bf16.msra.mxu1 %v13811_v2  ;;  %v13860_v2 = vld [vmem:[%s17614_s6 + $0x330] sm:$0xff]  }
 0x97f   : > { %12716 = vmatprep.subr.bf16.mxu1 %v17643_v50 }
 0x982   : > { %12717 = vmatpush3.bf16.msra.mxu1 %v13812_v9  ;;  %v13861_v9 = vld [vmem:[%s17614_s6 + $0x338] sm:$0xff]  }
 0x983   : > { %12718 = vmatprep.subr.bf16.mxu1 %v17643_v50 }
 0x986   : > { %12719 = vmatpush3.bf16.msra.mxu1 %v13813_v17  ;;  %v13862_v17 = vld [vmem:[%s17614_s6 + $0x340] sm:$0xff]  }
 0x987   : > { %12724 = vmatprep.subr.bf16.mxu1 %v17643_v50 }
 0x989   : > { %12721 = vmatmul.mubr.bf16.vlgmr.msra.gmra.mrb[80].mxu1 %v8534_v34  ;;  %v13863_v34 = vld [vmem:[%s17614_s6 + $0x348] sm:$0xff]  }
 0x98a   : > { %12725 = vmatpush3.bf16.msra.mxu1 %v13814_v1  ;;  %12740 = vmatprep.mubr.msk.bf16.mxu1 %vm13964_vm0, %v17643_v50  ;;  %v9182_v1 = vrot.slane %v16997_v49, 6 }
 0x98b   : > { %12726 = vmatprep.subr.bf16.mxu1 %v17643_v50 }
 0x98e   : > { %12727 = vmatpush3.bf16.msra.mxu1 %v13815_v12  ;;  %v13864_v12 = vld [vmem:[%s17614_s6 + $0x350] sm:$0xff]  }
 0x98f   : > { %12728 = vmatprep.subr.bf16.mxu1 %v17643_v50 }
 0x992   : > { %12729 = vmatpush3.bf16.msra.mxu1 %v13816_v6  ;;  %v13865_v6 = vld [vmem:[%s17614_s6 + $0x358] sm:$0xff]  }
 0x993   : > { %12730 = vmatprep.subr.bf16.mxu1 %v17643_v50 }
 0x996   : > { %12731 = vmatpush3.bf16.msra.mxu1 %v13817_v7  ;;  %v13866_v7 = vld [vmem:[%s17614_s6 + $0x360] sm:$0xff]  }
 0x997   : > { %12732 = vmatprep.subr.bf16.mxu1 %v17643_v50 }
 0x99a   : > { %12733 = vmatpush3.bf16.msra.mxu1 %v13818_v47  ;;  %v13867_v47 = vld [vmem:[%s17614_s6 + $0x368] sm:$0xff]  }
 0x99b   : > { %12734 = vmatprep.subr.bf16.mxu1 %v17643_v50 }
 0x99e   : > { %12735 = vmatpush3.bf16.msra.mxu1 %v13819_v13  ;;  %v13868_v13 = vld [vmem:[%s17614_s6 + $0x370] sm:$0xff]  }
 0x99f   : > { %12736 = vmatprep.subr.bf16.mxu1 %v17643_v50 }
 0x9a2   : > { %12737 = vmatpush3.bf16.msra.mxu1 %v13820_v54  ;;  %v13869_v54 = vld [vmem:[%s17614_s6 + $0x378] sm:$0xff]  }
 0x9a3   : > { %12738 = vmatprep.subr.bf16.mxu1 %v17643_v50 }
 0x9a6   : > { %12739 = vmatpush3.bf16.msra.mxu1 %v13821_v59  ;;  %v13870_v59 = vld [vmem:[%s17614_s6 + $0x380] sm:$0xff]  }
 0x9a7   : > { %12744 = vmatprep.subr.bf16.mxu1 %v17643_v50 }
 0x9a9   : > { %12741 = vmatmul.mubr.bf16.vlgmr.msra.gmra.mrb[80].mxu1 %v8642_v10  ;;  %v13871_v10 = vld [vmem:[%s17614_s6 + $0x388] sm:$0xff]  }
 0x9aa   : > { %12745 = vmatpush3.bf16.msra.mxu1 %v13822_v55  ;;  %12760 = vmatprep.mubr.msk.bf16.mxu1 %vm13964_vm0, %v17643_v50  ;;  %v9290_v55 = vrot.slane %v17034_v20, 6 }
 0x9ab   : > { %12746 = vmatprep.subr.bf16.mxu1 %v17643_v50 }
 0x9ae   : > { %12747 = vmatpush3.bf16.msra.mxu1 %v13823_v39  ;;  %v13872_v39 = vld [vmem:[%s17614_s6 + $0x390] sm:$0xff]  }
 0x9af   : > { %12748 = vmatprep.subr.bf16.mxu1 %v17643_v50 }
 0x9b2   : > { %12749 = vmatpush3.bf16.msra.mxu1 %v13824_v41  ;;  %v13873_v41 = vld [vmem:[%s17614_s6 + $0x398] sm:$0xff]  }
 0x9b3   : > { %12750 = vmatprep.subr.bf16.mxu1 %v17643_v50 }
 0x9b6   : > { %12751 = vmatpush3.bf16.msra.mxu1 %v13825_v28  ;;  %v13874_v28 = vld [vmem:[%s17614_s6 + $0x3a0] sm:$0xff]  }
 0x9b7   : > { %12752 = vmatprep.subr.bf16.mxu1 %v17643_v50 }
 0x9ba   : > { %12753 = vmatpush3.bf16.msra.mxu1 %v13826_v3  ;;  %v13875_v3 = vld [vmem:[%s17614_s6 + $0x3a8] sm:$0xff]  }
 0x9bb   : > { %12754 = vmatprep.subr.bf16.mxu1 %v17643_v50 }
 0x9be   : > { %12755 = vmatpush3.bf16.msra.mxu1 %v13827_v43  ;;  %v13876_v43 = vld [vmem:[%s17614_s6 + $0x3b0] sm:$0xff]  }
 0x9bf   : > { %12756 = vmatprep.subr.bf16.mxu1 %v17643_v50 }
 0x9c2   : > { %12757 = vmatpush3.bf16.msra.mxu1 %v13828_v15  ;;  %v13877_v15 = vld [vmem:[%s17614_s6 + $0x3b8] sm:$0xff]  }
 0x9c3   : > { %12758 = vmatprep.subr.bf16.mxu1 %v17643_v50 }
 0x9c6   : > { %12759 = vmatpush3.bf16.msra.mxu1 %v13829_v16  ;;  %v13878_v16 = vld [vmem:[%s17614_s6 + $0x3c0] sm:$0xff]  }
 0x9c7   : > { %12764 = vmatprep.subr.bf16.mxu1 %v17643_v50 }
 0x9c9   : > { %12761 = vmatmul.mubr.bf16.vlgmr.msra.gmra.mrb[80].mxu1 %v8750_v35  ;;  %v13879_v35 = vld [vmem:[%s17614_s6 + $0x3c8] sm:$0xff]  }
 0x9ca   : > { %12765 = vmatpush3.bf16.msra.mxu1 %v13830_v63  ;;  %12780 = vmatprep.mubr.msk.bf16.mxu1 %vm13964_vm0, %v17643_v50  ;;  %v9398_v63 = vrot.slane %v16997_v49, 7  ;;  %v13881_v49 = vld [vmem:[%s17614_s6 + $0x3d8] sm:$0xff]  }
 0x9cb   : > { %12766 = vmatprep.subr.bf16.mxu1 %v17643_v50 }
 0x9ce   : > { %12767 = vmatpush3.bf16.msra.mxu1 %v13831_v33  ;;  %v13880_v33 = vld [vmem:[%s17614_s6 + $0x3d0] sm:$0xff]  }
 0x9cf   : > { %12768 = vmatprep.subr.bf16.mxu1 %v17643_v50 }
 0x9d2   : > { %12769 = vmatpush3.bf16.msra.mxu1 %v13832_v18  ;;  %v13882_v18 = vld [vmem:[%s17614_s6 + $0x3e0] sm:$0xff]  }
 0x9d3   : > { %12770 = vmatprep.subr.bf16.mxu1 %v17643_v50 }
 0x9d6   : > { %12771 = vmatpush3.bf16.msra.mxu1 %v13833_v44  ;;  %v13883_v44 = vld [vmem:[%s17614_s6 + $0x3e8] sm:$0xff]  }
 0x9d7   : > { %12772 = vmatprep.subr.bf16.mxu1 %v17643_v50 }
 0x9da   : > { %12773 = vmatpush3.bf16.msra.mxu1 %v13834_v60  ;;  %v13884_v60 = vld [vmem:[%s17614_s6 + $0x3f0] sm:$0xff]  }
 0x9db   : > { %12774 = vmatprep.subr.bf16.mxu1 %v17643_v50 }
 0x9de   : > { %12775 = vmatpush3.bf16.msra.mxu1 %v13835_v21  ;;  %v13885_v21 = vld [vmem:[%s17614_s6 + $0x3f8] sm:$0xff]  }
 0x9df   : > { %12776 = vmatprep.subr.bf16.mxu1 %v17643_v50 }
 0x9e2   : > { %12777 = vmatpush3.bf16.msra.mxu1 %v13836_v22  ;;  %v9506_v22 = vrot.slane %v17034_v20, 7 }
 0x9e3   : > { %12778 = vmatprep.subr.bf16.mxu1 %v17643_v50 }
 0x9e6   : > { %12779 = vmatpush3.bf16.msra.mxu1 %v13837_v48  ;;  %v13892_v48 = vld [vmem:[%s17616_s8 + $0x30] sm:$0xff]  }
 0x9e7   : > { %12784 = vmatprep.subr.bf16.mxu1 %v17643_v50  ;;  %12917 = vmatpush3.bf16.msra.mxu0 %v13892_v48 }
 0x9e8   : > { %12918 = vmatprep.subr.bf16.mxu0 %v17643_v50 }
 0x9e9   : > { %12781 = vmatmul.mubr.bf16.vlgmr.msra.gmra.mrb[80].mxu1 %v8858_v53  ;;  %v7868_v53 = vld [vmem:[%s17615_s7] sm:$0x1] }
 0x9ea   : > { %12785 = vmatpush3.bf16.msra.mxu1 %v13838_v51  ;;  %12800 = vmatprep.mubr.msk.bf16.mxu1 %vm13964_vm0, %v17643_v50  ;;  %v13893_v51 = vld [vmem:[%s17616_s8 + $0x38] sm:$0xff]  }
 0x9eb   : > { %12786 = vmatprep.subr.bf16.mxu1 %v17643_v50  ;;  %12919 = vmatpush3.bf16.msra.mxu0 %v13893_v51 }
 0x9ee   : > { %12787 = vmatpush3.bf16.msra.mxu1 %v13839_v31 }
 0x9ef   : > { %12788 = vmatprep.subr.bf16.mxu1 %v17643_v50 }
 0x9f2   : > { %12789 = vmatpush3.bf16.msra.mxu1 %v13840_v24 }
 0x9f3   : > { %12790 = vmatprep.subr.bf16.mxu1 %v17643_v50 }
 0x9f6   : > { %12791 = vmatpush3.bf16.msra.mxu1 %v13841_v26 }
 0x9f7   : > { %12792 = vmatprep.subr.bf16.mxu1 %v17643_v50 }
 0x9fa   : > { %12793 = vmatpush3.bf16.msra.mxu1 %v13842_v38 }
 0x9fb   : > { %12794 = vmatprep.subr.bf16.mxu1 %v17643_v50 }
 0x9fe   : > { %12795 = vmatpush3.bf16.msra.mxu1 %v13843_v11 }
 0x9ff   : > { %12796 = vmatprep.subr.bf16.mxu1 %v17643_v50 }
 0xa02   : > { %12797 = vmatpush3.bf16.msra.mxu1 %v13844_v46 }
 0xa03   : > { %12798 = vmatprep.subr.bf16.mxu1 %v17643_v50 }
 0xa06   : > { %12799 = vmatpush3.bf16.msra.mxu1 %v13845_v58  ;;  %v9704_v58 = vlaneseq }
 0xa07   : > { %12804 = vmatprep.subr.bf16.mxu1 %v17643_v50 }
 0xa09   : > { %12801 = vmatmul.mubr.bf16.vlgmr.msra.gmra.mrb[80].mxu1 %v8966_v52 }
 0xa0a   : > { %12805 = vmatpush3.bf16.msra.mxu1 %v13846_v62  ;;  %12820 = vmatprep.mubr.msk.bf16.mxu1 %vm13964_vm0, %v17643_v50  ;;  %v9705_v62 = vand.u32 127, %v9704_v58 }
 0xa0b   : > { %12806 = vmatprep.subr.bf16.mxu1 %v17643_v50 }
 0xa0c   : > { %vm9706_vm3 = vcmp.lt.s32.totalorder %v9705_v62, 10 }
 0xa0e   : > { %12807 = vmatpush3.bf16.msra.mxu1 %v13847_v27 }
 0xa0f   : > { %12808 = vmatprep.subr.bf16.mxu1 %v17643_v50 }
 0xa12   : > { %12809 = vmatpush3.bf16.msra.mxu1 %v13848_v4 }
 0xa13   : > { %12810 = vmatprep.subr.bf16.mxu1 %v17643_v50 }
 0xa16   : > { %12811 = vmatpush3.bf16.msra.mxu1 %v13849_v30 }
 0xa17   : > { %12812 = vmatprep.subr.bf16.mxu1 %v17643_v50 }
 0xa1a   : > { %12813 = vmatpush3.bf16.msra.mxu1 %v13850_v5 }
 0xa1b   : > { %12814 = vmatprep.subr.bf16.mxu1 %v17643_v50 }
 0xa1e   : > { %12815 = vmatpush3.bf16.msra.mxu1 %v13851_v56 }
 0xa1f   : > { %12816 = vmatprep.subr.bf16.mxu1 %v17643_v50 }
 0xa22   : > { %12817 = vmatpush3.bf16.msra.mxu1 %v13852_v29 }
 0xa23   : > { %12818 = vmatprep.subr.bf16.mxu1 %v17643_v50 }
 0xa26   : > { %12819 = vmatpush3.bf16.msra.mxu1 %v13853_v0 }
 0xa27   : > { %12824 = vmatprep.subr.bf16.mxu1 %v17643_v50 }
 0xa29   : > { %12821 = vmatmul.mubr.bf16.vlgmr.msra.gmra.mrb[80].mxu1 %v9074_v19 }
 0xa2a   : > { %12825 = vmatpush3.bf16.msra.mxu1 %v13854_v23  ;;  %12840 = vmatprep.mubr.msk.bf16.mxu1 %vm13964_vm0, %v17643_v50 }
 0xa2b   : > { %12826 = vmatprep.subr.bf16.mxu1 %v17643_v50 }
 0xa2e   : > { %12827 = vmatpush3.bf16.msra.mxu1 %v13855_v14 }
 0xa2f   : > { %12828 = vmatprep.subr.bf16.mxu1 %v17643_v50 }
 0xa32   : > { %12829 = vmatpush3.bf16.msra.mxu1 %v13856_v61 }
 0xa33   : > { %12830 = vmatprep.subr.bf16.mxu1 %v17643_v50 }
 0xa36   : > { %12831 = vmatpush3.bf16.msra.mxu1 %v13857_v32 }
 0xa37   : > { %12832 = vmatprep.subr.bf16.mxu1 %v17643_v50 }
 0xa3a   : > { %12833 = vmatpush3.bf16.msra.mxu1 %v13858_v40 }
 0xa3b   : > { %12834 = vmatprep.subr.bf16.mxu1 %v17643_v50 }
 0xa3e   : > { %12835 = vmatpush3.bf16.msra.mxu1 %v13859_v8 }
 0xa3f   : > { %12836 = vmatprep.subr.bf16.mxu1 %v17643_v50 }
 0xa42   : > { %12837 = vmatpush3.bf16.msra.mxu1 %v13860_v2 }
 0xa43   : > { %12838 = vmatprep.subr.bf16.mxu1 %v17643_v50 }
 0xa46   : > { %12839 = vmatpush3.bf16.msra.mxu1 %v13861_v9 }
 0xa47   : > { %12844 = vmatprep.subr.bf16.mxu1 %v17643_v50 }
 0xa49   : > { %12841 = vmatmul.mubr.bf16.vlgmr.msra.gmra.mrb[80].mxu1 %v9182_v1 }
 0xa4a   : > { %12845 = vmatpush3.bf16.msra.mxu1 %v13862_v17  ;;  %12860 = vmatprep.mubr.msk.bf16.mxu1 %vm13964_vm0, %v17643_v50 }
 0xa4b   : > { %12846 = vmatprep.subr.bf16.mxu1 %v17643_v50 }
 0xa4e   : > { %12847 = vmatpush3.bf16.msra.mxu1 %v13863_v34 }
 0xa4f   : > { %12848 = vmatprep.subr.bf16.mxu1 %v17643_v50 }
 0xa52   : > { %12849 = vmatpush3.bf16.msra.mxu1 %v13864_v12 }
 0xa53   : > { %12850 = vmatprep.subr.bf16.mxu1 %v17643_v50 }
 0xa56   : > { %12851 = vmatpush3.bf16.msra.mxu1 %v13865_v6 }
 0xa57   : > { %12852 = vmatprep.subr.bf16.mxu1 %v17643_v50 }
 0xa5a   : > { %12853 = vmatpush3.bf16.msra.mxu1 %v13866_v7 }
 0xa5b   : > { %12854 = vmatprep.subr.bf16.mxu1 %v17643_v50 }
 0xa5e   : > { %12855 = vmatpush3.bf16.msra.mxu1 %v13867_v47 }
 0xa5f   : > { %12856 = vmatprep.subr.bf16.mxu1 %v17643_v50 }
 0xa62   : > { %12857 = vmatpush3.bf16.msra.mxu1 %v13868_v13 }
 0xa63   : > { %12858 = vmatprep.subr.bf16.mxu1 %v17643_v50 }
 0xa66   : > { %12859 = vmatpush3.bf16.msra.mxu1 %v13869_v54 }
 0xa67   : > { %12864 = vmatprep.subr.bf16.mxu1 %v17643_v50 }
 0xa69   : > { %12861 = vmatmul.mubr.bf16.vlgmr.msra.gmra.mrb[80].mxu1 %v9290_v55 }
 0xa6a   : > { %12865 = vmatpush3.bf16.msra.mxu1 %v13870_v59  ;;  %12880 = vmatprep.mubr.msk.bf16.mxu1 %vm13964_vm0, %v17643_v50 }
 0xa6b   : > { %12866 = vmatprep.subr.bf16.mxu1 %v17643_v50 }
 0xa6e   : > { %12867 = vmatpush3.bf16.msra.mxu1 %v13871_v10 }
 0xa6f   : > { %12868 = vmatprep.subr.bf16.mxu1 %v17643_v50 }
 0xa72   : > { %12869 = vmatpush3.bf16.msra.mxu1 %v13872_v39 }
 0xa73   : > { %12870 = vmatprep.subr.bf16.mxu1 %v17643_v50 }
 0xa76   : > { %12871 = vmatpush3.bf16.msra.mxu1 %v13873_v41 }
 0xa77   : > { %12872 = vmatprep.subr.bf16.mxu1 %v17643_v50 }
 0xa7a   : > { %12873 = vmatpush3.bf16.msra.mxu1 %v13874_v28 }
 0xa7b   : > { %12874 = vmatprep.subr.bf16.mxu1 %v17643_v50 }
 0xa7e   : > { %12875 = vmatpush3.bf16.msra.mxu1 %v13875_v3 }
 0xa7f   : > { %12876 = vmatprep.subr.bf16.mxu1 %v17643_v50 }
 0xa82   : > { %12877 = vmatpush3.bf16.msra.mxu1 %v13876_v43 }
 0xa83   : > { %12878 = vmatprep.subr.bf16.mxu1 %v17643_v50 }
 0xa86   : > { %12879 = vmatpush3.bf16.msra.mxu1 %v13877_v15 }
 0xa87   : > { %12884 = vmatprep.subr.bf16.mxu1 %v17643_v50 }
 0xa89   : > { %12881 = vmatmul.mubr.bf16.vlgmr.msra.gmra.mrb[80].mxu1 %v9398_v63 }
 0xa8a   : > { %12885 = vmatpush3.bf16.msra.mxu1 %v13878_v16  ;;  %12900 = vmatprep.mubr.msk.bf16.mxu1 %vm13964_vm0, %v17643_v50 }
 0xa8b   : > { %12886 = vmatprep.subr.bf16.mxu1 %v17643_v50 }
 0xa8e   : > { %12887 = vmatpush3.bf16.msra.mxu1 %v13879_v35 }
 0xa8f   : > { %12888 = vmatprep.subr.bf16.mxu1 %v17643_v50 }
 0xa92   : > { %12889 = vmatpush3.bf16.msra.mxu1 %v13880_v33 }
 0xa93   : > { %12890 = vmatprep.subr.bf16.mxu1 %v17643_v50 }
 0xa96   : > { %12891 = vmatpush3.bf16.msra.mxu1 %v13881_v49 }
 0xa97   : > { %12892 = vmatprep.subr.bf16.mxu1 %v17643_v50 }
 0xa9a   : > { %12893 = vmatpush3.bf16.msra.mxu1 %v13882_v18 }
 0xa9b   : > { %12894 = vmatprep.subr.bf16.mxu1 %v17643_v50 }
 0xa9e   : > { %12895 = vmatpush3.bf16.msra.mxu1 %v13883_v44 }
 0xa9f   : > { %12896 = vmatprep.subr.bf16.mxu1 %v17643_v50 }
 0xaa2   : > { %12897 = vmatpush3.bf16.msra.mxu1 %v13884_v60 }
 0xaa3   : > { %12898 = vmatprep.subr.bf16.mxu1 %v17643_v50  ;;  %v9615_v50 = vld [vmem:[%s17617_s9] sm:$0x1] }
 0xaa6   : > { %12899 = vmatpush3.bf16.msra.mxu1 %v13885_v21 }
 0xaa9   : > { %12901 = vmatmul.mubr.bf16.vlgmr.msra.gmra.mrb[80].mxu1 %v9506_v22 }
 0xb7c   : > { %v9590_v31 = vpop.f32.mrb[80].mxu1 }
 0xb7d   : > { %v12924_v24 = vadd.f32 %v9590_v31, %v7868_v53  ;;  %v12902_v20 = vpop.f32.mrb[81].mxu1 }
 0xb7e   : > { %v9593_v26 = vpop.f32.mrb[82].mxu1 }
 0xb7f   : > { %v9597_v38 = vmax.f32 %v12924_v24, 0.0  ;;  %v12903_v11 = vpop.f32.mrb[83].mxu1 }
 0xb81   : > { %v9598_v46 = vpack.c.bf16 %v9597_v38, %v9597_v38 }
 0xb83   : > { %12921 = vmatmul.mubr.bf16.vlgmr.msra.gmra.mrb[216].mxu0 %v9598_v46 }
 0xc56   : > { %v9698_v52 = vpop.f32.mrb[216].mxu0 }
 0xc57   : > { %v9699_v27 = vadd.f32 %v9698_v52, %v9615_v50  ;;  %v12922_v4 = vpop.f32.mrb[217].mxu0 }
 0xc58   : > { %v9701_v30 = vpop.f32.mrb[218].mxu0 }
 0xc59   : > { %v12923_v5 = vpop.f32.mrb[219].mxu0  ;;  %v9707_v56 = vsel %vm9706_vm3, %v9699_v27, -inf }
 0xc5a   : > { %v9709_v29 = vsel %vm9708_vm4, %v9707_v56, -inf }
 0xc5b   : > { %9710 = vmax.xlane.f32.xlu0 %v9709_v29 }
 0xce8   : > { %v9711_v0 = vpop.xlane.xlu0 %9710 }
 0xce9   : > { %v9712_v23 = vsub.f32 %v9707_v56, %v9711_v0 }
 0xceb   : > { %v9713_v19 = vmul.f32 1.442695, %v9712_v23 }
 0xced   : > { %13894 = vpow2.f32 %v9713_v19 }
 0xcf7   : > { %v13895_v36 = vpop.eup %13894 }
 0xcf8   : > { %v9715_v14 = vsel %vm9708_vm4, %v13895_v36, 0.0 }
 0xcf9   : > { %9716 = vadd.xlane.f32.xlu0 %v9715_v14 }
 0xd86   : > { %v9717_v25 = vpop.xlane.xlu0 %9716 }
 0xd87   : > { %13896 = vlog2.f32 %v9717_v25 }
 0xd91   : > { %v13897_v61 = vpop.eup %13896 }
 0xd92   : > { %v9719_v45 = vmul.f32 0.6931472, %v13897_v61 }
 0xd94   : > { %v9720_v32 = vadd.f32 %v9719_v45, %v9711_v0 }
 0xd96   : > { %v9721_v42 = vsub.f32 %v9699_v27, %v9720_v32 }
 0xd98   : > { %9722 = vst [vmem:[%s351_s29] sm:$0x1] %v9721_v42 }
 0xd99   : > { %13912 = shalt.err (!%p13909_p3)
}
 0xd9a   : > { %s13913_s27 = scalar_lea.hbm %s17566_s18, 16  ;;  %s13917_s11 = scalar_lea.hbm %s17618_s10, 32 }
 0xd9b   : > { %p13914_p4 = scmp.ne.s32.totalorder %s17566_s18, %s13913_s27  ;;  %p13918_p9 = scmp.lt.u32.totalorder %s17566_s18, %s17618_s10 }
 0xd9c   : > { %p13919_p10 = scmp.lt.u32.totalorder %s13917_s11, %s13913_s27  ;;  %p13921_p12 = scmp.lt.u32.totalorder %s13913_s27, %s17566_s18 }
 0xd9d   : > { %p13915_p7 = pnand %p13914_p4, %p14060_p5 }
 0xd9e   : > { %p13920_p11 = por %p13919_p10, %p13918_p9 }
 0xd9f   : > { %p13916_p8 = pneg %p13915_p7 }
 0xda0   : > { %p13922_p13 = por %p13921_p12, %p13920_p11 }
 0xda2   : > { %p13923_p0 = pnand %p13922_p13, %p13916_p8 }
 0xda4   : > { %13926 = shalt.err (!%p13923_p0)
}
 0xda5   : > { %13178 = dma.vmem_to_hbm [thread:$0]  (%p14060_p5), %s17568_s30, 16, %s17566_s18, %s9724_s20  }
 0xda6 PF: > { %p13184_p1 = scmp.ge.s32.totalorder %s13961_s16, 2  ;;  %s9748_s21 = sand.u32 1, %s13949_s13  }
 0xda7   : > { %s9749_s25 = scalar_lea.sflag [#allocation3], %s9748_s21 }
 0xda8   : > { %p13181_p2 = pnand %p13184_p1, %p14064_p6 }
 0xdaa   : > { %13944 = dma.done.wait (!%p13181_p2), %s9749_s25, 16  }
 0xdab   : > { %13946 = vsyncadd (!%p13181_p2), %s9749_s25, 4294967280  ;;  %p20_p3 = scmp.ge.s32.totalorder %s14047_s19, 4   ;;  %s17658_s13 = smov %s13953_s14 }
 0xdac   : > { %s17659_s14 = smov %s13957_s15  ;;  %s17660_s15 = smov %s14058_s22 }
 0xdad   : > { %s17661_s16 = smov %s14047_s19  ;;  %22 = sbr.rel (!%p20_p3) target bundleno = 3 (0x3), region = 158 }
 0xdb4   :  { %9753 = vsyncpa [#allocation3], 1 }
 0xdb5   :  { %9755 = vsyncpa [#allocation3 + $0x1], 1 }

</bundles_post_ra>
